<compile_context>
chip_gen: v7x
topology: tpu7x:2x2x1
jax: 0.10.0
libtpu: 0.0.40
codegen_flags: <defaults>
</compile_context>

<pallas_src>
import numpy as np

import jax
import jax.numpy as jnp
from jax import lax
from jax.experimental import pallas as pl
from jax.experimental.pallas import tpu as pltpu

EPS = 1e-5
NEG_SLOPE = 0.02


def _resblock_kernel(x_ref, a_ref, wb1_ref, b1_ref, g1_ref, be1_ref,
                     wb2_ref, b2_ref, g2_ref, be2_ref, out_ref, pad_ref):
    n, dp2, hwci = pad_ref.shape          # (N, D+2, H*W*Cin)
    d = dp2 - 2

    x = x_ref[...]                        # (N*D, H*W*Cin), lane-dense, f32
    a = a_ref[...]                        # (H*W*Cin, H*W*Cin) channel-avg matrix

    def batchnorm(h, g_t, be_t):
        # Training-mode BatchNorm3d: per-channel batch mean / biased variance.
        # Sublane row-sum then one matmul with `a` (entries 1/M where lanes
        # share a channel): reduces over spatial lanes AND broadcasts the
        # per-channel statistic back to every lane of that channel.
        mean_t = jnp.dot(jnp.sum(h, axis=0, keepdims=True), a,
                         preferred_element_type=jnp.float32)
        diff = h - mean_t
        var_t = jnp.dot(jnp.sum(diff * diff, axis=0, keepdims=True), a,
                        preferred_element_type=jnp.float32)
        return diff * lax.rsqrt(var_t + EPS) * g_t + be_t

    def lrelu(h):
        return jnp.where(h > 0, h, NEG_SLOPE * h)

    def conv_patch(h, extra):
        # Lane-dense im2col patch for one 3x3x3 'same' conv.  The H/W taps are
        # already folded into the banded weight; only the 3 depth taps are
        # built here from a zero-haloed row buffer (halo rows were zeroed once
        # at kernel start and are never overwritten, giving 'same' D padding).
        pad_ref[:, 1:1 + d, :] = h.reshape(n, d, hwci)
        slabs = [pad_ref[:, kd:kd + d, :].reshape(n * d, hwci)
                 for kd in range(3)]
        if extra is not None:
            slabs.append(extra)          # fused 1x1x1 identity branch columns
        return jnp.concatenate(slabs, axis=1)

    # Zero the depth-halo buffer once; both convs reuse it.
    pad_ref[...] = jnp.zeros_like(pad_ref)

    # BN1 -> LeakyReLU -> Conv1 (3x3x3, Cin -> Cin): one (N*D, 3*H*W*Cin) matmul.
    h = lrelu(batchnorm(x, g1_ref[...], be1_ref[...]))
    h = jnp.dot(conv_patch(h, None), wb1_ref[...],
                preferred_element_type=jnp.float32) + b1_ref[...]

    # BN2 -> LeakyReLU -> Conv2 (3x3x3, Cin -> Cout) fused with the 1x1x1
    # identity map on the ORIGINAL input (extra K columns); bias = b2 + bi.
    h = lrelu(batchnorm(h, g2_ref[...], be2_ref[...]))
    out_ref[...] = jnp.dot(conv_patch(h, x), wb2_ref[...],
                           preferred_element_type=jnp.float32) + b2_ref[...]


# ----------------------------------------------------------------------------
# Host-side weight preprocessing (pure layout/packing of static weights).
# ----------------------------------------------------------------------------
def _banded_conv_weight(w, H, W):
    """w: (3,3,3,Cin,Cout) DHWIO weight of a 'same' conv.

    Returns (3*H*W*Cin, H*W*Cout): for each depth tap a doubly-block-Toeplitz
    matrix implementing the 2-D 'same' convolution over (H, W), so the whole
    3x3x3 conv becomes a single matmul against the depth-tap patch matrix.
    """
    kD, kH, kW, cin, cout = w.shape
    wn = np.asarray(w, dtype=np.float32)
    big = np.zeros((kD, H, W, cin, H, W, cout), np.float32)
    for kh in range(kH):
        for kw in range(kW):
            dh, dw = kh - kH // 2, kw - kW // 2
            for ho in range(H):
                h_in = ho + dh
                if not 0 <= h_in < H:
                    continue
                for wo in range(W):
                    w_in = wo + dw
                    if not 0 <= w_in < W:
                        continue
                    big[:, h_in, w_in, :, ho, wo, :] = wn[:, kh, kw, :, :]
    return jnp.asarray(big.reshape(kD * H * W * cin, H * W * cout))


def _blockdiag_1x1_weight(wi, H, W):
    """wi: (Cin, Cout) 1x1x1 conv -> block-diagonal (H*W*Cin, H*W*Cout)."""
    cin, cout = wi.shape
    big = np.zeros((H * W, cin, H * W, cout), np.float32)
    idx = np.arange(H * W)
    big[idx, :, idx, :] = np.asarray(wi, dtype=np.float32)
    return jnp.asarray(big.reshape(H * W * cin, H * W * cout))


def _channel_avg_matrix(c, hw, m):
    lane = np.arange(hw * c)
    a = (lane[:, None] % c == lane[None, :] % c).astype(np.float32) / float(m)
    return jnp.asarray(a)


def _tile_channels(v, hw):
    # Per-channel vector -> lane-dense (1, H*W*C) row matching index p*C + c.
    return jnp.tile(jnp.asarray(v, jnp.float32).reshape(1, -1), (1, hw))


def resblock_pallas(x, params):
    """x: (N, D, H, W, Cin) NDHWC float32 (a PyTorch NCDHW tensor transposed)."""
    N, D, H, W, Cin = x.shape
    Cout = params["w2"].shape[-1]
    HW = H * W
    M = N * D * HW                       # elements per channel (BN population)
    R = N * D

    x2d = x.reshape(R, HW * Cin)         # lane-dense activation layout
    a = _channel_avg_matrix(Cin, HW, M)
    wb1 = _banded_conv_weight(params["w1"], H, W)             # (3*HW*Cin, HW*Cin)
    wb2 = jnp.concatenate(
        [_banded_conv_weight(params["w2"], H, W),             # (3*HW*Cin, HW*Cout)
         _blockdiag_1x1_weight(params["wi"], H, W)], axis=0)  # (HW*Cin,  HW*Cout)
    b1 = _tile_channels(params["b1"], HW)
    b2 = _tile_channels(params["b2"] + params["bi"], HW)      # fused conv2+iden bias
    g1 = _tile_channels(params["g1"], HW)
    be1 = _tile_channels(params["be1"], HW)
    g2 = _tile_channels(params["g2"], HW)
    be2 = _tile_channels(params["be2"], HW)

    args = (x2d, a, wb1, b1, g1, be1, wb2, b2, g2, be2)
    flops = (2 * R * wb1.shape[0] * wb1.shape[1]
             + 2 * R * wb2.shape[0] * wb2.shape[1]
             + 4 * 2 * (HW * Cin) ** 2)                       # BN stat matmuls
    bytes_accessed = sum(int(v.size) * 4 for v in args) + R * HW * Cout * 4

    vmem = pl.BlockSpec(memory_space=pltpu.MemorySpace.VMEM)
    # TODO(synk): no grid -> single TensorCore (v7x has 2); sharding over N/D
    # would require restructuring training-mode BatchNorm into accumulate /
    # finalize passes for global batch statistics.  Irrelevant at these shapes.
    out2d = pl.pallas_call(
        _resblock_kernel,
        out_shape=jax.ShapeDtypeStruct((R, HW * Cout), jnp.float32),
        in_specs=[vmem] * len(args),
        out_specs=vmem,
        scratch_shapes=[pltpu.VMEM((N, D + 2, HW * Cin), jnp.float32)],
        cost_estimate=pl.CostEstimate(flops=flops,
                                      transcendentals=2 * HW * Cin,
                                      bytes_accessed=bytes_accessed),
    )(*args)
    return out2d.reshape(N, D, H, W, Cout)


def init_params(key, n_in, n_out):
    # Deterministic synthetic parameters (shapes from ResBlock.__init__).
    # BN weight/bias follow the PyTorch default init (ones / zeros).
    # TODO(synk): BatchNorm running_mean/running_var buffer updates are a
    # training-time side effect and do not affect the forward output; omitted.
    ks = jax.random.split(key, 6)
    return {
        "w1": 0.1 * jax.random.normal(ks[0], (3, 3, 3, n_in, n_in), jnp.float32),
        "b1": 0.1 * jax.random.normal(ks[1], (n_in,), jnp.float32),
        "w2": 0.1 * jax.random.normal(ks[2], (3, 3, 3, n_in, n_out), jnp.float32),
        "b2": 0.1 * jax.random.normal(ks[3], (n_out,), jnp.float32),
        "wi": 0.1 * jax.random.normal(ks[4], (n_in, n_out), jnp.float32),
        "bi": 0.1 * jax.random.normal(ks[5], (n_out,), jnp.float32),
        "g1": jnp.ones((n_in,), jnp.float32),
        "be1": jnp.zeros((n_in,), jnp.float32),
        "g2": jnp.ones((n_in,), jnp.float32),
        "be2": jnp.zeros((n_in,), jnp.float32),
    }


def resblock_ref(x, params):
    # Pure-JAX reference (same NDHWC layout) for correctness checking.
    n_in = x.shape[-1]

    def bn(h, g, b):
        m = jnp.mean(h, axis=(0, 1, 2, 3), keepdims=True)
        v = jnp.mean((h - m) ** 2, axis=(0, 1, 2, 3), keepdims=True)
        return ((h - m) * lax.rsqrt(v + EPS) * g.reshape(1, 1, 1, 1, -1)
                + b.reshape(1, 1, 1, 1, -1))

    def lrelu(h):
        return jnp.where(h > 0, h, NEG_SLOPE * h)

    dn = ("NDHWC", "DHWIO", "NDHWC")
    wi = params["wi"].reshape(1, 1, 1, n_in, -1)

    h = lrelu(bn(x, params["g1"], params["be1"]))
    h = lax.conv_general_dilated(h, params["w1"], (1, 1, 1), "SAME",
                                 dimension_numbers=dn) + params["b1"].reshape(1, 1, 1, 1, -1)
    h = lrelu(bn(h, params["g2"], params["be2"]))
    h = lax.conv_general_dilated(h, params["w2"], (1, 1, 1), "SAME",
                                 dimension_numbers=dn) + params["b2"].reshape(1, 1, 1, 1, -1)
    iden = lax.conv_general_dilated(x, wi, (1, 1, 1), "SAME",
                                    dimension_numbers=dn) + params["bi"].reshape(1, 1, 1, 1, -1)
    return h + iden


if __name__ == "__main__":
    key = jax.random.PRNGKey(0)
    kx, kp = jax.random.split(key)

    N, D, H, W = 2, 8, 8, 8
    n_in, n_out = 4, 8

    x = jax.random.normal(kx, (N, D, H, W, n_in), jnp.float32)  # NDHWC
    params = init_params(kp, n_in, n_out)

    out = jax.block_until_ready(resblock_pallas(x, params))
    assert out.shape == (N, D, H, W, n_out), out.shape

    ref = resblock_ref(x, params)
    max_err = float(jnp.max(jnp.abs(out - ref)))
    assert jnp.allclose(out, ref, atol=2e-2, rtol=2e-2), f"max abs err {max_err}"

    print("KERNEL_OK")
</pallas_src>

<mosaic_0001>
module attributes {stable_mosaic.version = 11 : i64} {
  func.func @_resblock_kernel(%arg0: memref<16x256xf32, #tpu.memory_space<vmem>>, %arg1: memref<256x256xf32, #tpu.memory_space<vmem>>, %arg2: memref<768x256xf32, #tpu.memory_space<vmem>>, %arg3: memref<1x256xf32, #tpu.memory_space<vmem>>, %arg4: memref<1x256xf32, #tpu.memory_space<vmem>>, %arg5: memref<1x256xf32, #tpu.memory_space<vmem>>, %arg6: memref<1024x512xf32, #tpu.memory_space<vmem>>, %arg7: memref<1x512xf32, #tpu.memory_space<vmem>>, %arg8: memref<1x256xf32, #tpu.memory_space<vmem>>, %arg9: memref<1x256xf32, #tpu.memory_space<vmem>>, %arg10: memref<16x512xf32, #tpu.memory_space<vmem>>, %arg11: memref<2x10x256xf32, #tpu.memory_space<vmem>>) attributes {dimension_semantics = [], scalar_prefetch = 0 : i64, scratch_operands = 1 : i64, tpu.core_type = #tpu.core_type<tc>} {
    %c0 = arith.constant 0 : index
    %c0_0 = arith.constant 0 : index
    %0 = vector.load %arg0[%c0, %c0_0] : memref<16x256xf32, #tpu.memory_space<vmem>>, vector<16x256xf32>
    %c0_1 = arith.constant 0 : index
    %c0_2 = arith.constant 0 : index
    %1 = vector.load %arg1[%c0_1, %c0_2] : memref<256x256xf32, #tpu.memory_space<vmem>>, vector<256x256xf32>
    %cst = arith.constant 0.000000e+00 : f32
    %2 = vector.broadcast %cst : f32 to vector<2x10x256xf32>
    %c0_3 = arith.constant 0 : index
    %c0_4 = arith.constant 0 : index
    %c0_5 = arith.constant 0 : index
    %3 = vector.load %arg11[%c0_3, %c0_4, %c0_5] : memref<2x10x256xf32, #tpu.memory_space<vmem>>, vector<2x10x256xf32>
    tpu.vector_store %arg11[%c0_3, %c0_4, %c0_5], %2 {strides = array<i32>} : memref<2x10x256xf32, #tpu.memory_space<vmem>>, vector<2x10x256xf32>,
    %c0_6 = arith.constant 0 : index
    %c0_7 = arith.constant 0 : index
    %4 = vector.load %arg4[%c0_6, %c0_7] : memref<1x256xf32, #tpu.memory_space<vmem>>, vector<1x256xf32>
    %c0_8 = arith.constant 0 : index
    %c0_9 = arith.constant 0 : index
    %5 = vector.load %arg5[%c0_8, %c0_9] : memref<1x256xf32, #tpu.memory_space<vmem>>, vector<1x256xf32>
    %cst_10 = arith.constant dense<0.000000e+00> : vector<256xf32>
    %6 = vector.multi_reduction <add>, %0, %cst_10 [0] : vector<16x256xf32> to vector<256xf32>
    %7 = vector.shape_cast %6 : vector<256xf32> to vector<1x256xf32>
    %cst_11 = arith.constant dense<0.000000e+00> : vector<1x256xf32>
    %8 = tpu.matmul %7, %1, %cst_11 {dimension_numbers = #tpu.dot_dimension_numbers<[1], [0], [0], [1], [0, 0, 1, 1], [], []>} : vector<1x256xf32>, vector<256x256xf32>, vector<1x256xf32> -> vector<1x256xf32>
    %9 = vector.broadcast %8 : vector<1x256xf32> to vector<16x256xf32>
    %10 = arith.subf %0, %9 : vector<16x256xf32>
    %11 = arith.mulf %10, %10 : vector<16x256xf32>
    %cst_12 = arith.constant dense<0.000000e+00> : vector<256xf32>
    %12 = vector.multi_reduction <add>, %11, %cst_12 [0] : vector<16x256xf32> to vector<256xf32>
    %13 = vector.shape_cast %12 : vector<256xf32> to vector<1x256xf32>
    %cst_13 = arith.constant dense<0.000000e+00> : vector<1x256xf32>
    %14 = tpu.matmul %13, %1, %cst_13 {dimension_numbers = #tpu.dot_dimension_numbers<[1], [0], [0], [1], [0, 0, 1, 1], [], []>} : vector<1x256xf32>, vector<256x256xf32>, vector<1x256xf32> -> vector<1x256xf32>
    %cst_14 = arith.constant 9.99999974E-6 : f32
    %15 = vector.broadcast %cst_14 : f32 to vector<1x256xf32>
    %16 = arith.addf %14, %15 : vector<1x256xf32>
    %17 = math.rsqrt %16 : vector<1x256xf32>
    %18 = vector.broadcast %17 : vector<1x256xf32> to vector<16x256xf32>
    %19 = arith.mulf %10, %18 : vector<16x256xf32>
    %20 = vector.broadcast %4 : vector<1x256xf32> to vector<16x256xf32>
    %21 = arith.mulf %19, %20 : vector<16x256xf32>
    %22 = vector.broadcast %5 : vector<1x256xf32> to vector<16x256xf32>
    %23 = arith.addf %21, %22 : vector<16x256xf32>
    %cst_15 = arith.constant 0.000000e+00 : f32
    %24 = vector.broadcast %cst_15 : f32 to vector<16x256xf32>
    %25 = arith.cmpf ogt, %23, %24 : vector<16x256xf32>
    %cst_16 = arith.constant 2.000000e-02 : f32
    %26 = vector.broadcast %cst_16 : f32 to vector<16x256xf32>
    %27 = arith.mulf %26, %23 : vector<16x256xf32>
    %28 = arith.select %25, %23, %27 : vector<16x256xi1>, vector<16x256xf32>
    %29 = vector.shape_cast %28 : vector<16x256xf32> to vector<2x8x256xf32>
    %c0_17 = arith.constant 0 : index
    %c1 = arith.constant 1 : index
    %c0_18 = arith.constant 0 : index
    %30 = vector.load %arg11[%c0_17, %c1, %c0_18] : memref<2x10x256xf32, #tpu.memory_space<vmem>>, vector<2x8x256xf32>
    tpu.vector_store %arg11[%c0_17, %c1, %c0_18], %29 {strides = array<i32>} : memref<2x10x256xf32, #tpu.memory_space<vmem>>, vector<2x8x256xf32>,
    %c0_19 = arith.constant 0 : index
    %c0_20 = arith.constant 0 : index
    %c0_21 = arith.constant 0 : index
    %31 = vector.load %arg11[%c0_19, %c0_20, %c0_21] : memref<2x10x256xf32, #tpu.memory_space<vmem>>, vector<2x8x256xf32>
    %32 = vector.shape_cast %31 : vector<2x8x256xf32> to vector<16x256xf32>
    %c0_22 = arith.constant 0 : index
    %c1_23 = arith.constant 1 : index
    %c0_24 = arith.constant 0 : index
    %33 = vector.load %arg11[%c0_22, %c1_23, %c0_24] : memref<2x10x256xf32, #tpu.memory_space<vmem>>, vector<2x8x256xf32>
    %34 = vector.shape_cast %33 : vector<2x8x256xf32> to vector<16x256xf32>
    %c0_25 = arith.constant 0 : index
    %c2 = arith.constant 2 : index
    %c0_26 = arith.constant 0 : index
    %35 = vector.load %arg11[%c0_25, %c2, %c0_26] : memref<2x10x256xf32, #tpu.memory_space<vmem>>, vector<2x8x256xf32>
    %36 = vector.shape_cast %35 : vector<2x8x256xf32> to vector<16x256xf32>
    %37 = tpu.concatenate %32, %34, %36 in 1 : vector<16x256xf32>, vector<16x256xf32>, vector<16x256xf32> -> vector<16x768xf32>
    %c0_27 = arith.constant 0 : index
    %c0_28 = arith.constant 0 : index
    %38 = vector.load %arg2[%c0_27, %c0_28] : memref<768x256xf32, #tpu.memory_space<vmem>>, vector<768x256xf32>
    %cst_29 = arith.constant dense<0.000000e+00> : vector<16x256xf32>
    %39 = tpu.matmul %37, %38, %cst_29 {dimension_numbers = #tpu.dot_dimension_numbers<[1], [0], [0], [1], [0, 0, 1, 1], [], []>} : vector<16x768xf32>, vector<768x256xf32>, vector<16x256xf32> -> vector<16x256xf32>
    %c0_30 = arith.constant 0 : index
    %c0_31 = arith.constant 0 : index
    %40 = vector.load %arg3[%c0_30, %c0_31] : memref<1x256xf32, #tpu.memory_space<vmem>>, vector<1x256xf32>
    %41 = vector.broadcast %40 : vector<1x256xf32> to vector<16x256xf32>
    %42 = arith.addf %39, %41 : vector<16x256xf32>
    %c0_32 = arith.constant 0 : index
    %c0_33 = arith.constant 0 : index
    %43 = vector.load %arg8[%c0_32, %c0_33] : memref<1x256xf32, #tpu.memory_space<vmem>>, vector<1x256xf32>
    %c0_34 = arith.constant 0 : index
    %c0_35 = arith.constant 0 : index
    %44 = vector.load %arg9[%c0_34, %c0_35] : memref<1x256xf32, #tpu.memory_space<vmem>>, vector<1x256xf32>
    %cst_36 = arith.constant dense<0.000000e+00> : vector<256xf32>
    %45 = vector.multi_reduction <add>, %42, %cst_36 [0] : vector<16x256xf32> to vector<256xf32>
    %46 = vector.shape_cast %45 : vector<256xf32> to vector<1x256xf32>
    %cst_37 = arith.constant dense<0.000000e+00> : vector<1x256xf32>
    %47 = tpu.matmul %46, %1, %cst_37 {dimension_numbers = #tpu.dot_dimension_numbers<[1], [0], [0], [1], [0, 0, 1, 1], [], []>} : vector<1x256xf32>, vector<256x256xf32>, vector<1x256xf32> -> vector<1x256xf32>
    %48 = vector.broadcast %47 : vector<1x256xf32> to vector<16x256xf32>
    %49 = arith.subf %42, %48 : vector<16x256xf32>
    %50 = arith.mulf %49, %49 : vector<16x256xf32>
    %cst_38 = arith.constant dense<0.000000e+00> : vector<256xf32>
    %51 = vector.multi_reduction <add>, %50, %cst_38 [0] : vector<16x256xf32> to vector<256xf32>
    %52 = vector.shape_cast %51 : vector<256xf32> to vector<1x256xf32>
    %cst_39 = arith.constant dense<0.000000e+00> : vector<1x256xf32>
    %53 = tpu.matmul %52, %1, %cst_39 {dimension_numbers = #tpu.dot_dimension_numbers<[1], [0], [0], [1], [0, 0, 1, 1], [], []>} : vector<1x256xf32>, vector<256x256xf32>, vector<1x256xf32> -> vector<1x256xf32>
    %cst_40 = arith.constant 9.99999974E-6 : f32
    %54 = vector.broadcast %cst_40 : f32 to vector<1x256xf32>
    %55 = arith.addf %53, %54 : vector<1x256xf32>
    %56 = math.rsqrt %55 : vector<1x256xf32>
    %57 = vector.broadcast %56 : vector<1x256xf32> to vector<16x256xf32>
    %58 = arith.mulf %49, %57 : vector<16x256xf32>
    %59 = vector.broadcast %43 : vector<1x256xf32> to vector<16x256xf32>
    %60 = arith.mulf %58, %59 : vector<16x256xf32>
    %61 = vector.broadcast %44 : vector<1x256xf32> to vector<16x256xf32>
    %62 = arith.addf %60, %61 : vector<16x256xf32>
    %cst_41 = arith.constant 0.000000e+00 : f32
    %63 = vector.broadcast %cst_41 : f32 to vector<16x256xf32>
    %64 = arith.cmpf ogt, %62, %63 : vector<16x256xf32>
    %cst_42 = arith.constant 2.000000e-02 : f32
    %65 = vector.broadcast %cst_42 : f32 to vector<16x256xf32>
    %66 = arith.mulf %65, %62 : vector<16x256xf32>
    %67 = arith.select %64, %62, %66 : vector<16x256xi1>, vector<16x256xf32>
    %68 = vector.shape_cast %67 : vector<16x256xf32> to vector<2x8x256xf32>
    %c0_43 = arith.constant 0 : index
    %c1_44 = arith.constant 1 : index
    %c0_45 = arith.constant 0 : index
    %69 = vector.load %arg11[%c0_43, %c1_44, %c0_45] : memref<2x10x256xf32, #tpu.memory_space<vmem>>, vector<2x8x256xf32>
    tpu.vector_store %arg11[%c0_43, %c1_44, %c0_45], %68 {strides = array<i32>} : memref<2x10x256xf32, #tpu.memory_space<vmem>>, vector<2x8x256xf32>,
    %c0_46 = arith.constant 0 : index
    %c0_47 = arith.constant 0 : index
    %c0_48 = arith.constant 0 : index
    %70 = vector.load %arg11[%c0_46, %c0_47, %c0_48] : memref<2x10x256xf32, #tpu.memory_space<vmem>>, vector<2x8x256xf32>
    %71 = vector.shape_cast %70 : vector<2x8x256xf32> to vector<16x256xf32>
    %c0_49 = arith.constant 0 : index
    %c1_50 = arith.constant 1 : index
    %c0_51 = arith.constant 0 : index
    %72 = vector.load %arg11[%c0_49, %c1_50, %c0_51] : memref<2x10x256xf32, #tpu.memory_space<vmem>>, vector<2x8x256xf32>
    %73 = vector.shape_cast %72 : vector<2x8x256xf32> to vector<16x256xf32>
    %c0_52 = arith.constant 0 : index
    %c2_53 = arith.constant 2 : index
    %c0_54 = arith.constant 0 : index
    %74 = vector.load %arg11[%c0_52, %c2_53, %c0_54] : memref<2x10x256xf32, #tpu.memory_space<vmem>>, vector<2x8x256xf32>
    %75 = vector.shape_cast %74 : vector<2x8x256xf32> to vector<16x256xf32>
    %76 = tpu.concatenate %71, %73, %75, %0 in 1 : vector<16x256xf32>, vector<16x256xf32>, vector<16x256xf32>, vector<16x256xf32> -> vector<16x1024xf32>
    %c0_55 = arith.constant 0 : index
    %c0_56 = arith.constant 0 : index
    %77 = vector.load %arg6[%c0_55, %c0_56] : memref<1024x512xf32, #tpu.memory_space<vmem>>, vector<1024x512xf32>
    %cst_57 = arith.constant dense<0.000000e+00> : vector<16x512xf32>
    %78 = tpu.matmul %76, %77, %cst_57 {dimension_numbers = #tpu.dot_dimension_numbers<[1], [0], [0], [1], [0, 0, 1, 1], [], []>} : vector<16x1024xf32>, vector<1024x512xf32>, vector<16x512xf32> -> vector<16x512xf32>
    %c0_58 = arith.constant 0 : index
    %c0_59 = arith.constant 0 : index
    %79 = vector.load %arg7[%c0_58, %c0_59] : memref<1x512xf32, #tpu.memory_space<vmem>>, vector<1x512xf32>
    %80 = vector.broadcast %79 : vector<1x512xf32> to vector<16x512xf32>
    %81 = arith.addf %78, %80 : vector<16x512xf32>
    %c0_60 = arith.constant 0 : index
    %c0_61 = arith.constant 0 : index
    %82 = vector.load %arg10[%c0_60, %c0_61] : memref<16x512xf32, #tpu.memory_space<vmem>>, vector<16x512xf32>
    tpu.vector_store %arg10[%c0_60, %c0_61], %81 {strides = array<i32>} : memref<16x512xf32, #tpu.memory_space<vmem>>, vector<16x512xf32>,
    return
  }
}

</mosaic_0001>

<bundles_post_ra>
// kernel: tpu_custom_call.1
= control target key start
LH: loop header
LB: loop body
LE: loop exit
PB: predicated region body
PF: predicated region fallthrough
CT: control target
= control target key end

     0   :  { %15 = vsyncpa [#allocation4], 0  ;;  %s4491_s0 = inlined_call_operand.hbm [shape: f32[16,256], index: 0, kind: input, shape index: {}]   ;;  %s4492_s1 = inlined_call_operand.hbm [shape: f32[256,256], index: 1, kind: input, shape index: {}]   ;;  %s4493_s2 = inlined_call_operand.hbm [shape: f32[768,256], index: 2, kind: input, shape index: {}]   ;;  %s4494_s3 = inlined_call_operand.hbm [shape: f32[1,256], index: 3, kind: input, shape index: {}]   ;;  %s4495_s4 = inlined_call_operand.hbm [shape: f32[1,256], index: 4, kind: input, shape index: {}]   ;;  %s4496_s5 = inlined_call_operand.hbm [shape: f32[1,256], index: 5, kind: input, shape index: {}]   ;;  %s4497_s6 = inlined_call_operand.hbm [shape: f32[1024,512], index: 6, kind: input, shape index: {}]   ;;  %s4498_s7 = inlined_call_operand.hbm [shape: f32[1,512], index: 7, kind: input, shape index: {}]   ;;  %s4499_s8 = inlined_call_operand.hbm [shape: f32[1,256], index: 8, kind: input, shape index: {}]   ;;  %s4500_s9 = inlined_call_operand.hbm [shape: f32[1,256], index: 9, kind: input, shape index: {}]   ;;  %s4501_s10 = inlined_call_operand.hbm [shape: f32[16,512], index: 10, kind: output, shape index: {}]  }
   0x1   :  { %16 = vsyncpa [#allocation7], 0 }
   0x2   :  { %17 = vsyncpa [#allocation10], 0 }
   0x3   :  { %18 = vsyncpa [#allocation13], 0 }
   0x4   :  { %19 = vsyncpa [#allocation16], 0 }
   0x5   :  { %20 = vsyncpa [#allocation19], 0 }
   0x6   :  { %21 = vsyncpa [#allocation5], 0  ;;  %s3837_s13 = smov [#allocation6]   ;;  %s3838_s15 = smov [#allocation9]  }
   0x7   :  { %s39_s14 = sshll.u32 %s3837_s13, 4  ;;  %s64_s16 = sshll.u32 %s3838_s15, 4  ;;  %s40_s14 = int_to_ptr.vmem [resolvable:$true] %s39_s14  ;;  %s65_s16 = int_to_ptr.vmem [resolvable:$true] %s64_s16 }
   0x8   :  { %s3581_s19 = scalar_lea.hbm %s4492_s1, 8192 }
   0x9   :  { %p3582_p0 = scmp.ne.s32.totalorder %s4492_s1, %s3581_s19  ;;  %p3585_p1 = scmp.lt.u32.totalorder %s3581_s19, %s4492_s1 }
   0xb   :  { %p3587_p2 = pnand %p3585_p1, %p3582_p0 }
   0xd   :  { %3590 = shalt.err (!%p3587_p2)
}
   0xe   :  { %s3591_s24 = scalar_lea.vmem %s40_s14, 8192  ;;  %p3596_p4 = scmp.lt.s32.totalorder %s40_s14, %s40_s14 }
   0xf   :  { %p3592_p3 = scmp.ne.s32.totalorder %s40_s14, %s3591_s24  ;;  %p3597_p5 = scmp.lt.s32.totalorder %s3591_s24, %s3591_s24 }
  0x11   :  { %p3598_p6 = por %p3597_p5, %p3596_p4 }
  0x13   :  { %p3599_p7 = pnand %p3598_p6, %p3592_p3 }
  0x15   :  { %3602 = shalt.err (!%p3599_p7)
}
  0x16   :  { %s3839_s25 = smov 256   ;;  %s3840_s26 = smov 16  }
  0x17   :  { %45 = dma.hbm_to_vmem [thread:$0]  %s4492_s1, 8192, %s40_s14, [#allocation7], %s3839_s25, %s3839_s25, %s3840_s26  }
  0x18   :  { %s3603_s11 = scalar_lea.hbm %s4494_s3, 32 }
  0x19   :  { %p3604_p8 = scmp.ne.s32.totalorder %s4494_s3, %s3603_s11  ;;  %p3607_p9 = scmp.lt.u32.totalorder %s3603_s11, %s4494_s3 }
  0x1b   :  { %p3609_p10 = pnand %p3607_p9, %p3604_p8 }
  0x1d   :  { %3612 = shalt.err (!%p3609_p10)
}
  0x1e   :  { %s3613_s18 = scalar_lea.vmem %s65_s16, 32  ;;  %p3618_p12 = scmp.lt.s32.totalorder %s65_s16, %s65_s16 }
  0x1f   :  { %p3614_p11 = scmp.ne.s32.totalorder %s65_s16, %s3613_s18  ;;  %p3619_p13 = scmp.lt.s32.totalorder %s3613_s18, %s3613_s18 }
  0x21   :  { %p3620_p0 = por %p3619_p13, %p3618_p12 }
  0x23   :  { %p3621_p1 = pnand %p3620_p0, %p3614_p11 }
  0x25   :  { %3624 = shalt.err (!%p3621_p1)
}
  0x26   :  { %67 = dma.hbm_to_vmem [thread:$0]  %s4494_s3, 32, %s65_s16, [#allocation10]  }
  0x27   :  { %s3841_s19 = smov [#allocation12]   ;;  %s3842_s21 = smov [#allocation15]  }
  0x28   :  { %s84_s20 = sshll.u32 %s3841_s19, 4  ;;  %s106_s22 = sshll.u32 %s3842_s21, 4  ;;  %s85_s20 = int_to_ptr.vmem [resolvable:$true] %s84_s20  ;;  %s107_s22 = int_to_ptr.vmem [resolvable:$true] %s106_s22 }
  0x29   :  { %s3625_s27 = scalar_lea.hbm %s4496_s5, 32 }
  0x2a   :  { %p3626_p2 = scmp.ne.s32.totalorder %s4496_s5, %s3625_s27  ;;  %p3629_p3 = scmp.lt.u32.totalorder %s3625_s27, %s4496_s5 }
  0x2c   :  { %p3631_p4 = pnand %p3629_p3, %p3626_p2 }
  0x2e   :  { %3634 = shalt.err (!%p3631_p4)
}
  0x2f   :  { %s3635_s3 = scalar_lea.vmem %s85_s20, 32  ;;  %p3640_p6 = scmp.lt.s32.totalorder %s85_s20, %s85_s20 }
  0x30   :  { %p3636_p5 = scmp.ne.s32.totalorder %s85_s20, %s3635_s3  ;;  %p3641_p7 = scmp.lt.s32.totalorder %s3635_s3, %s3635_s3 }
  0x32   :  { %p3642_p8 = por %p3641_p7, %p3640_p6 }
  0x34   :  { %p3643_p9 = pnand %p3642_p8, %p3636_p5 }
  0x36   :  { %3646 = shalt.err (!%p3643_p9)
}
  0x37   :  { %87 = dma.hbm_to_vmem [thread:$0]  %s4496_s5, 32, %s85_s20, [#allocation13]  }
  0x38   :  { %s3647_s17 = scalar_lea.hbm %s4498_s7, 64 }
  0x39   :  { %p3648_p10 = scmp.ne.s32.totalorder %s4498_s7, %s3647_s17  ;;  %p3651_p11 = scmp.lt.u32.totalorder %s3647_s17, %s4498_s7 }
  0x3b   :  { %p3653_p12 = pnand %p3651_p11, %p3648_p10 }
  0x3d   :  { %3656 = shalt.err (!%p3653_p12)
}
  0x3e   :  { %s3657_s21 = scalar_lea.vmem %s107_s22, 64  ;;  %p3662_p0 = scmp.lt.s32.totalorder %s107_s22, %s107_s22 }
  0x3f   :  { %p3658_p13 = scmp.ne.s32.totalorder %s107_s22, %s3657_s21  ;;  %p3663_p1 = scmp.lt.s32.totalorder %s3657_s21, %s3657_s21 }
  0x41   :  { %p3664_p2 = por %p3663_p1, %p3662_p0 }
  0x43   :  { %p3665_p3 = pnand %p3664_p2, %p3658_p13 }
  0x45   :  { %3668 = shalt.err (!%p3665_p3)
}
  0x46   :  { %109 = dma.hbm_to_vmem [thread:$0]  %s4498_s7, 64, %s107_s22, [#allocation16]  }
  0x47   :  { %s3843_s23 = smov [#allocation3]   ;;  %s3844_s27 = smov [#allocation8]  }
  0x48   :  { %s27_s24 = sshll.u32 %s3843_s23, 4  ;;  %s51_s28 = sshll.u32 %s3844_s27, 4  ;;  %s28_s24 = int_to_ptr.vmem [resolvable:$true] %s27_s24  ;;  %s3959_s28 = int_to_ptr.vmem [resolvable:$true] %s51_s28 }
  0x49   :  { %s3669_s11 = scalar_lea.hbm %s4491_s0, 512 }
  0x4a   :  { %p3670_p4 = scmp.ne.s32.totalorder %s4491_s0, %s3669_s11  ;;  %p3673_p5 = scmp.lt.u32.totalorder %s3669_s11, %s4491_s0 }
  0x4c   :  { %p3675_p6 = pnand %p3673_p5, %p3670_p4 }
  0x4e   :  { %3678 = shalt.err (!%p3675_p6)
}
  0x4f   :  { %s3679_s7 = scalar_lea.vmem %s28_s24, 512  ;;  %p3684_p8 = scmp.lt.s32.totalorder %s28_s24, %s28_s24 }
  0x50   :  { %p3680_p7 = scmp.ne.s32.totalorder %s28_s24, %s3679_s7  ;;  %p3685_p9 = scmp.lt.s32.totalorder %s3679_s7, %s3679_s7 }
  0x52   :  { %p3686_p10 = por %p3685_p9, %p3684_p8 }
  0x54   :  { %p3687_p11 = pnand %p3686_p10, %p3680_p7 }
  0x56   :  { %3690 = shalt.err (!%p3687_p11)
}
  0x57   :  { %33 = dma.hbm_to_vmem [thread:$0]  %s4491_s0, 512, %s28_s24, [#allocation4], %s3839_s25, %s3839_s25, %s3840_s26  }
  0x58   :  { %s3691_s1 = scalar_lea.hbm %s4493_s2, 24576 }
  0x59   :  { %p3692_p12 = scmp.ne.s32.totalorder %s4493_s2, %s3691_s1  ;;  %p3695_p13 = scmp.lt.u32.totalorder %s3691_s1, %s4493_s2 }
  0x5b   :  { %p3697_p0 = pnand %p3695_p13, %p3692_p12 }
  0x5d   :  { %3700 = shalt.err (!%p3697_p0)
}
  0x5e   :  { %s3701_s20 = scalar_lea.vmem %s3959_s28, 24576  ;;  %p3706_p2 = scmp.lt.s32.totalorder %s3959_s28, %s3959_s28 }
  0x5f   :  { %p3702_p1 = scmp.ne.s32.totalorder %s3959_s28, %s3701_s20  ;;  %p3707_p3 = scmp.lt.s32.totalorder %s3701_s20, %s3701_s20 }
  0x61   :  { %p3708_p4 = por %p3707_p3, %p3706_p2 }
  0x63   :  { %p3709_p5 = pnand %p3708_p4, %p3702_p1 }
  0x65   :  { %3712 = shalt.err (!%p3709_p5)
}
  0x66   :  { %57 = dma.hbm_to_vmem [thread:$0]  %s4493_s2, 24576, %s3959_s28, [#allocation7], %s3839_s25, %s3839_s25, %s3840_s26  }
  0x67   :  { %s3845_s24 = smov [#allocation11]   ;;  %s3846_s29 = smov [#allocation14]  }
  0x68   :  { %s74_s27 = sshll.u32 %s3845_s24, 4  ;;  %s93_s30 = sshll.u32 %s3846_s29, 4  ;;  %s75_s27 = int_to_ptr.vmem [resolvable:$true] %s74_s27  ;;  %s3996_s30 = int_to_ptr.vmem [resolvable:$true] %s93_s30 }
  0x69   :  { %s3713_s16 = scalar_lea.hbm %s4495_s4, 32 }
  0x6a   :  { %p3714_p6 = scmp.ne.s32.totalorder %s4495_s4, %s3713_s16  ;;  %p3717_p7 = scmp.lt.u32.totalorder %s3713_s16, %s4495_s4 }
  0x6c   :  { %p3719_p8 = pnand %p3717_p7, %p3714_p6 }
  0x6e   :  { %3722 = shalt.err (!%p3719_p8)
}
  0x6f   :  { %s3723_s2 = scalar_lea.vmem %s75_s27, 32  ;;  %p3728_p10 = scmp.lt.s32.totalorder %s75_s27, %s75_s27 }
  0x70   :  { %p3724_p9 = scmp.ne.s32.totalorder %s75_s27, %s3723_s2  ;;  %p3729_p11 = scmp.lt.s32.totalorder %s3723_s2, %s3723_s2 }
  0x72   :  { %p3730_p12 = por %p3729_p11, %p3728_p10 }
  0x74   :  { %p3731_p13 = pnand %p3730_p12, %p3724_p9 }
  0x76   :  { %3734 = shalt.err (!%p3731_p13)
}
  0x77   :  { %77 = dma.hbm_to_vmem [thread:$0]  %s4495_s4, 32, %s75_s27, [#allocation10]  }
  0x78   :  { %s3735_s17 = scalar_lea.hbm %s4497_s6, 65536 }
  0x79   :  { %p3736_p0 = scmp.ne.s32.totalorder %s4497_s6, %s3735_s17  ;;  %p3739_p1 = scmp.lt.u32.totalorder %s3735_s17, %s4497_s6 }
  0x7b   :  { %p3741_p2 = pnand %p3739_p1, %p3736_p0 }
  0x7d   :  { %3744 = shalt.err (!%p3741_p2)
}
  0x7e   :  { %s3745_s21 = scalar_lea.vmem %s3996_s30, 65536  ;;  %p3750_p4 = scmp.lt.s32.totalorder %s3996_s30, %s3996_s30 }
  0x7f   :  { %p3746_p3 = scmp.ne.s32.totalorder %s3996_s30, %s3745_s21  ;;  %p3751_p5 = scmp.lt.s32.totalorder %s3745_s21, %s3745_s21 }
  0x81   :  { %p3752_p6 = por %p3751_p5, %p3750_p4 }
  0x83   :  { %p3753_p7 = pnand %p3752_p6, %p3746_p3 }
  0x85   :  { %3756 = shalt.err (!%p3753_p7)
}
  0x86   :  { %s3847_s4 = smov 512   ;;  %s3848_s5 = smov 32  }
  0x87   :  { %99 = dma.hbm_to_vmem [thread:$0]  %s4497_s6, 65536, %s3996_s30, [#allocation13], %s3847_s4, %s3847_s4, %s3848_s5  }
  0x88   :  { %s3849_s23 = smov [#allocation17]   ;;  %s3850_s27 = smov [#allocation18]  }
  0x89   :  { %s116_s24 = sshll.u32 %s3849_s23, 4  ;;  %s126_s29 = sshll.u32 %s3850_s27, 4  ;;  %s117_s24 = int_to_ptr.vmem [resolvable:$true] %s116_s24  ;;  %s127_s29 = int_to_ptr.vmem [resolvable:$true] %s126_s29 }
  0x8a   :  { %s3757_s16 = scalar_lea.hbm %s4499_s8, 32 }
  0x8b   :  { %p3758_p8 = scmp.ne.s32.totalorder %s4499_s8, %s3757_s16  ;;  %p3761_p9 = scmp.lt.u32.totalorder %s3757_s16, %s4499_s8 }
  0x8d   :  { %p3763_p10 = pnand %p3761_p9, %p3758_p8 }
  0x8f   :  { %3766 = shalt.err (!%p3763_p10)
}
  0x90   :  { %s3767_s6 = scalar_lea.vmem %s117_s24, 32  ;;  %p3772_p12 = scmp.lt.s32.totalorder %s117_s24, %s117_s24 }
  0x91   :  { %p3768_p11 = scmp.ne.s32.totalorder %s117_s24, %s3767_s6  ;;  %p3773_p13 = scmp.lt.s32.totalorder %s3767_s6, %s3767_s6 }
  0x93   :  { %p3774_p0 = por %p3773_p13, %p3772_p12 }
  0x95   :  { %p3775_p1 = pnand %p3774_p0, %p3768_p11 }
  0x97   :  { %3778 = shalt.err (!%p3775_p1)
}
  0x98   :  { %119 = dma.hbm_to_vmem [thread:$0]  %s4499_s8, 32, %s117_s24, [#allocation16]  }
  0x99   :  { %s3779_s28 = scalar_lea.hbm %s4500_s9, 32 }
  0x9a   :  { %p3780_p2 = scmp.ne.s32.totalorder %s4500_s9, %s3779_s28  ;;  %p3783_p3 = scmp.lt.u32.totalorder %s3779_s28, %s4500_s9 }
  0x9c   :  { %p3785_p4 = pnand %p3783_p3, %p3780_p2 }
  0x9e   :  { %3788 = shalt.err (!%p3785_p4)
}
  0x9f   :  { %s3789_s14 = scalar_lea.vmem %s127_s29, 32  ;;  %p3794_p6 = scmp.lt.s32.totalorder %s127_s29, %s127_s29 }
  0xa0   :  { %p3790_p5 = scmp.ne.s32.totalorder %s127_s29, %s3789_s14  ;;  %p3795_p7 = scmp.lt.s32.totalorder %s3789_s14, %s3789_s14 }
  0xa2   :  { %p3796_p8 = por %p3795_p7, %p3794_p6 }
  0xa4   :  { %p3797_p9 = pnand %p3796_p8, %p3790_p5 }
  0xa6   :  { %3800 = shalt.err (!%p3797_p9)
}
  0xa7   :  { %129 = dma.hbm_to_vmem [thread:$0]  %s4500_s9, 32, %s127_s29, [#allocation19]  }
  0xa8   :  { %3823 = dma.done.wait [#allocation4], 512  }
  0xa9   :  { %3824 = vsyncadd [#allocation4], 4294966784 }
  0xaa   :  { %3825 = dma.done.wait [#allocation7], 32768  }
  0xab   :  { %3826 = vsyncadd [#allocation7], 4294934528 }
  0xac   :  { %3827 = dma.done.wait [#allocation10], 64  }
  0xad   :  { %3828 = vsyncadd [#allocation10], 4294967232 }
  0xae   :  { %3829 = dma.done.wait [#allocation13], 65568  }
  0xaf   :  { %3830 = vsyncadd [#allocation13], 4294901728 }
  0xb0   :  { %3831 = dma.done.wait [#allocation16], 96  }
  0xb1   :  { %3832 = vsyncadd [#allocation16], 4294967200 }
  0xb2   :  { %3833 = dma.done.wait [#allocation19], 32  }
  0xb3   :  { %3834 = vsyncadd [#allocation19], 4294967264  ;;  %v165_v0 = vld [vmem:[#allocation6 + $0x8] sm:$0xff]  ;;  %v167_v1 = vld [vmem:[#allocation6 + $0x18] sm:$0xff]  ;;  %vm520_vm4 = vcmask 1046528   ;;  %vm553_vm5 = vcmask 1045504  }
  0xb4   :  { %v164_v2 = vld [vmem:[#allocation6] sm:$0xff]  ;;  %v4054_v3 = vpack.c.bf16 %v167_v1, %v165_v0  ;;  %v166_v4 = vld [vmem:[#allocation6 + $0x10] sm:$0xff]  ;;  %v169_v5 = vld [vmem:[#allocation6 + $0x28] sm:$0xff]  ;;  %s3852_s9 = smov [#allocation20]  }
  0xb5   :  { %v171_v6 = vld [vmem:[#allocation6 + $0x38] sm:$0xff]  ;;  %v4056_v7 = vpack.c.bf16 %v166_v4, %v164_v2  ;;  %v168_v9 = vld [vmem:[#allocation6 + $0x20] sm:$0xff]  ;;  %v170_v10 = vld [vmem:[#allocation6 + $0x30] sm:$0xff]  ;;  %s2500_s21 = sshll.u32 %s3852_s9, 4  ;;  %s2501_s21 = int_to_ptr.vmem [resolvable:$true] %s2500_s21 }
  0xb6   :  { %v4058_v8 = vpack.c.bf16 %v171_v6, %v169_v5  ;;  %v173_v11 = vld [vmem:[#allocation6 + $0x48] sm:$0xff]  ;;  %2518 = vmatprep.subr.bf16.mxu0 %v4054_v3  ;;  %v175_v12 = vld [vmem:[#allocation6 + $0x58] sm:$0xff]  ;;  %2582 = vmatprep.subr.bf16.mxu1 %v4054_v3  ;;  %v4063_v13 = vpack.c.bf16 %v170_v10, %v168_v9  ;;  %v172_v15 = vld [vmem:[#allocation6 + $0x40] sm:$0xff]  ;;  %s3801_s20 = scalar_lea.vmem %s2501_s21, 1024  ;;  %p3806_p11 = scmp.lt.s32.totalorder %s2501_s21, %s2501_s21 }
  0xb7   :  { %2520 = vmatpush1.bf16.msra.mxu0 %v4056_v7  ;;  %2584 = vmatpush1.bf16.msra.mxu1 %v4056_v7  ;;  %v4067_v14 = vpack.c.bf16 %v175_v12, %v173_v11  ;;  %v174_v16 = vld [vmem:[#allocation6 + $0x50] sm:$0xff]  ;;  %v177_v17 = vld [vmem:[#allocation6 + $0x68] sm:$0xff]  ;;  %v179_v18 = vld [vmem:[#allocation6 + $0x78] sm:$0xff]  ;;  %p3802_p10 = scmp.ne.s32.totalorder %s2501_s21, %s3801_s20  ;;  %p3807_p12 = scmp.lt.s32.totalorder %s3801_s20, %s3801_s20 }
  0xb8   :  { %2522 = vmatprep.subr.bf16.mxu0 %v4058_v8  ;;  %2586 = vmatprep.subr.bf16.mxu1 %v4058_v8  ;;  %v4071_v19 = vpack.c.bf16 %v174_v16, %v172_v15  ;;  %v4075_v20 = vpack.c.bf16 %v179_v18, %v177_v17  ;;  %v176_v21 = vld [vmem:[#allocation6 + $0x60] sm:$0xff]  ;;  %v178_v22 = vld [vmem:[#allocation6 + $0x70] sm:$0xff]  ;;  %v181_v23 = vld [vmem:[#allocation6 + $0x88] sm:$0xff] }
  0xb9   :  { %v183_v24 = vld [vmem:[#allocation6 + $0x98] sm:$0xff]  ;;  %v4079_v25 = vpack.c.bf16 %v178_v22, %v176_v21  ;;  %v180_v27 = vld [vmem:[#allocation6 + $0x80] sm:$0xff]  ;;  %v182_v28 = vld [vmem:[#allocation6 + $0x90] sm:$0xff]  ;;  %p3808_p13 = por %p3807_p12, %p3806_p11 }
  0xba   :  { %v4083_v26 = vpack.c.bf16 %v183_v24, %v181_v23  ;;  %v185_v29 = vld [vmem:[#allocation6 + $0xa8] sm:$0xff]  ;;  %v187_v30 = vld [vmem:[#allocation6 + $0xb8] sm:$0xff]  ;;  %v4087_v31 = vpack.c.bf16 %v182_v28, %v180_v27  ;;  %v184_v33 = vld [vmem:[#allocation6 + $0xa0] sm:$0xff] }
  0xbb   :  { %2524 = vmatpush1.bf16.msra.mxu0 %v4063_v13  ;;  %2588 = vmatpush1.bf16.msra.mxu1 %v4063_v13  ;;  %v4091_v32 = vpack.c.bf16 %v187_v30, %v185_v29  ;;  %v186_v34 = vld [vmem:[#allocation6 + $0xb0] sm:$0xff]  ;;  %v189_v35 = vld [vmem:[#allocation6 + $0xc8] sm:$0xff]  ;;  %v191_v36 = vld [vmem:[#allocation6 + $0xd8] sm:$0xff]  ;;  %p3809_p0 = pnand %p3808_p13, %p3802_p10 }
  0xbc   :  { %2526 = vmatprep.subr.bf16.mxu0 %v4067_v14  ;;  %2590 = vmatprep.subr.bf16.mxu1 %v4067_v14  ;;  %v4095_v37 = vpack.c.bf16 %v186_v34, %v184_v33  ;;  %v188_v38 = vld [vmem:[#allocation6 + $0xc0] sm:$0xff]  ;;  %v4099_v39 = vpack.c.bf16 %v191_v36, %v189_v35  ;;  %v190_v40 = vld [vmem:[#allocation6 + $0xd0] sm:$0xff]  ;;  %v4101_v41 = vld [vmem:[#allocation3 + $0x8] sm:$0xff] }
  0xbd   :  { %v4103_v42 = vld [vmem:[#allocation3 + $0x18] sm:$0xff]  ;;  %v193_v43 = vld [vmem:[#allocation6 + $0xe8] sm:$0xff]  ;;  %v4109_v46 = vpack.c.bf16 %v190_v40, %v188_v38  ;;  %v192_v49 = vld [vmem:[#allocation6 + $0xe0] sm:$0xff] }
  0xbe   :  { %v195_v44 = vld [vmem:[#allocation6 + $0xf8] sm:$0xff]  ;;  %v245_v45 = vadd.f32 %v4103_v42, %v4101_v41  ;;  %v194_v50 = vld [vmem:[#allocation6 + $0xf0] sm:$0xff]  ;;  %v197_v51 = vld [vmem:[#allocation6 + $0x108] sm:$0xff] }
  0xbf   :  { %2528 = vmatpush1.bf16.msra.mxu0 %v4071_v19  ;;  %2592 = vmatpush1.bf16.msra.mxu1 %v4071_v19  ;;  %v4113_v48 = vpack.c.bf16 %v195_v44, %v193_v43  ;;  %v199_v52 = vld [vmem:[#allocation6 + $0x118] sm:$0xff]  ;;  %v4117_v54 = vpack.c.bf16 %v194_v50, %v192_v49  ;;  %v196_v57 = vld [vmem:[#allocation6 + $0x100] sm:$0xff]  ;;  %v198_v58 = vld [vmem:[#allocation6 + $0x110] sm:$0xff] }
  0xc0   :  { %2530 = vmatprep.subr.bf16.mxu0 %v4075_v20  ;;  %2594 = vmatprep.subr.bf16.mxu1 %v4075_v20  ;;  %v246_v47 = vrot.slane %v245_v45, 4  ;;  %v4121_v56 = vpack.c.bf16 %v199_v52, %v197_v51  ;;  %v201_v59 = vld [vmem:[#allocation6 + $0x128] sm:$0xff]  ;;  %v203_v60 = vld [vmem:[#allocation6 + $0x138] sm:$0xff]  ;;  %v4125_v62 = vpack.c.bf16 %v198_v58, %v196_v57  ;;  %v200_v1 = vld [vmem:[#allocation6 + $0x120] sm:$0xff] }
  0xc1   :  { %v4129_v0 = vpack.c.bf16 %v203_v60, %v201_v59  ;;  %v202_v2 = vld [vmem:[#allocation6 + $0x130] sm:$0xff]  ;;  %v205_v4 = vld [vmem:[#allocation6 + $0x148] sm:$0xff]  ;;  %v207_v5 = vld [vmem:[#allocation6 + $0x158] sm:$0xff] }
  0xc2   :  { %v247_v53 = vadd.f32 %v246_v47, %v245_v45  ;;  %v4133_v9 = vpack.c.bf16 %v202_v2, %v200_v1  ;;  %v4135_v10 = vld [vmem:[#allocation3] sm:$0xff]  ;;  %v4137_v11 = vld [vmem:[#allocation3 + $0x10] sm:$0xff]  ;;  %v4140_v12 = vpack.c.bf16 %v207_v5, %v205_v4  ;;  %v209_v17 = vld [vmem:[#allocation6 + $0x168] sm:$0xff] }
  0xc3   :  { %2532 = vmatpush1.bf16.msra.mxu0 %v4079_v25  ;;  %2596 = vmatpush1.bf16.msra.mxu1 %v4079_v25  ;;  %v204_v15 = vld [vmem:[#allocation6 + $0x140] sm:$0xff]  ;;  %v206_v16 = vld [vmem:[#allocation6 + $0x150] sm:$0xff]  ;;  %v211_v18 = vld [vmem:[#allocation6 + $0x178] sm:$0xff]  ;;  %v238_v21 = vadd.f32 %v4137_v11, %v4135_v10 }
  0xc4   :  { %2534 = vmatprep.subr.bf16.mxu0 %v4083_v26  ;;  %2598 = vmatprep.subr.bf16.mxu1 %v4083_v26  ;;  %v248_v55 = vrot.slane %v247_v53, 2  ;;  %v4147_v22 = vpack.c.bf16 %v206_v16, %v204_v15  ;;  %v4150_v23 = vpack.c.bf16 %v211_v18, %v209_v17  ;;  %v208_v24 = vld [vmem:[#allocation6 + $0x160] sm:$0xff]  ;;  %v210_v27 = vld [vmem:[#allocation6 + $0x170] sm:$0xff]  ;;  %v213_v28 = vld [vmem:[#allocation6 + $0x188] sm:$0xff] }
  0xc5   :  { %v215_v29 = vld [vmem:[#allocation6 + $0x198] sm:$0xff]  ;;  %v239_v30 = vrot.slane %v238_v21, 4  ;;  %v4155_v33 = vpack.c.bf16 %v210_v27, %v208_v24  ;;  %v212_v35 = vld [vmem:[#allocation6 + $0x180] sm:$0xff]  ;;  %v214_v36 = vld [vmem:[#allocation6 + $0x190] sm:$0xff] }
  0xc6   :  { %v249_v61 = vadd.f32 %v248_v55, %v247_v53  ;;  %v4158_v34 = vpack.c.bf16 %v215_v29, %v213_v28  ;;  %v217_v38 = vld [vmem:[#allocation6 + $0x1a8] sm:$0xff]  ;;  %v219_v40 = vld [vmem:[#allocation6 + $0x1b8] sm:$0xff]  ;;  %v4163_v44 = vpack.c.bf16 %v214_v36, %v212_v35  ;;  %v216_v47 = vld [vmem:[#allocation6 + $0x1a0] sm:$0xff]  ;;  %v3851_v29 = vmov 0.0  }
  0xc7   :  { %2536 = vmatpush1.bf16.msra.mxu0 %v4087_v31  ;;  %2600 = vmatpush1.bf16.msra.mxu1 %v4087_v31  ;;  %v240_v43 = vadd.f32 %v239_v30, %v238_v21  ;;  %v4166_v45 = vpack.c.bf16 %v219_v40, %v217_v38  ;;  %v218_v49 = vld [vmem:[#allocation6 + $0x1b0] sm:$0xff]  ;;  %v221_v50 = vld [vmem:[#allocation6 + $0x1c8] sm:$0xff]  ;;  %v223_v51 = vld [vmem:[#allocation6 + $0x1d8] sm:$0xff]  ;;  %228 = vst [vmem:[#allocation2] sm:$0xff] %v3851_v29 }
  0xc8   :  { %2538 = vmatprep.subr.bf16.mxu0 %v4091_v32  ;;  %2602 = vmatprep.subr.bf16.mxu1 %v4091_v32  ;;  %v250_v63 = vrot.slane %v249_v61, 1  ;;  %v4171_v53 = vpack.c.bf16 %v218_v49, %v216_v47  ;;  %v4174_v55 = vpack.c.bf16 %v223_v51, %v221_v50  ;;  %v220_v57 = vld [vmem:[#allocation6 + $0x1c0] sm:$0xff]  ;;  %v222_v58 = vld [vmem:[#allocation6 + $0x1d0] sm:$0xff]  ;;  %v225_v59 = vld [vmem:[#allocation6 + $0x1e8] sm:$0xff]  ;;  %230 = vst [vmem:[#allocation2 + $0x10] sm:$0x3] %v3851_v29 }
  0xc9   :  { %v241_v52 = vrot.slane %v240_v43, 2  ;;  %v227_v60 = vld [vmem:[#allocation6 + $0x1f8] sm:$0xff]  ;;  %v224_v2 = vld [vmem:[#allocation6 + $0x1e0] sm:$0xff]  ;;  %v226_v4 = vld [vmem:[#allocation6 + $0x1f0] sm:$0xff]  ;;  %232 = vst [vmem:[#allocation2 + $0x20] sm:$0xff] %v3851_v29 }
  0xca   :  { %v251_v6 = vadd.f32 %v250_v63, %v249_v61  ;;  %v4179_v63 = vpack.c.bf16 %v222_v58, %v220_v57  ;;  %v4182_v1 = vpack.c.bf16 %v227_v60, %v225_v59  ;;  %v571_v16 = vld [vmem:[#allocation8 + $0x8] sm:$0xff]  ;;  %v573_v17 = vld [vmem:[#allocation8 + $0x18] sm:$0xff]  ;;  %v570_v18 = vld [vmem:[#allocation8] sm:$0xff]  ;;  %234 = vst [vmem:[#allocation2 + $0x30] sm:$0x3] %v3851_v29 }
  0xcb   :  { %2540 = vmatpush1.bf16.msra.mxu0 %v4095_v37  ;;  %2604 = vmatpush1.bf16.msra.mxu1 %v4095_v37  ;;  %v242_v61 = vadd.f32 %v241_v52, %v240_v43  ;;  %v2645_v21 = vpack.c.bf16 %v573_v17, %v571_v16  ;;  %v572_v24 = vld [vmem:[#allocation8 + $0x10] sm:$0xff]  ;;  %v575_v27 = vld [vmem:[#allocation8 + $0x28] sm:$0xff]  ;;  %v577_v28 = vld [vmem:[#allocation8 + $0x38] sm:$0xff]  ;;  %229 = vst [vmem:[#allocation2 + $0x8] sm:$0xff] %v3851_v29 }
  0xcc   :  { %2542 = vmatprep.subr.bf16.mxu0 %v4099_v39  ;;  %2606 = vmatprep.subr.bf16.mxu1 %v4099_v39  ;;  %231 = vst [vmem:[#allocation2 + $0x18] sm:$0x3] %v3851_v29  ;;  %233 = vst [vmem:[#allocation2 + $0x28] sm:$0xff] %v3851_v29  ;;  %v2647_v30 = vpack.c.bf16 %v572_v24, %v570_v18  ;;  %v2649_v35 = vpack.c.bf16 %v577_v28, %v575_v27  ;;  %v574_v36 = vld [vmem:[#allocation8 + $0x20] sm:$0xff]  ;;  %v576_v38 = vld [vmem:[#allocation8 + $0x30] sm:$0xff] }
  0xcd   :  { %316 = vmatprep.mubr.f32.mxu0 %v251_v6  ;;  %v243_v5 = vrot.slane %v242_v61, 1  ;;  %v4187_v6 = vpack.c.bf16 %v226_v4, %v224_v2  ;;  %235 = vst [vmem:[#allocation2 + $0x38] sm:$0x3] %v3851_v29  ;;  %v579_v40 = vld [vmem:[#allocation8 + $0x48] sm:$0xff]  ;;  %v581_v43 = vld [vmem:[#allocation8 + $0x58] sm:$0xff]  ;;  %v2651_v47 = vpack.c.bf16 %v576_v38, %v574_v36  ;;  %v578_v50 = vld [vmem:[#allocation8 + $0x40] sm:$0xff] }
  0xce   :  { %v2653_v49 = vpack.c.bf16 %v581_v43, %v579_v40  ;;  %v580_v51 = vld [vmem:[#allocation8 + $0x50] sm:$0xff]  ;;  %v583_v52 = vld [vmem:[#allocation8 + $0x68] sm:$0xff]  ;;  %v585_v57 = vld [vmem:[#allocation8 + $0x78] sm:$0xff] }
  0xcf   :  { %2544 = vmatpush1.bf16.msra.mxu0 %v4109_v46  ;;  %2608 = vmatpush1.bf16.msra.mxu1 %v4109_v46  ;;  %v244_v15 = vadd.f32 %v243_v5, %v242_v61  ;;  %v2655_v58 = vpack.c.bf16 %v580_v51, %v578_v50  ;;  %v2657_v59 = vpack.c.bf16 %v585_v57, %v583_v52  ;;  %v582_v60 = vld [vmem:[#allocation8 + $0x60] sm:$0xff]  ;;  %v584_v61 = vld [vmem:[#allocation8 + $0x70] sm:$0xff]  ;;  %v587_v2 = vld [vmem:[#allocation8 + $0x88] sm:$0xff] }
  0xd0   :  { %2546 = vmatprep.subr.bf16.mxu0 %v4113_v48  ;;  %2610 = vmatprep.subr.bf16.mxu1 %v4113_v48  ;;  %v589_v4 = vld [vmem:[#allocation8 + $0x98] sm:$0xff]  ;;  %v2659_v5 = vpack.c.bf16 %v584_v61, %v582_v60  ;;  %v586_v16 = vld [vmem:[#allocation8 + $0x80] sm:$0xff]  ;;  %v588_v17 = vld [vmem:[#allocation8 + $0x90] sm:$0xff] }
  0xd1   :  { %v591_v18 = vld [vmem:[#allocation8 + $0xa8] sm:$0xff]  ;;  %v2663_v24 = vpack.c.bf16 %v588_v17, %v586_v16  ;;  %v590_v28 = vld [vmem:[#allocation8 + $0xa0] sm:$0xff]  ;;  %v592_v29 = vld [vmem:[#allocation8 + $0xb0] sm:$0xff] }
  0xd2   :  { %v2667_v36 = vpack.c.bf16 %v592_v29, %v590_v28  ;;  %v594_v40 = vld [vmem:[#allocation8 + $0xc0] sm:$0xff]  ;;  %v596_v43 = vld [vmem:[#allocation8 + $0xd0] sm:$0xff] }
  0xd3   :  { %2548 = vmatpush1.bf16.msra.mxu0 %v4117_v54  ;;  %2612 = vmatpush1.bf16.msra.mxu1 %v4117_v54 }
  0xd4   :  { %2550 = vmatprep.subr.bf16.mxu0 %v4121_v56  ;;  %2614 = vmatprep.subr.bf16.mxu1 %v4121_v56 }
  0xd7   :  { %2552 = vmatpush1.bf16.msra.mxu0 %v4125_v62  ;;  %2616 = vmatpush1.bf16.msra.mxu1 %v4125_v62 }
  0xd8   :  { %2554 = vmatprep.subr.bf16.mxu0 %v4129_v0  ;;  %2618 = vmatprep.subr.bf16.mxu1 %v4129_v0 }
  0xdb   :  { %2556 = vmatpush1.bf16.msra.mxu0 %v4133_v9  ;;  %2620 = vmatpush1.bf16.msra.mxu1 %v4133_v9 }
  0xdc   :  { %2558 = vmatprep.subr.bf16.mxu0 %v4140_v12  ;;  %2622 = vmatprep.subr.bf16.mxu1 %v4140_v12 }
  0xdf   :  { %2560 = vmatpush1.bf16.msra.mxu0 %v4147_v22  ;;  %2624 = vmatpush1.bf16.msra.mxu1 %v4147_v22 }
  0xe0   :  { %2562 = vmatprep.subr.bf16.mxu0 %v4150_v23  ;;  %2626 = vmatprep.subr.bf16.mxu1 %v4150_v23 }
  0xe3   :  { %2564 = vmatpush1.bf16.msra.mxu0 %v4155_v33  ;;  %2628 = vmatpush1.bf16.msra.mxu1 %v4155_v33 }
  0xe4   :  { %2566 = vmatprep.subr.bf16.mxu0 %v4158_v34  ;;  %2630 = vmatprep.subr.bf16.mxu1 %v4158_v34 }
  0xe7   :  { %2568 = vmatpush1.bf16.msra.mxu0 %v4163_v44  ;;  %2632 = vmatpush1.bf16.msra.mxu1 %v4163_v44 }
  0xe8   :  { %2570 = vmatprep.subr.bf16.mxu0 %v4166_v45  ;;  %2634 = vmatprep.subr.bf16.mxu1 %v4166_v45 }
  0xeb   :  { %2572 = vmatpush1.bf16.msra.mxu0 %v4171_v53  ;;  %2636 = vmatpush1.bf16.msra.mxu1 %v4171_v53 }
  0xec   :  { %2574 = vmatprep.subr.bf16.mxu0 %v4174_v55  ;;  %2638 = vmatprep.subr.bf16.mxu1 %v4174_v55 }
  0xef   :  { %2576 = vmatpush1.bf16.msra.mxu0 %v4179_v63  ;;  %2640 = vmatpush1.bf16.msra.mxu1 %v4179_v63 }
  0xf0   :  { %2578 = vmatprep.subr.bf16.mxu0 %v4182_v1  ;;  %2642 = vmatprep.subr.bf16.mxu1 %v4182_v1 }
  0xf3   :  { %2580 = vmatpush1.bf16.msra.mxu0 %v4187_v6  ;;  %2644 = vmatpush1.bf16.msra.mxu1 %v4187_v6 }
  0xf4   :  { %2838 = vmatprep.subr.bf16.mxu1 %v4054_v3  ;;  %2646 = vmatprep.subr.bf16.mxu0 %v2645_v21  ;;  %v593_v21 = vld [vmem:[#allocation8 + $0xb8] sm:$0xff] }
  0xf5   :  { %v2665_v27 = vpack.c.bf16 %v593_v21, %v591_v18 }
  0xf6   :  { %317 = vmatmul.mubr.f32.vlgmr.msra.gmra.mrb[0].mxu0 %v244_v15  ;;  %v2661_v15 = vpack.c.bf16 %v589_v4, %v587_v2 }
  0xf7   :  { %2648 = vmatpush1.bf16.msra.mxu0 %v2647_v30  ;;  %v595_v30 = vld [vmem:[#allocation8 + $0xc8] sm:$0xff] }
  0xf8   :  { %2650 = vmatprep.subr.bf16.mxu0 %v2649_v35  ;;  %v597_v35 = vld [vmem:[#allocation8 + $0xd8] sm:$0xff] }
  0xf9   :  { %v2669_v38 = vpack.c.bf16 %v597_v35, %v595_v30 }
  0xfb   :  { %2652 = vmatpush1.bf16.msra.mxu0 %v2651_v47  ;;  %v2671_v47 = vpack.c.bf16 %v596_v43, %v594_v40  ;;  %v599_v40 = vld [vmem:[#allocation8 + $0xe8] sm:$0xff]  ;;  %v601_v43 = vld [vmem:[#allocation8 + $0xf8] sm:$0xff] }
  0xfc   :  { %2654 = vmatprep.subr.bf16.mxu0 %v2653_v49  ;;  %v323_v49 = vlaneseq }
  0xfe   :  { %v4195_v50 = vshrl.u32 %v323_v49, 7  ;;  %v598_v49 = vld [vmem:[#allocation8 + $0xe0] sm:$0xff] }
  0xff   :  { %2656 = vmatpush1.bf16.msra.mxu0 %v2655_v58 }
 0x100   :  { %2658 = vmatprep.subr.bf16.mxu0 %v2657_v59  ;;  %v4198_v51 = vsub.s32 0, %v4195_v50 }
 0x103   :  { %2660 = vmatpush1.bf16.msra.mxu0 %v2659_v5 }
 0x104   :  { %2662 = vmatprep.subr.bf16.mxu0 %v2661_v15 }
 0x107   :  { %2664 = vmatpush1.bf16.msra.mxu0 %v2663_v24 }
 0x108   :  { %2666 = vmatprep.subr.bf16.mxu0 %v2665_v27 }
 0x10b   :  { %2668 = vmatpush1.bf16.msra.mxu0 %v2667_v36 }
 0x10c   :  { %2670 = vmatprep.subr.bf16.mxu0 %v2669_v38 }
 0x10f   :  { %2672 = vmatpush1.bf16.msra.mxu0 %v2671_v47  ;;  %v2673_v47 = vpack.c.bf16 %v601_v43, %v599_v40  ;;  %v614_v40 = vld [vmem:[#allocation8 + $0x160] sm:$0xff]  ;;  %v616_v43 = vld [vmem:[#allocation8 + $0x170] sm:$0xff] }
 0x111   :  { %2674 = vmatprep.subr.bf16.mxu0 %v2673_v47  ;;  %v2691_v47 = vpack.c.bf16 %v616_v43, %v614_v40  ;;  %v635_v40 = vld [vmem:[#allocation8 + $0x208] sm:$0xff]  ;;  %v637_v43 = vld [vmem:[#allocation8 + $0x218] sm:$0xff] }
 0x1c9   :  { %v318_v52 = vpop.f32.mrb[0].mxu0 }
 0x1ca   :  { %v326_v57 = vrot.slane %v318_v52, %v4198_v51  ;;  %v320_v58 = vpop.f32.mrb[1].mxu0  ;;  %v600_v52 = vld [vmem:[#allocation8 + $0xf0] sm:$0xff] }
 0x1cb   :  { %v330_v59 = vrot.slane %v320_v58, %v4198_v51  ;;  %v603_v58 = vld [vmem:[#allocation8 + $0x108] sm:$0xff] }
 0x1cc   :  { %v4203_v60 = vsub.f32 %v4135_v10, %v326_v57  ;;  %v4206_v61 = vsub.f32 %v4137_v11, %v326_v57  ;;  %v2675_v57 = vpack.c.bf16 %v600_v52, %v598_v49  ;;  %v619_v49 = vld [vmem:[#allocation8 + $0x188] sm:$0xff]  ;;  %v621_v52 = vld [vmem:[#allocation8 + $0x198] sm:$0xff] }
 0x1cd   :  { %v4209_v2 = vsub.f32 %v4101_v41, %v330_v59  ;;  %v4212_v4 = vsub.f32 %v4103_v42, %v330_v59  ;;  %v605_v59 = vld [vmem:[#allocation8 + $0x118] sm:$0xff] }
 0x1ce   :  { %v335_v5 = vmul.f32 %v4203_v60, %v4203_v60  ;;  %v337_v15 = vmul.f32 %v4206_v61, %v4206_v61  ;;  %2676 = vmatpush1.bf16.msra.mxu0 %v2675_v57  ;;  %v2693_v57 = vpack.c.bf16 %v621_v52, %v619_v49 }
 0x1cf   :  { %v336_v16 = vmul.f32 %v4209_v2, %v4209_v2  ;;  %v338_v10 = vmul.f32 %v4212_v4, %v4212_v4 }
 0x1d0   :  { %v339_v11 = vadd.f32 %v337_v15, %v335_v5  ;;  %v2677_v5 = vpack.c.bf16 %v605_v59, %v603_v58  ;;  %v602_v15 = vld [vmem:[#allocation8 + $0x100] sm:$0xff]  ;;  %v620_v59 = vld [vmem:[#allocation8 + $0x190] sm:$0xff] }
 0x1d1   :  { %v346_v17 = vadd.f32 %v338_v10, %v336_v16  ;;  %v604_v16 = vld [vmem:[#allocation8 + $0x110] sm:$0xff]  ;;  %v618_v58 = vld [vmem:[#allocation8 + $0x180] sm:$0xff] }
 0x1d2   :  { %v340_v18 = vrot.slane %v339_v11, 4  ;;  %v2679_v10 = vpack.c.bf16 %v604_v16, %v602_v15  ;;  %2678 = vmatprep.subr.bf16.mxu0 %v2677_v5  ;;  %v2695_v5 = vpack.c.bf16 %v620_v59, %v618_v58  ;;  %v623_v15 = vld [vmem:[#allocation8 + $0x1a8] sm:$0xff]  ;;  %v625_v16 = vld [vmem:[#allocation8 + $0x1b8] sm:$0xff]  ;;  %v236_v59 = vld [vmem:[#allocation11] sm:$0x3] }
 0x1d3   :  { %v347_v41 = vrot.slane %v346_v17, 4 }
 0x1d4   :  { %v341_v21 = vadd.f32 %v340_v18, %v339_v11  ;;  %2680 = vmatpush1.bf16.msra.mxu0 %v2679_v10  ;;  %v607_v11 = vld [vmem:[#allocation8 + $0x128] sm:$0xff]  ;;  %v2697_v10 = vpack.c.bf16 %v625_v16, %v623_v15  ;;  %v237_v16 = vld [vmem:[#allocation12] sm:$0x3] }
 0x1d5   :  { %v348_v24 = vadd.f32 %v347_v41, %v346_v17  ;;  %v609_v17 = vld [vmem:[#allocation8 + $0x138] sm:$0xff]  ;;  %v608_v41 = vld [vmem:[#allocation8 + $0x130] sm:$0xff] }
 0x1d6   :  { %v342_v42 = vrot.slane %v341_v21, 2  ;;  %v2681_v18 = vpack.c.bf16 %v609_v17, %v607_v11  ;;  %v622_v11 = vld [vmem:[#allocation8 + $0x1a0] sm:$0xff]  ;;  %v624_v17 = vld [vmem:[#allocation8 + $0x1b0] sm:$0xff] }
 0x1d7   :  { %v349_v27 = vrot.slane %v348_v24, 2 }
 0x1d8   :  { %v343_v28 = vadd.f32 %v342_v42, %v341_v21  ;;  %2682 = vmatprep.subr.bf16.mxu0 %v2681_v18  ;;  %v613_v42 = vld [vmem:[#allocation8 + $0x158] sm:$0xff]  ;;  %v2699_v18 = vpack.c.bf16 %v624_v17, %v622_v11  ;;  %v442_v17 = vrot.slane %v236_v59, %v4198_v51 }
 0x1d9   :  { %v350_v29 = vadd.f32 %v349_v27, %v348_v24  ;;  %v611_v24 = vld [vmem:[#allocation8 + $0x148] sm:$0xff] }
 0x1da   :  { %v344_v30 = vrot.slane %v343_v28, 1  ;;  %v2685_v27 = vpack.c.bf16 %v613_v42, %v611_v24  ;;  %v626_v24 = vld [vmem:[#allocation8 + $0x1c0] sm:$0xff]  ;;  %v628_v42 = vld [vmem:[#allocation8 + $0x1d0] sm:$0xff] }
 0x1db   :  { %v351_v35 = vrot.slane %v350_v29, 1 }
 0x1dc   :  { %v345_v38 = vadd.f32 %v344_v30, %v343_v28  ;;  %v610_v28 = vld [vmem:[#allocation8 + $0x140] sm:$0xff] }
 0x1dd   :  { %v352_v36 = vadd.f32 %v351_v35, %v350_v29  ;;  %v612_v29 = vld [vmem:[#allocation8 + $0x150] sm:$0xff]  ;;  %v615_v35 = vld [vmem:[#allocation8 + $0x168] sm:$0xff] }
 0x1de   :  { %v2687_v30 = vpack.c.bf16 %v612_v29, %v610_v28  ;;  %v631_v28 = vld [vmem:[#allocation8 + $0x1e8] sm:$0xff]  ;;  %v633_v29 = vld [vmem:[#allocation8 + $0x1f8] sm:$0xff] }
 0x1df   :  { %417 = vmatprep.mubr.f32.mxu1 %v352_v36  ;;  %v617_v36 = vld [vmem:[#allocation8 + $0x178] sm:$0xff] }
 0x1e0   :  { %418 = vmatmul.mubr.f32.vlgmr.msra.gmra.mrb[0].mxu1 %v345_v38  ;;  %v2689_v38 = vpack.c.bf16 %v617_v36, %v615_v35  ;;  %v2705_v35 = vpack.c.bf16 %v633_v29, %v631_v28  ;;  %v632_v36 = vld [vmem:[#allocation8 + $0x1f0] sm:$0xff] }
 0x1e1   :  { %2840 = vmatpush1.bf16.msra.mxu1 %v4056_v7 }
 0x1e2   :  { %2842 = vmatprep.subr.bf16.mxu1 %v4058_v8 }
 0x1e5   :  { %2844 = vmatpush1.bf16.msra.mxu1 %v4063_v13 }
 0x1e6   :  { %2846 = vmatprep.subr.bf16.mxu1 %v4067_v14 }
 0x1e9   :  { %2848 = vmatpush1.bf16.msra.mxu1 %v4071_v19 }
 0x1ea   :  { %2850 = vmatprep.subr.bf16.mxu1 %v4075_v20 }
 0x1ed   :  { %2852 = vmatpush1.bf16.msra.mxu1 %v4079_v25 }
 0x1ee   :  { %2854 = vmatprep.subr.bf16.mxu1 %v4083_v26 }
 0x1f1   :  { %2856 = vmatpush1.bf16.msra.mxu1 %v4087_v31 }
 0x1f2   :  { %2858 = vmatprep.subr.bf16.mxu1 %v4091_v32 }
 0x1f5   :  { %2860 = vmatpush1.bf16.msra.mxu1 %v4095_v37 }
 0x1f6   :  { %2862 = vmatprep.subr.bf16.mxu1 %v4099_v39 }
 0x1f9   :  { %2864 = vmatpush1.bf16.msra.mxu1 %v4109_v46 }
 0x1fa   :  { %2866 = vmatprep.subr.bf16.mxu1 %v4113_v48 }
 0x1fd   :  { %2868 = vmatpush1.bf16.msra.mxu1 %v4117_v54 }
 0x1fe   :  { %2870 = vmatprep.subr.bf16.mxu1 %v4121_v56 }
 0x201   :  { %2872 = vmatpush1.bf16.msra.mxu1 %v4125_v62 }
 0x202   :  { %2874 = vmatprep.subr.bf16.mxu1 %v4129_v0 }
 0x205   :  { %2876 = vmatpush1.bf16.msra.mxu1 %v4133_v9 }
 0x206   :  { %2878 = vmatprep.subr.bf16.mxu1 %v4140_v12 }
 0x209   :  { %2880 = vmatpush1.bf16.msra.mxu1 %v4147_v22 }
 0x20a   :  { %2882 = vmatprep.subr.bf16.mxu1 %v4150_v23 }
 0x20d   :  { %2884 = vmatpush1.bf16.msra.mxu1 %v4155_v33 }
 0x20e   :  { %2886 = vmatprep.subr.bf16.mxu1 %v4158_v34 }
 0x211   :  { %2888 = vmatpush1.bf16.msra.mxu1 %v4163_v44 }
 0x212   :  { %2890 = vmatprep.subr.bf16.mxu1 %v4166_v45 }
 0x215   :  { %2892 = vmatpush1.bf16.msra.mxu1 %v4171_v53 }
 0x216   :  { %2894 = vmatprep.subr.bf16.mxu1 %v4174_v55 }
 0x219   :  { %2896 = vmatpush1.bf16.msra.mxu1 %v4179_v63 }
 0x21a   :  { %2898 = vmatprep.subr.bf16.mxu1 %v4182_v1 }
 0x21d   :  { %2900 = vmatpush1.bf16.msra.mxu1 %v4187_v6 }
 0x21e   :  { %2902 = vmatprep.subr.bf16.mxu1 %v4054_v3  ;;  %v606_v3 = vld [vmem:[#allocation8 + $0x120] sm:$0xff] }
 0x21f   :  { %v2683_v21 = vpack.c.bf16 %v608_v41, %v606_v3  ;;  %v627_v3 = vld [vmem:[#allocation8 + $0x1c8] sm:$0xff]  ;;  %v629_v41 = vld [vmem:[#allocation8 + $0x1d8] sm:$0xff] }
 0x221   :  { %2684 = vmatpush1.bf16.msra.mxu0 %v2683_v21  ;;  %v2701_v21 = vpack.c.bf16 %v629_v41, %v627_v3 }
 0x222   :  { %2686 = vmatprep.subr.bf16.mxu0 %v2685_v27  ;;  %v2703_v27 = vpack.c.bf16 %v628_v42, %v626_v24  ;;  %v457_v24 = vrot.slane %v237_v16, %v4198_v51 }
 0x225   :  { %2688 = vmatpush1.bf16.msra.mxu0 %v2687_v30  ;;  %v630_v30 = vld [vmem:[#allocation8 + $0x1e0] sm:$0xff] }
 0x226   :  { %2690 = vmatprep.subr.bf16.mxu0 %v2689_v38  ;;  %v2707_v38 = vpack.c.bf16 %v632_v36, %v630_v30 }
 0x229   :  { %2692 = vmatpush1.bf16.msra.mxu0 %v2691_v47  ;;  %v2709_v47 = vpack.c.bf16 %v637_v43, %v635_v40 }
 0x22a   :  { %2694 = vmatprep.subr.bf16.mxu0 %v2693_v57 }
 0x22d   :  { %2696 = vmatpush1.bf16.msra.mxu0 %v2695_v5  ;;  %v4255_v5 = vsub.s32 1, %v4195_v50 }
 0x22e   :  { %2698 = vmatprep.subr.bf16.mxu0 %v2697_v10 }
 0x22f   :  { %v446_v3 = vrot.slane %v236_v59, %v4255_v5  ;;  %v461_v28 = vrot.slane %v237_v16, %v4255_v5 }
 0x231   :  { %2700 = vmatpush1.bf16.msra.mxu0 %v2699_v18 }
 0x232   :  { %2702 = vmatprep.subr.bf16.mxu0 %v2701_v21 }
 0x235   :  { %2704 = vmatpush1.bf16.msra.mxu0 %v2703_v27 }
 0x236   :  { %2706 = vmatprep.subr.bf16.mxu0 %v2705_v35 }
 0x239   :  { %2708 = vmatpush1.bf16.msra.mxu0 %v2707_v38 }
 0x23a   :  { %2710 = vmatprep.subr.bf16.mxu0 %v2709_v47 }
 0x2b3   :  { %v419_v49 = vpop.f32.mrb[0].mxu1 }
 0x2b4   :  { %v420_v52 = vadd.f32 1e-05, %v419_v49  ;;  %v421_v57 = vpop.f32.mrb[1].mxu1 }
 0x2b5   :  { %v422_v58 = vadd.f32 1e-05, %v421_v57 }
 0x2b6   :  { %3569 = vrsqrt.f32 %v420_v52 }
 0x2b7   :  { %3571 = vrsqrt.f32 %v422_v58 }
 0x2c0   :  { %v3570_v15 = vpop.eup %3569 }
 0x2c1   :  { %v3572_v10 = vpop.eup %3571  ;;  %v429_v11 = vrot.slane %v3570_v15, %v4198_v51 }
 0x2c2   :  { %v433_v18 = vrot.slane %v3572_v10, %v4198_v51 }
 0x2c3   :  { %v434_v41 = vmul.f32 %v429_v11, %v4203_v60  ;;  %v436_v21 = vmul.f32 %v429_v11, %v4206_v61  ;;  %v634_v11 = vld [vmem:[#allocation8 + $0x200] sm:$0xff] }
 0x2c4   :  { %v435_v42 = vmul.f32 %v433_v18, %v4209_v2  ;;  %v437_v27 = vmul.f32 %v433_v18, %v4212_v4  ;;  %v639_v18 = vld [vmem:[#allocation8 + $0x228] sm:$0xff] }
 0x2c5   :  { %v449_v29 = vmul.f32 %v442_v17, %v434_v41  ;;  %v451_v30 = vmul.f32 %v442_v17, %v436_v21  ;;  %v636_v17 = vld [vmem:[#allocation8 + $0x210] sm:$0xff]  ;;  %v638_v21 = vld [vmem:[#allocation8 + $0x220] sm:$0xff] }
 0x2c6   :  { %v450_v35 = vmul.f32 %v446_v3, %v435_v42  ;;  %v452_v36 = vmul.f32 %v446_v3, %v437_v27  ;;  %v641_v3 = vld [vmem:[#allocation8 + $0x238] sm:$0xff]  ;;  %v2711_v41 = vpack.c.bf16 %v636_v17, %v634_v11 }
 0x2c7   :  { %v464_v38 = vadd.f32 %v457_v24, %v449_v29  ;;  %v466_v40 = vadd.f32 %v457_v24, %v451_v30  ;;  %v640_v24 = vld [vmem:[#allocation8 + $0x230] sm:$0xff]  ;;  %v2713_v27 = vpack.c.bf16 %v641_v3, %v639_v18  ;;  %v643_v29 = vld [vmem:[#allocation8 + $0x248] sm:$0xff]  ;;  %v653_v11 = vld [vmem:[#allocation8 + $0x298] sm:$0xff] }
 0x2c8   :  { %v465_v43 = vadd.f32 %v461_v28, %v450_v35  ;;  %v467_v47 = vadd.f32 %v461_v28, %v452_v36  ;;  %v645_v36 = vld [vmem:[#allocation8 + $0x258] sm:$0xff]  ;;  %v650_v3 = vld [vmem:[#allocation8 + $0x280] sm:$0xff] }
 0x2c9   :  { %vm468_vm0 = vcmp.gt.f32.partialorder %v464_v38, 0.0  ;;  %vm470_vm1 = vcmp.gt.f32.partialorder %v466_v40, 0.0  ;;  %v472_v60 = vmul.f32 0.02, %v464_v38  ;;  %v474_v61 = vmul.f32 0.02, %v466_v40 }
 0x2ca   :  { %vm469_vm2 = vcmp.gt.f32.partialorder %v465_v43, 0.0  ;;  %vm471_vm3 = vcmp.gt.f32.partialorder %v467_v47, 0.0  ;;  %v473_v49 = vmul.f32 0.02, %v465_v43  ;;  %v475_v2 = vmul.f32 0.02, %v467_v47 }
 0x2cb   :  { %v476_v52 = vsel %vm468_vm0, %v464_v38, %v472_v60  ;;  %v478_v4 = vsel %vm470_vm1, %v466_v40, %v474_v61  ;;  %v2717_v60 = vpack.c.bf16 %v645_v36, %v643_v29  ;;  %v642_v61 = vld [vmem:[#allocation8 + $0x240] sm:$0xff]  ;;  %v656_v29 = vld [vmem:[#allocation8 + $0x2b0] sm:$0xff] }
 0x2cc   :  { %v484_v57 = vrot.slane %v476_v52, 7  ;;  %v486_v58 = vrot.slane %v478_v4, 7  ;;  %v477_v59 = vsel %vm469_vm2, %v465_v43, %v473_v49  ;;  %v479_v15 = vsel %vm471_vm3, %v467_v47, %v475_v2  ;;  %v644_v49 = vld [vmem:[#allocation8 + $0x250] sm:$0xff]  ;;  %v647_v52 = vld [vmem:[#allocation8 + $0x268] sm:$0xff]  ;;  %v649_v4 = vld [vmem:[#allocation8 + $0x278] sm:$0xff] }
 0x2cd   :  { %v485_v16 = vrot.slane %v477_v59, 7  ;;  %v487_v10 = vrot.slane %v479_v15, 7  ;;  %v2715_v47 = vpack.c.bf16 %v640_v24, %v638_v21  ;;  %v2721_v59 = vpack.c.bf16 %v649_v4, %v647_v52  ;;  %v646_v15 = vld [vmem:[#allocation8 + $0x260] sm:$0xff]  ;;  %v655_v21 = vld [vmem:[#allocation8 + $0x2a8] sm:$0xff]  ;;  %v657_v24 = vld [vmem:[#allocation8 + $0x2b8] sm:$0xff] }
 0x2ce   :  { %492 = vst [vmem:[#allocation2] sm:$0xfe] %v484_v57  ;;  %494 = vst [vmem:[#allocation2 + $0x10] sm:$0x1] %v484_v57  ;;  %v664_v52 = vld [vmem:[#allocation8 + $0x2f0] sm:$0xff]  ;;  %v667_v4 = vld [vmem:[#allocation8 + $0x308] sm:$0xff] }
 0x2cf   :  { %496 = vst [vmem:[#allocation2 + $0x20] sm:$0xfe] %v486_v58  ;;  %498 = vst [vmem:[#allocation2 + $0x30] sm:$0x1] %v486_v58  ;;  %v2719_v58 = vpack.c.bf16 %v644_v49, %v642_v61 }
 0x2d0   :  { %493 = vst [vmem:[#allocation2 + $0x8] sm:$0xfe] %v485_v16  ;;  %495 = vst [vmem:[#allocation2 + $0x18] sm:$0x1] %v485_v16  ;;  %v648_v16 = vld [vmem:[#allocation8 + $0x270] sm:$0xff] }
 0x2d1   :  { %497 = vst [vmem:[#allocation2 + $0x28] sm:$0xfe] %v487_v10  ;;  %499 = vst [vmem:[#allocation2 + $0x38] sm:$0x1] %v487_v10  ;;  %v651_v10 = vld [vmem:[#allocation8 + $0x288] sm:$0xff]  ;;  %v2723_v17 = vpack.c.bf16 %v648_v16, %v646_v15  ;;  %v666_v15 = vld [vmem:[#allocation8 + $0x300] sm:$0xff] }
 0x2d2   :  { %v2725_v18 = vpack.c.bf16 %v653_v11, %v651_v10  ;;  %v668_v16 = vld [vmem:[#allocation8 + $0x310] sm:$0xff]  ;;  %v671_v10 = vld [vmem:[#allocation8 + $0x328] sm:$0xff]  ;;  %v673_v11 = vld [vmem:[#allocation8 + $0x338] sm:$0xff] }
 0x2d5   :  { %v500_v30 = vld [vmem:[#allocation2] sm:$0xff] }
 0x2d6   :  { %v502_v2 = vld [vmem:[#allocation2 + $0x20] sm:$0xff] }
 0x2d7   :  { %v501_v42 = vld [vmem:[#allocation2 + $0x8] sm:$0xff]  ;;  %v507_v35 = vld [vmem:[#allocation2 + $0x18] sm:$0x1] }
 0x2d8   :  { %v505_v28 = vld [vmem:[#allocation2 + $0x8] sm:$0xfe]  ;;  %838 = vmatprep.mubr.f32.mxu0 %v501_v42  ;;  %v525_v43 = vrot.slane %v507_v35, 1  ;;  %v661_v35 = vld [vmem:[#allocation8 + $0x2d8] sm:$0xff] }
 0x2d9   :  { %839 = vmatmul.mubr.f32.vlgmr.msra.gmra.mrb[2].mxu0 %v500_v30  ;;  %v503_v38 = vld [vmem:[#allocation2 + $0x28] sm:$0xff]  ;;  %v524_v40 = vrot.slane %v505_v28, 1  ;;  %v654_v28 = vld [vmem:[#allocation8 + $0x2a0] sm:$0xff] }
 0x2da   :  { %2712 = vmatpush1.bf16.msra.mxu0 %v2711_v41  ;;  %844 = vmatprep.mubr.f32.mxu0 %v503_v38  ;;  %v652_v41 = vld [vmem:[#allocation8 + $0x290] sm:$0xff]  ;;  %v659_v30 = vld [vmem:[#allocation8 + $0x2c8] sm:$0xff]  ;;  %v2731_v36 = vpack.c.bf16 %v656_v29, %v654_v28  ;;  %v674_v28 = vld [vmem:[#allocation8 + $0x340] sm:$0xff] }
 0x2db   :  { %2714 = vmatprep.subr.bf16.mxu0 %v2713_v27  ;;  %v526_v57 = vsel %vm520_vm4, %v524_v40, %v525_v43  ;;  %v2727_v42 = vpack.c.bf16 %v652_v41, %v650_v3  ;;  %v2729_v27 = vpack.c.bf16 %v657_v24, %v655_v21  ;;  %v2733_v38 = vpack.c.bf16 %v661_v35, %v659_v30  ;;  %v658_v40 = vld [vmem:[#allocation8 + $0x2c0] sm:$0xff]  ;;  %v660_v43 = vld [vmem:[#allocation8 + $0x2d0] sm:$0xff]  ;;  %v675_v21 = vld [vmem:[#allocation8 + $0x348] sm:$0xff] }
 0x2dc   :  { %v2735_v61 = vpack.c.bf16 %v660_v43, %v658_v40  ;;  %v670_v3 = vld [vmem:[#allocation8 + $0x320] sm:$0xff]  ;;  %v672_v41 = vld [vmem:[#allocation8 + $0x330] sm:$0xff]  ;;  %v677_v24 = vld [vmem:[#allocation8 + $0x358] sm:$0xff] }
 0x2dd   :  { %845 = vmatmul.mubr.f32.gmra.mrb[4].mxu0 %v502_v2  ;;  %v662_v2 = vld [vmem:[#allocation8 + $0x2e0] sm:$0xff]  ;;  %v676_v29 = vld [vmem:[#allocation8 + $0x350] sm:$0xff]  ;;  %v679_v30 = vld [vmem:[#allocation8 + $0x368] sm:$0xff] }
 0x2de   :  { %2716 = vmatpush1.bf16.msra.mxu0 %v2715_v47  ;;  %915 = vmatprep.mubr.f32.mxu0 %v526_v57  ;;  %v663_v47 = vld [vmem:[#allocation8 + $0x2e8] sm:$0xff]  ;;  %v669_v57 = vld [vmem:[#allocation8 + $0x318] sm:$0xff]  ;;  %v678_v40 = vld [vmem:[#allocation8 + $0x360] sm:$0xff] }
 0x2df   :  { %2718 = vmatprep.subr.bf16.mxu0 %v2717_v60  ;;  %v665_v60 = vld [vmem:[#allocation8 + $0x2f8] sm:$0xff]  ;;  %v680_v43 = vld [vmem:[#allocation8 + $0x370] sm:$0xff] }
 0x2e0   :  { %v2737_v49 = vpack.c.bf16 %v665_v60, %v663_v47  ;;  %v681_v35 = vld [vmem:[#allocation8 + $0x378] sm:$0xff]  ;;  %v683_v47 = vld [vmem:[#allocation8 + $0x388] sm:$0xff] }
 0x2e1   :  { %v685_v60 = vld [vmem:[#allocation8 + $0x398] sm:$0xff] }
 0x2e2   :  { %2720 = vmatpush1.bf16.msra.mxu0 %v2719_v58  ;;  %v2739_v58 = vpack.c.bf16 %v664_v52, %v662_v2  ;;  %v682_v2 = vld [vmem:[#allocation8 + $0x380] sm:$0xff]  ;;  %v684_v52 = vld [vmem:[#allocation8 + $0x390] sm:$0xff] }
 0x2e3   :  { %2722 = vmatprep.subr.bf16.mxu0 %v2721_v59  ;;  %v2741_v59 = vpack.c.bf16 %v669_v57, %v667_v4  ;;  %v687_v4 = vld [vmem:[#allocation8 + $0x3a8] sm:$0xff]  ;;  %v689_v57 = vld [vmem:[#allocation8 + $0x3b8] sm:$0xff] }
 0x2e6   :  { %2724 = vmatpush1.bf16.msra.mxu0 %v2723_v17  ;;  %v2743_v17 = vpack.c.bf16 %v668_v16, %v666_v15  ;;  %v686_v15 = vld [vmem:[#allocation8 + $0x3a0] sm:$0xff]  ;;  %v688_v16 = vld [vmem:[#allocation8 + $0x3b0] sm:$0xff] }
 0x2e7   :  { %2726 = vmatprep.subr.bf16.mxu0 %v2725_v18  ;;  %v2745_v18 = vpack.c.bf16 %v673_v11, %v671_v10  ;;  %v691_v10 = vld [vmem:[#allocation8 + $0x3c8] sm:$0xff]  ;;  %v693_v11 = vld [vmem:[#allocation8 + $0x3d8] sm:$0xff] }
 0x2ea   :  { %2728 = vmatpush1.bf16.msra.mxu0 %v2727_v42  ;;  %v2747_v42 = vpack.c.bf16 %v672_v41, %v670_v3  ;;  %v690_v3 = vld [vmem:[#allocation8 + $0x3c0] sm:$0xff]  ;;  %v692_v41 = vld [vmem:[#allocation8 + $0x3d0] sm:$0xff] }
 0x2eb   :  { %2730 = vmatprep.subr.bf16.mxu0 %v2729_v27  ;;  %v2749_v27 = vpack.c.bf16 %v677_v24, %v675_v21  ;;  %v695_v21 = vld [vmem:[#allocation8 + $0x3e8] sm:$0xff]  ;;  %v697_v24 = vld [vmem:[#allocation8 + $0x3f8] sm:$0xff] }
 0x2ee   :  { %2732 = vmatpush1.bf16.msra.mxu0 %v2731_v36  ;;  %v2751_v36 = vpack.c.bf16 %v676_v29, %v674_v28  ;;  %v694_v28 = vld [vmem:[#allocation8 + $0x3e0] sm:$0xff]  ;;  %v696_v29 = vld [vmem:[#allocation8 + $0x3f0] sm:$0xff] }
 0x2ef   :  { %2734 = vmatprep.subr.bf16.mxu0 %v2733_v38  ;;  %v2753_v38 = vpack.c.bf16 %v681_v35, %v679_v30  ;;  %v699_v30 = vld [vmem:[#allocation8 + $0x408] sm:$0xff]  ;;  %v701_v35 = vld [vmem:[#allocation8 + $0x418] sm:$0xff] }
 0x2f2   :  { %2736 = vmatpush1.bf16.msra.mxu0 %v2735_v61  ;;  %v2755_v61 = vpack.c.bf16 %v680_v43, %v678_v40  ;;  %v2771_v40 = vpack.c.bf16 %v696_v29, %v694_v28  ;;  %v509_v43 = vld [vmem:[#allocation2 + $0x28] sm:$0xfe]  ;;  %v709_v28 = vld [vmem:[#allocation8 + $0x458] sm:$0xff] }
 0x2f3   :  { %2738 = vmatprep.subr.bf16.mxu0 %v2737_v49  ;;  %v2757_v49 = vpack.c.bf16 %v685_v60, %v683_v47  ;;  %v511_v47 = vld [vmem:[#allocation2 + $0x38] sm:$0x1]  ;;  %v2773_v60 = vpack.c.bf16 %v701_v35, %v699_v30 }
 0x2f6   :  { %2740 = vmatpush1.bf16.msra.mxu0 %v2739_v58  ;;  %v2759_v58 = vpack.c.bf16 %v684_v52, %v682_v2 }
 0x2f7   :  { %2742 = vmatprep.subr.bf16.mxu0 %v2741_v59  ;;  %v2761_v59 = vpack.c.bf16 %v689_v57, %v687_v4  ;;  %v703_v4 = vld [vmem:[#allocation8 + $0x428] sm:$0xff]  ;;  %v705_v57 = vld [vmem:[#allocation8 + $0x438] sm:$0xff] }
 0x2fa   :  { %2744 = vmatpush1.bf16.msra.mxu0 %v2743_v17  ;;  %v2763_v17 = vpack.c.bf16 %v688_v16, %v686_v15  ;;  %v508_v15 = vld [vmem:[#allocation2 + $0x20] sm:$0xfe]  ;;  %v510_v16 = vld [vmem:[#allocation2 + $0x30] sm:$0x1] }
 0x2fb   :  { %2746 = vmatprep.subr.bf16.mxu0 %v2745_v18  ;;  %v2765_v18 = vpack.c.bf16 %v693_v11, %v691_v10  ;;  %v538_v11 = vld [vmem:[#allocation2 + $0x8] sm:$0xfc] }
 0x2fc   :  { %v557_v30 = vrot.slane %v538_v11, 2  ;;  %v716_v11 = vld [vmem:[#allocation8 + $0x490] sm:$0xff] }
 0x2fe   :  { %2748 = vmatpush1.bf16.msra.mxu0 %v2747_v42  ;;  %v2767_v42 = vpack.c.bf16 %v692_v41, %v690_v3  ;;  %v702_v3 = vld [vmem:[#allocation8 + $0x420] sm:$0xff]  ;;  %v704_v41 = vld [vmem:[#allocation8 + $0x430] sm:$0xff] }
 0x2ff   :  { %2750 = vmatprep.subr.bf16.mxu0 %v2749_v27  ;;  %v2769_v27 = vpack.c.bf16 %v697_v24, %v695_v21  ;;  %v527_v24 = vrot.slane %v508_v15, 1 }
 0x302   :  { %2752 = vmatpush1.bf16.msra.mxu0 %v2751_v36  ;;  %v504_v36 = vld [vmem:[#allocation2] sm:$0xfe] }
 0x303   :  { %2754 = vmatprep.subr.bf16.mxu0 %v2753_v38  ;;  %v506_v38 = vld [vmem:[#allocation2 + $0x10] sm:$0x1]  ;;  %v521_v2 = vrot.slane %v504_v36, 1  ;;  %v2779_v36 = vpack.c.bf16 %v704_v41, %v702_v3 }
 0x304   :  { %v522_v52 = vrot.slane %v506_v38, 1 }
 0x306   :  { %2756 = vmatpush1.bf16.msra.mxu0 %v2755_v61  ;;  %v698_v61 = vld [vmem:[#allocation8 + $0x400] sm:$0xff]  ;;  %v523_v21 = vsel %vm520_vm4, %v521_v2, %v522_v52 }
 0x307   :  { %2758 = vmatprep.subr.bf16.mxu0 %v2757_v49  ;;  %v700_v49 = vld [vmem:[#allocation8 + $0x410] sm:$0xff] }
 0x308   :  { %v2775_v10 = vpack.c.bf16 %v700_v49, %v698_v61  ;;  %v713_v61 = vld [vmem:[#allocation8 + $0x478] sm:$0xff] }
 0x30a   :  { %2760 = vmatpush1.bf16.msra.mxu0 %v2759_v58  ;;  %v530_v58 = vrot.slane %v509_v43, 1  ;;  %v708_v43 = vld [vmem:[#allocation8 + $0x450] sm:$0xff] }
 0x30b   :  { %2762 = vmatprep.subr.bf16.mxu0 %v2761_v59  ;;  %v531_v59 = vrot.slane %v511_v47, 1 }
 0x30d   :  { %v532_v29 = vsel %vm520_vm4, %v530_v58, %v531_v59  ;;  %v715_v58 = vld [vmem:[#allocation8 + $0x488] sm:$0xff]  ;;  %v717_v59 = vld [vmem:[#allocation8 + $0x498] sm:$0xff] }
 0x30e   :  { %2764 = vmatpush1.bf16.msra.mxu0 %v2763_v17  ;;  %v540_v17 = vld [vmem:[#allocation2 + $0x18] sm:$0x3] }
 0x30f   :  { %2766 = vmatprep.subr.bf16.mxu0 %v2765_v18  ;;  %v2777_v18 = vpack.c.bf16 %v705_v57, %v703_v4  ;;  %v558_v35 = vrot.slane %v540_v17, 2  ;;  %v710_v4 = vld [vmem:[#allocation8 + $0x460] sm:$0xff]  ;;  %v712_v57 = vld [vmem:[#allocation8 + $0x470] sm:$0xff]  ;;  %v719_v17 = vld [vmem:[#allocation8 + $0x4a8] sm:$0xff] }
 0x310   :  { %v2787_v15 = vpack.c.bf16 %v712_v57, %v710_v4  ;;  %v730_v4 = vld [vmem:[#allocation8 + $0x500] sm:$0xff]  ;;  %v732_v57 = vld [vmem:[#allocation8 + $0x510] sm:$0xff] }
 0x311   :  { %v559_v49 = vsel %vm553_vm5, %v557_v30, %v558_v35  ;;  %v722_v30 = vld [vmem:[#allocation8 + $0x4c0] sm:$0xff]  ;;  %v724_v35 = vld [vmem:[#allocation8 + $0x4d0] sm:$0xff] }
 0x312   :  { %2768 = vmatpush1.bf16.msra.mxu0 %v2767_v42  ;;  %v528_v42 = vrot.slane %v510_v16, 1  ;;  %v2789_v16 = vpack.c.bf16 %v717_v59, %v715_v58  ;;  %v735_v58 = vld [vmem:[#allocation8 + $0x528] sm:$0xff]  ;;  %v737_v59 = vld [vmem:[#allocation8 + $0x538] sm:$0xff] }
 0x313   :  { %2770 = vmatprep.subr.bf16.mxu0 %v2769_v27  ;;  %v707_v27 = vld [vmem:[#allocation8 + $0x448] sm:$0xff] }
 0x314   :  { %v2781_v38 = vpack.c.bf16 %v709_v28, %v707_v27  ;;  %v529_v47 = vsel %vm520_vm4, %v527_v24, %v528_v42  ;;  %v720_v24 = vld [vmem:[#allocation8 + $0x4b0] sm:$0xff]  ;;  %v723_v42 = vld [vmem:[#allocation8 + $0x4c8] sm:$0xff]  ;;  %v725_v27 = vld [vmem:[#allocation8 + $0x4d8] sm:$0xff] }
 0x316   :  { %2772 = vmatpush1.bf16.msra.mxu0 %v2771_v40  ;;  %v706_v40 = vld [vmem:[#allocation8 + $0x440] sm:$0xff] }
 0x317   :  { %2774 = vmatprep.subr.bf16.mxu0 %v2773_v60  ;;  %v711_v60 = vld [vmem:[#allocation8 + $0x468] sm:$0xff]  ;;  %v2783_v2 = vpack.c.bf16 %v708_v43, %v706_v40  ;;  %v2799_v40 = vpack.c.bf16 %v724_v35, %v722_v30  ;;  %v742_v30 = vld [vmem:[#allocation8 + $0x560] sm:$0xff]  ;;  %v744_v35 = vld [vmem:[#allocation8 + $0x570] sm:$0xff] }
 0x318   :  { %v2785_v52 = vpack.c.bf16 %v713_v61, %v711_v60  ;;  %v728_v60 = vld [vmem:[#allocation8 + $0x4f0] sm:$0xff]  ;;  %v731_v61 = vld [vmem:[#allocation8 + $0x508] sm:$0xff] }
 0x319   :  { %916 = vmatmul.mubr.f32.vlgmr.msra.gmra.mrb[2].mxu0 %v523_v21  ;;  %v718_v21 = vld [vmem:[#allocation8 + $0x4a0] sm:$0xff] }
 0x31a   :  { %921 = vmatprep.mubr.f32.mxu0 %v532_v29  ;;  %2776 = vmatpush1.bf16.msra.mxu0 %v2775_v10  ;;  %v714_v10 = vld [vmem:[#allocation8 + $0x480] sm:$0xff]  ;;  %v2795_v28 = vpack.c.bf16 %v720_v24, %v718_v21  ;;  %v2797_v29 = vpack.c.bf16 %v725_v27, %v723_v42  ;;  %v740_v24 = vld [vmem:[#allocation8 + $0x550] sm:$0xff]  ;;  %v743_v42 = vld [vmem:[#allocation8 + $0x568] sm:$0xff] }
 0x31b   :  { %2778 = vmatprep.subr.bf16.mxu0 %v2777_v18  ;;  %v721_v18 = vld [vmem:[#allocation8 + $0x4b8] sm:$0xff]  ;;  %v2791_v3 = vpack.c.bf16 %v716_v11, %v714_v10  ;;  %v734_v10 = vld [vmem:[#allocation8 + $0x520] sm:$0xff]  ;;  %v736_v11 = vld [vmem:[#allocation8 + $0x530] sm:$0xff] }
 0x31c   :  { %v2793_v41 = vpack.c.bf16 %v721_v18, %v719_v17  ;;  %v739_v17 = vld [vmem:[#allocation8 + $0x548] sm:$0xff]  ;;  %v741_v18 = vld [vmem:[#allocation8 + $0x558] sm:$0xff]  ;;  %v738_v21 = vld [vmem:[#allocation8 + $0x540] sm:$0xff] }
 0x31d   :  { %922 = vmatmul.mubr.f32.gmra.mrb[4].mxu0 %v529_v47  ;;  %v726_v47 = vld [vmem:[#allocation8 + $0x4e0] sm:$0xff]  ;;  %v745_v27 = vld [vmem:[#allocation8 + $0x578] sm:$0xff] }
 0x31e   :  { %2780 = vmatpush1.bf16.msra.mxu0 %v2779_v36  ;;  %992 = vmatprep.mubr.f32.mxu0 %v559_v49  ;;  %v727_v36 = vld [vmem:[#allocation8 + $0x4e8] sm:$0xff]  ;;  %v733_v49 = vld [vmem:[#allocation8 + $0x518] sm:$0xff] }
 0x31f   :  { %2782 = vmatprep.subr.bf16.mxu0 %v2781_v38  ;;  %v729_v38 = vld [vmem:[#allocation8 + $0x4f8] sm:$0xff] }
 0x320   :  { %v2801_v43 = vpack.c.bf16 %v729_v38, %v727_v36  ;;  %v747_v36 = vld [vmem:[#allocation8 + $0x588] sm:$0xff]  ;;  %v749_v38 = vld [vmem:[#allocation8 + $0x598] sm:$0xff] }
 0x322   :  { %2784 = vmatpush1.bf16.msra.mxu0 %v2783_v2  ;;  %v2803_v2 = vpack.c.bf16 %v728_v60, %v726_v47  ;;  %v746_v47 = vld [vmem:[#allocation8 + $0x580] sm:$0xff]  ;;  %v748_v60 = vld [vmem:[#allocation8 + $0x590] sm:$0xff] }
 0x323   :  { %2786 = vmatprep.subr.bf16.mxu0 %v2785_v52  ;;  %v2805_v52 = vpack.c.bf16 %v733_v49, %v731_v61  ;;  %v751_v61 = vld [vmem:[#allocation8 + $0x5a8] sm:$0xff]  ;;  %v753_v49 = vld [vmem:[#allocation8 + $0x5b8] sm:$0xff] }
 0x326   :  { %2788 = vmatpush1.bf16.msra.mxu0 %v2787_v15  ;;  %v2807_v15 = vpack.c.bf16 %v732_v57, %v730_v4  ;;  %v750_v4 = vld [vmem:[#allocation8 + $0x5a0] sm:$0xff]  ;;  %v752_v57 = vld [vmem:[#allocation8 + $0x5b0] sm:$0xff] }
 0x327   :  { %2790 = vmatprep.subr.bf16.mxu0 %v2789_v16  ;;  %v2809_v16 = vpack.c.bf16 %v737_v59, %v735_v58  ;;  %v755_v58 = vld [vmem:[#allocation8 + $0x5c8] sm:$0xff]  ;;  %v757_v59 = vld [vmem:[#allocation8 + $0x5d8] sm:$0xff] }
 0x32a   :  { %2792 = vmatpush1.bf16.msra.mxu0 %v2791_v3  ;;  %v2811_v3 = vpack.c.bf16 %v736_v11, %v734_v10  ;;  %v754_v10 = vld [vmem:[#allocation8 + $0x5c0] sm:$0xff]  ;;  %v756_v11 = vld [vmem:[#allocation8 + $0x5d0] sm:$0xff] }
 0x32b   :  { %2794 = vmatprep.subr.bf16.mxu0 %v2793_v41  ;;  %v2813_v41 = vpack.c.bf16 %v741_v18, %v739_v17  ;;  %v759_v17 = vld [vmem:[#allocation8 + $0x5e8] sm:$0xff]  ;;  %v761_v18 = vld [vmem:[#allocation8 + $0x5f8] sm:$0xff] }
 0x32e   :  { %2796 = vmatpush1.bf16.msra.mxu0 %v2795_v28  ;;  %v2815_v28 = vpack.c.bf16 %v740_v24, %v738_v21  ;;  %v758_v21 = vld [vmem:[#allocation8 + $0x5e0] sm:$0xff]  ;;  %v760_v24 = vld [vmem:[#allocation8 + $0x5f0] sm:$0xff] }
 0x32f   :  { %2798 = vmatprep.subr.bf16.mxu0 %v2797_v29  ;;  %v2817_v29 = vpack.c.bf16 %v745_v27, %v743_v42  ;;  %v537_v42 = vld [vmem:[#allocation2] sm:$0xfc]  ;;  %v539_v27 = vld [vmem:[#allocation2 + $0x10] sm:$0x3] }
 0x332   :  { %2800 = vmatpush1.bf16.msra.mxu0 %v2799_v40  ;;  %v2819_v40 = vpack.c.bf16 %v744_v35, %v742_v30  ;;  %v544_v30 = vld [vmem:[#allocation2 + $0x38] sm:$0x3]  ;;  %v554_v35 = vrot.slane %v537_v42, 2 }
 0x333   :  { %2802 = vmatprep.subr.bf16.mxu0 %v2801_v43  ;;  %v2821_v43 = vpack.c.bf16 %v749_v38, %v747_v36  ;;  %v555_v36 = vrot.slane %v539_v27, 2 }
 0x336   :  { %2804 = vmatpush1.bf16.msra.mxu0 %v2803_v2  ;;  %v2823_v2 = vpack.c.bf16 %v748_v60, %v746_v47  ;;  %v543_v47 = vld [vmem:[#allocation2 + $0x30] sm:$0x3]  ;;  %v556_v60 = vsel %vm553_vm5, %v554_v35, %v555_v36 }
 0x337   :  { %2806 = vmatprep.subr.bf16.mxu0 %v2805_v52  ;;  %v2825_v52 = vpack.c.bf16 %v753_v49, %v751_v61  ;;  %v561_v49 = vrot.slane %v543_v47, 2 }
 0x33a   :  { %2808 = vmatpush1.bf16.msra.mxu0 %v2807_v15  ;;  %v2827_v15 = vpack.c.bf16 %v752_v57, %v750_v4  ;;  %v762_v4 = vld [vmem:[#allocation9] sm:$0x3] }
 0x33b   :  { %2810 = vmatprep.subr.bf16.mxu0 %v2809_v16  ;;  %v2829_v16 = vpack.c.bf16 %v757_v59, %v755_v58  ;;  %v767_v58 = vrot.slane %v762_v4, %v4198_v51 }
 0x33e   :  { %2812 = vmatpush1.bf16.msra.mxu0 %v2811_v3  ;;  %v2831_v3 = vpack.c.bf16 %v756_v11, %v754_v10 }
 0x33f   :  { %2814 = vmatprep.subr.bf16.mxu0 %v2813_v41  ;;  %v2833_v41 = vpack.c.bf16 %v761_v18, %v759_v17 }
 0x342   :  { %2816 = vmatpush1.bf16.msra.mxu0 %v2815_v28  ;;  %v2835_v28 = vpack.c.bf16 %v760_v24, %v758_v21 }
 0x343   :  { %2818 = vmatprep.subr.bf16.mxu0 %v2817_v29  ;;  %v542_v29 = vld [vmem:[#allocation2 + $0x28] sm:$0xfc] }
 0x344   :  { %v563_v38 = vrot.slane %v542_v29, 2 }
 0x346   :  { %2820 = vmatpush1.bf16.msra.mxu0 %v2819_v40  ;;  %v564_v40 = vrot.slane %v544_v30, 2 }
 0x347   :  { %2822 = vmatprep.subr.bf16.mxu0 %v2821_v43  ;;  %v541_v43 = vld [vmem:[#allocation2 + $0x20] sm:$0xfc] }
 0x348   :  { %v560_v61 = vrot.slane %v541_v43, 2 }
 0x34a   :  { %2824 = vmatpush1.bf16.msra.mxu0 %v2823_v2  ;;  %v565_v2 = vsel %vm553_vm5, %v563_v38, %v564_v40 }
 0x34b   :  { %2826 = vmatprep.subr.bf16.mxu0 %v2825_v52  ;;  %v562_v52 = vsel %vm553_vm5, %v560_v61, %v561_v49  ;;  %v1380_v49 = vld [vmem:[#allocation14 + $0x158] sm:$0xff] }
 0x34e   :  { %2828 = vmatpush1.bf16.msra.mxu0 %v2827_v15  ;;  %v771_v15 = vrot.slane %v762_v4, %v4255_v5  ;;  %v1379_v4 = vld [vmem:[#allocation14 + $0x150] sm:$0xff] }
 0x34f   :  { %2830 = vmatprep.subr.bf16.mxu0 %v2829_v16 }
 0x352   :  { %2832 = vmatpush1.bf16.msra.mxu0 %v2831_v3 }
 0x353   :  { %2834 = vmatprep.subr.bf16.mxu0 %v2833_v41 }
 0x356   :  { %2836 = vmatpush1.bf16.msra.mxu0 %v2835_v28 }
 0x359   :  { %993 = vmatmul.mubr.f32.vlgmr.msra.gmra.mrb[2].mxu0 %v556_v60  ;;  %v1375_v60 = vld [vmem:[#allocation14 + $0x130] sm:$0xff] }
 0x35a   :  { %998 = vmatprep.mubr.f32.mxu0 %v565_v2  ;;  %v1384_v2 = vld [vmem:[#allocation14 + $0x178] sm:$0xff] }
 0x35d   :  { %999 = vmatmul.mubr.f32.gmra.mrb[4].mxu0 %v562_v52  ;;  %v3241_v52 = vpack.c.bf16 %v1384_v2, %v1380_v49  ;;  %v1369_v2 = vld [vmem:[#allocation14 + $0x100] sm:$0xff] }
 0x42c   :  { %v994_v57 = vpop.f32.mrb[2].mxu0 }
 0x42d   :  { %v996_v59 = vpop.f32.mrb[3].mxu0  ;;  %v4277_v10 = vadd.f32 %v994_v57, %v767_v58  ;;  %v1383_v57 = vld [vmem:[#allocation14 + $0x170] sm:$0xff] }
 0x42e   :  { %v4281_v18 = vadd.f32 %v996_v59, %v771_v15  ;;  %v1388_v59 = vld [vmem:[#allocation14 + $0x198] sm:$0xff] }
 0x430   :  { %v1000_v16 = vpop.f32.mrb[4].mxu0 }
 0x431   :  { %v4279_v11 = vadd.f32 %v1000_v16, %v767_v58  ;;  %v1002_v17 = vpop.f32.mrb[5].mxu0  ;;  %v3243_v58 = vpack.c.bf16 %v1383_v57, %v1379_v4  ;;  %v1378_v4 = vld [vmem:[#allocation14 + $0x148] sm:$0xff] }
 0x432   :  { %v4283_v3 = vadd.f32 %v1002_v17, %v771_v15  ;;  %v1392_v15 = vld [vmem:[#allocation14 + $0x1b8] sm:$0xff]  ;;  %v1387_v17 = vld [vmem:[#allocation14 + $0x190] sm:$0xff]  ;;  %v1382_v57 = vld [vmem:[#allocation14 + $0x168] sm:$0xff] }
 0x433   :  { %v1007_v41 = vadd.f32 %v4279_v11, %v4277_v10  ;;  %v3245_v16 = vpack.c.bf16 %v1392_v15, %v1388_v59  ;;  %v2985_v59 = vpack.c.bf16 %v1382_v57, %v1378_v4  ;;  %v1377_v15 = vld [vmem:[#allocation14 + $0x140] sm:$0xff]  ;;  %v1419_v57 = vld [vmem:[#allocation14 + $0x290] sm:$0xff] }
 0x434   :  { %v1014_v21 = vadd.f32 %v4283_v3, %v4281_v18 }
 0x435   :  { %v1008_v24 = vrot.slane %v1007_v41, 4 }
 0x436   :  { %v1015_v42 = vrot.slane %v1014_v21, 4 }
 0x437   :  { %v1009_v27 = vadd.f32 %v1008_v24, %v1007_v41  ;;  %v1391_v41 = vld [vmem:[#allocation14 + $0x1b0] sm:$0xff] }
 0x438   :  { %v1016_v28 = vadd.f32 %v1015_v42, %v1014_v21  ;;  %v3247_v21 = vpack.c.bf16 %v1391_v41, %v1387_v17  ;;  %v1386_v17 = vld [vmem:[#allocation14 + $0x188] sm:$0xff] }
 0x439   :  { %v1010_v29 = vrot.slane %v1009_v27, 2  ;;  %v1390_v41 = vld [vmem:[#allocation14 + $0x1a8] sm:$0xff] }
 0x43a   :  { %v1017_v30 = vrot.slane %v1016_v28, 2 }
 0x43b   :  { %v1011_v35 = vadd.f32 %v1010_v29, %v1009_v27 }
 0x43c   :  { %v1018_v36 = vadd.f32 %v1017_v30, %v1016_v28 }
 0x43d   :  { %v1012_v38 = vrot.slane %v1011_v35, 1 }
 0x43e   :  { %v1019_v40 = vrot.slane %v1018_v36, 1 }
 0x43f   :  { %v1013_v47 = vadd.f32 %v1012_v38, %v1011_v35 }
 0x440   :  { %v1020_v43 = vadd.f32 %v1019_v40, %v1018_v36 }
 0x442   :  { %1085 = vmatprep.mubr.f32.mxu1 %v1020_v43 }
 0x443   :  { %1086 = vmatmul.mubr.f32.vlgmr.msra.gmra.mrb[2].mxu1 %v1013_v47 }
 0x444   :  { %2904 = vmatpush1.bf16.msra.mxu1 %v4056_v7  ;;  %v1338_v7 = vld [vmem:[#allocation14 + $0x8] sm:$0xff] }
 0x445   :  { %2906 = vmatprep.subr.bf16.mxu1 %v4058_v8  ;;  %v1342_v8 = vld [vmem:[#allocation14 + $0x28] sm:$0xff] }
 0x448   :  { %2908 = vmatpush1.bf16.msra.mxu1 %v4063_v13  ;;  %v1340_v13 = vld [vmem:[#allocation14 + $0x18] sm:$0xff] }
 0x449   :  { %2910 = vmatprep.subr.bf16.mxu1 %v4067_v14  ;;  %v2965_v14 = vpack.c.bf16 %v1342_v8, %v1338_v7 }
 0x44c   :  { %2912 = vmatpush1.bf16.msra.mxu1 %v4071_v19  ;;  %v1344_v19 = vld [vmem:[#allocation14 + $0x38] sm:$0xff] }
 0x44d   :  { %2914 = vmatprep.subr.bf16.mxu1 %v4075_v20  ;;  %v3221_v20 = vpack.c.bf16 %v1344_v19, %v1340_v13 }
 0x44f   :  { %3222 = vmatprep.subr.bf16.mxu0 %v3221_v20 }
 0x450   :  { %2916 = vmatpush1.bf16.msra.mxu1 %v4079_v25  ;;  %v1339_v25 = vld [vmem:[#allocation14 + $0x10] sm:$0xff] }
 0x451   :  { %2918 = vmatprep.subr.bf16.mxu1 %v4083_v26  ;;  %v1343_v26 = vld [vmem:[#allocation14 + $0x30] sm:$0xff] }
 0x454   :  { %2920 = vmatpush1.bf16.msra.mxu1 %v4087_v31  ;;  %v3223_v31 = vpack.c.bf16 %v1343_v26, %v1339_v25  ;;  %v1337_v26 = vld [vmem:[#allocation14] sm:$0xff] }
 0x455   :  { %2922 = vmatprep.subr.bf16.mxu1 %v4091_v32  ;;  %v1348_v32 = vld [vmem:[#allocation14 + $0x58] sm:$0xff] }
 0x456   :  { %3224 = vmatpush1.bf16.msra.mxu0 %v3223_v31  ;;  %v1341_v31 = vld [vmem:[#allocation14 + $0x20] sm:$0xff] }
 0x458   :  { %2924 = vmatpush1.bf16.msra.mxu1 %v4095_v37  ;;  %v1352_v37 = vld [vmem:[#allocation14 + $0x78] sm:$0xff] }
 0x459   :  { %2926 = vmatprep.subr.bf16.mxu1 %v4099_v39  ;;  %v3225_v39 = vpack.c.bf16 %v1352_v37, %v1348_v32  ;;  %v1346_v37 = vld [vmem:[#allocation14 + $0x48] sm:$0xff] }
 0x45b   :  { %3226 = vmatprep.subr.bf16.mxu0 %v3225_v39  ;;  %v1350_v39 = vld [vmem:[#allocation14 + $0x68] sm:$0xff] }
 0x45c   :  { %2928 = vmatpush1.bf16.msra.mxu1 %v4109_v46  ;;  %v1347_v46 = vld [vmem:[#allocation14 + $0x50] sm:$0xff] }
 0x45d   :  { %2930 = vmatprep.subr.bf16.mxu1 %v4113_v48  ;;  %v1351_v48 = vld [vmem:[#allocation14 + $0x70] sm:$0xff] }
 0x460   :  { %2932 = vmatpush1.bf16.msra.mxu1 %v4117_v54  ;;  %v3227_v54 = vpack.c.bf16 %v1351_v48, %v1347_v46  ;;  %v2967_v48 = vpack.c.bf16 %v1341_v31, %v1337_v26  ;;  %v1408_v31 = vld [vmem:[#allocation14 + $0x238] sm:$0xff] }
 0x461   :  { %2934 = vmatprep.subr.bf16.mxu1 %v4121_v56  ;;  %v1356_v56 = vld [vmem:[#allocation14 + $0x98] sm:$0xff] }
 0x462   :  { %3228 = vmatpush1.bf16.msra.mxu0 %v3227_v54 }
 0x464   :  { %2936 = vmatpush1.bf16.msra.mxu1 %v4125_v62  ;;  %v1360_v62 = vld [vmem:[#allocation14 + $0xb8] sm:$0xff] }
 0x465   :  { %2938 = vmatprep.subr.bf16.mxu1 %v4129_v0  ;;  %v3229_v0 = vpack.c.bf16 %v1360_v62, %v1356_v56  ;;  %v2969_v56 = vpack.c.bf16 %v1350_v39, %v1346_v37  ;;  %v1345_v62 = vld [vmem:[#allocation14 + $0x40] sm:$0xff] }
 0x466   :  { %v1405_v37 = vld [vmem:[#allocation14 + $0x220] sm:$0xff] }
 0x467   :  { %3230 = vmatprep.subr.bf16.mxu0 %v3229_v0  ;;  %v1349_v0 = vld [vmem:[#allocation14 + $0x60] sm:$0xff] }
 0x468   :  { %2940 = vmatpush1.bf16.msra.mxu1 %v4133_v9  ;;  %v1355_v9 = vld [vmem:[#allocation14 + $0x90] sm:$0xff] }
 0x469   :  { %2942 = vmatprep.subr.bf16.mxu1 %v4140_v12  ;;  %v1359_v12 = vld [vmem:[#allocation14 + $0xb0] sm:$0xff] }
 0x46c   :  { %2944 = vmatpush1.bf16.msra.mxu1 %v4147_v22  ;;  %v3231_v22 = vpack.c.bf16 %v1359_v12, %v1355_v9  ;;  %v1354_v9 = vld [vmem:[#allocation14 + $0x88] sm:$0xff] }
 0x46d   :  { %2946 = vmatprep.subr.bf16.mxu1 %v4150_v23  ;;  %v1364_v23 = vld [vmem:[#allocation14 + $0xd8] sm:$0xff]  ;;  %v1358_v12 = vld [vmem:[#allocation14 + $0xa8] sm:$0xff] }
 0x46e   :  { %3232 = vmatpush1.bf16.msra.mxu0 %v3231_v22  ;;  %v2971_v22 = vpack.c.bf16 %v1349_v0, %v1345_v62  ;;  %v1410_v62 = vld [vmem:[#allocation14 + $0x248] sm:$0xff] }
 0x46f   :  { %v1414_v0 = vld [vmem:[#allocation14 + $0x268] sm:$0xff] }
 0x470   :  { %2948 = vmatpush1.bf16.msra.mxu1 %v4155_v33  ;;  %v1368_v33 = vld [vmem:[#allocation14 + $0xf8] sm:$0xff] }
 0x471   :  { %2950 = vmatprep.subr.bf16.mxu1 %v4158_v34  ;;  %v3233_v34 = vpack.c.bf16 %v1368_v33, %v1364_v23  ;;  %v2973_v23 = vpack.c.bf16 %v1358_v12, %v1354_v9  ;;  %v1353_v33 = vld [vmem:[#allocation14 + $0x80] sm:$0xff]  ;;  %v1412_v9 = vld [vmem:[#allocation14 + $0x258] sm:$0xff]  ;;  %v3001_v12 = vpack.c.bf16 %v1414_v0, %v1410_v62  ;;  %v1443_v62 = vld [vmem:[#allocation14 + $0x350] sm:$0xff] }
 0x472   :  { %v1447_v0 = vld [vmem:[#allocation14 + $0x370] sm:$0xff] }
 0x473   :  { %3234 = vmatprep.subr.bf16.mxu0 %v3233_v34  ;;  %v1357_v34 = vld [vmem:[#allocation14 + $0xa0] sm:$0xff] }
 0x474   :  { %2952 = vmatpush1.bf16.msra.mxu1 %v4163_v44  ;;  %v1363_v44 = vld [vmem:[#allocation14 + $0xd0] sm:$0xff] }
 0x475   :  { %2954 = vmatprep.subr.bf16.mxu1 %v4166_v45  ;;  %v1367_v45 = vld [vmem:[#allocation14 + $0xf0] sm:$0xff] }
 0x478   :  { %2956 = vmatpush1.bf16.msra.mxu1 %v4171_v53  ;;  %v3235_v53 = vpack.c.bf16 %v1367_v45, %v1363_v44  ;;  %v1362_v44 = vld [vmem:[#allocation14 + $0xc8] sm:$0xff] }
 0x479   :  { %2958 = vmatprep.subr.bf16.mxu1 %v4174_v55  ;;  %v1372_v55 = vld [vmem:[#allocation14 + $0x118] sm:$0xff]  ;;  %v1366_v45 = vld [vmem:[#allocation14 + $0xe8] sm:$0xff] }
 0x47a   :  { %3236 = vmatpush1.bf16.msra.mxu0 %v3235_v53  ;;  %v2975_v53 = vpack.c.bf16 %v1357_v34, %v1353_v33  ;;  %v1413_v33 = vld [vmem:[#allocation14 + $0x260] sm:$0xff] }
 0x47c   :  { %2960 = vmatpush1.bf16.msra.mxu1 %v4179_v63  ;;  %v1376_v63 = vld [vmem:[#allocation14 + $0x138] sm:$0xff] }
 0x47d   :  { %2962 = vmatprep.subr.bf16.mxu1 %v4182_v1  ;;  %v3237_v1 = vpack.c.bf16 %v1376_v63, %v1372_v55  ;;  %v2977_v55 = vpack.c.bf16 %v1366_v45, %v1362_v44  ;;  %v1361_v63 = vld [vmem:[#allocation14 + $0xc0] sm:$0xff]  ;;  %v1411_v45 = vld [vmem:[#allocation14 + $0x250] sm:$0xff] }
 0x47f   :  { %3238 = vmatprep.subr.bf16.mxu0 %v3237_v1  ;;  %v1365_v1 = vld [vmem:[#allocation14 + $0xe0] sm:$0xff] }
 0x480   :  { %2964 = vmatpush1.bf16.msra.mxu1 %v4187_v6  ;;  %v1371_v6 = vld [vmem:[#allocation14 + $0x110] sm:$0xff] }
 0x481   :  { %2966 = vmatprep.subr.bf16.mxu1 %v2965_v14  ;;  %v3239_v61 = vpack.c.bf16 %v1375_v60, %v1371_v6  ;;  %v1370_v6 = vld [vmem:[#allocation14 + $0x108] sm:$0xff] }
 0x482   :  { %v1374_v60 = vld [vmem:[#allocation14 + $0x128] sm:$0xff] }
 0x483   :  { %3240 = vmatpush1.bf16.msra.mxu0 %v3239_v61  ;;  %v2979_v61 = vpack.c.bf16 %v1365_v1, %v1361_v63  ;;  %v2981_v49 = vpack.c.bf16 %v1374_v60, %v1370_v6  ;;  %v1418_v63 = vld [vmem:[#allocation14 + $0x288] sm:$0xff]  ;;  %v1420_v6 = vld [vmem:[#allocation14 + $0x298] sm:$0xff] }
 0x484   :  { %3242 = vmatprep.subr.bf16.mxu0 %v3241_v52  ;;  %v1373_v52 = vld [vmem:[#allocation14 + $0x120] sm:$0xff]  ;;  %v1422_v1 = vld [vmem:[#allocation14 + $0x2a8] sm:$0xff] }
 0x485   :  { %v3005_v60 = vpack.c.bf16 %v1422_v1, %v1418_v63  ;;  %v1455_v1 = vld [vmem:[#allocation14 + $0x3b0] sm:$0xff] }
 0x487   :  { %3244 = vmatpush1.bf16.msra.mxu0 %v3243_v58  ;;  %v2983_v58 = vpack.c.bf16 %v1373_v52, %v1369_v2  ;;  %v1421_v2 = vld [vmem:[#allocation14 + $0x2a0] sm:$0xff] }
 0x488   :  { %3246 = vmatprep.subr.bf16.mxu0 %v3245_v16  ;;  %v1381_v16 = vld [vmem:[#allocation14 + $0x160] sm:$0xff] }
 0x48b   :  { %3248 = vmatpush1.bf16.msra.mxu0 %v3247_v21  ;;  %v2987_v21 = vpack.c.bf16 %v1381_v16, %v1377_v15  ;;  %v1426_v15 = vld [vmem:[#allocation14 + $0x2c8] sm:$0xff] }
 0x48c   :  { %v1430_v16 = vld [vmem:[#allocation14 + $0x2e8] sm:$0xff] }
 0x516   :  { %v1087_v24 = vpop.f32.mrb[2].mxu1 }
 0x517   :  { %v1095_v42 = vrot.slane %v1087_v24, %v4198_v51  ;;  %v1089_v27 = vpop.f32.mrb[3].mxu1  ;;  %v2989_v24 = vpack.c.bf16 %v1390_v41, %v1386_v17  ;;  %v1428_v17 = vld [vmem:[#allocation14 + $0x2d8] sm:$0xff]  ;;  %v3009_v41 = vpack.c.bf16 %v1430_v16, %v1426_v15  ;;  %v1463_v15 = vld [vmem:[#allocation14 + $0x3f0] sm:$0xff] }
 0x518   :  { %v1099_v28 = vrot.slane %v1089_v27, %v4198_v51  ;;  %v1389_v27 = vld [vmem:[#allocation14 + $0x1a0] sm:$0xff] }
 0x519   :  { %v4323_v29 = vsub.f32 %v4277_v10, %v1095_v42  ;;  %v4326_v30 = vsub.f32 %v4279_v11, %v1095_v42  ;;  %v1385_v42 = vld [vmem:[#allocation14 + $0x180] sm:$0xff] }
 0x51a   :  { %v4329_v35 = vsub.f32 %v4281_v18, %v1099_v28  ;;  %v4332_v36 = vsub.f32 %v4283_v3, %v1099_v28  ;;  %v2991_v28 = vpack.c.bf16 %v1389_v27, %v1385_v42  ;;  %v1429_v42 = vld [vmem:[#allocation14 + $0x2e0] sm:$0xff] }
 0x51b   :  { %v1104_v38 = vmul.f32 %v4323_v29, %v4323_v29  ;;  %v1106_v40 = vmul.f32 %v4326_v30, %v4326_v30 }
 0x51c   :  { %v1105_v43 = vmul.f32 %v4329_v35, %v4329_v35  ;;  %v1107_v10 = vmul.f32 %v4332_v36, %v4332_v36 }
 0x51d   :  { %v1108_v11 = vadd.f32 %v1106_v40, %v1104_v38  ;;  %v1394_v38 = vld [vmem:[#allocation14 + $0x1c8] sm:$0xff] }
 0x51e   :  { %v1115_v47 = vadd.f32 %v1107_v10, %v1105_v43  ;;  %v1398_v40 = vld [vmem:[#allocation14 + $0x1e8] sm:$0xff]  ;;  %v1396_v43 = vld [vmem:[#allocation14 + $0x1d8] sm:$0xff] }
 0x51f   :  { %v1109_v7 = vrot.slane %v1108_v11, 4  ;;  %v2993_v10 = vpack.c.bf16 %v1398_v40, %v1394_v38  ;;  %v1427_v38 = vld [vmem:[#allocation14 + $0x2d0] sm:$0xff] }
 0x520   :  { %v1116_v18 = vrot.slane %v1115_v47, 4  ;;  %v1431_v40 = vld [vmem:[#allocation14 + $0x2f0] sm:$0xff] }
 0x521   :  { %v1110_v8 = vadd.f32 %v1109_v7, %v1108_v11  ;;  %v1400_v11 = vld [vmem:[#allocation14 + $0x1f8] sm:$0xff]  ;;  %v1397_v7 = vld [vmem:[#allocation14 + $0x1e0] sm:$0xff] }
 0x522   :  { %v1117_v13 = vadd.f32 %v1116_v18, %v1115_v47  ;;  %v1393_v47 = vld [vmem:[#allocation14 + $0x1c0] sm:$0xff]  ;;  %v3249_v18 = vpack.c.bf16 %v1400_v11, %v1396_v43  ;;  %v3267_v43 = vpack.c.bf16 %v1431_v40, %v1427_v38  ;;  %v1438_v11 = vld [vmem:[#allocation14 + $0x328] sm:$0xff] }
 0x523   :  { %v1111_v3 = vrot.slane %v1110_v8, 2 }
 0x524   :  { %v1118_v14 = vrot.slane %v1117_v13, 2  ;;  %3250 = vmatprep.subr.bf16.mxu0 %v3249_v18  ;;  %v1440_v18 = vld [vmem:[#allocation14 + $0x338] sm:$0xff] }
 0x525   :  { %v1112_v19 = vadd.f32 %v1111_v3, %v1110_v8  ;;  %v2995_v8 = vpack.c.bf16 %v1397_v7, %v1393_v47  ;;  %v1399_v3 = vld [vmem:[#allocation14 + $0x1f0] sm:$0xff]  ;;  %v1436_v47 = vld [vmem:[#allocation14 + $0x318] sm:$0xff] }
 0x526   :  { %v1119_v20 = vadd.f32 %v1118_v14, %v1117_v13  ;;  %v1395_v13 = vld [vmem:[#allocation14 + $0x1d0] sm:$0xff] }
 0x527   :  { %v1113_v25 = vrot.slane %v1112_v19, 1  ;;  %v3251_v14 = vpack.c.bf16 %v1399_v3, %v1395_v13  ;;  %v1437_v13 = vld [vmem:[#allocation14 + $0x320] sm:$0xff]  ;;  %v3269_v3 = vpack.c.bf16 %v1440_v18, %v1436_v47 }
 0x528   :  { %v1120_v32 = vrot.slane %v1119_v20, 1 }
 0x529   :  { %v1114_v54 = vadd.f32 %v1113_v25, %v1112_v19  ;;  %v1402_v19 = vld [vmem:[#allocation14 + $0x208] sm:$0xff]  ;;  %v1404_v25 = vld [vmem:[#allocation14 + $0x218] sm:$0xff]  ;;  %3252 = vmatpush1.bf16.msra.mxu0 %v3251_v14 }
 0x52a   :  { %v1121_v46 = vadd.f32 %v1120_v32, %v1119_v20  ;;  %v1406_v20 = vld [vmem:[#allocation14 + $0x228] sm:$0xff]  ;;  %v1401_v32 = vld [vmem:[#allocation14 + $0x200] sm:$0xff]  ;;  %v3253_v39 = vpack.c.bf16 %v1408_v31, %v1404_v25 }
 0x52b   :  { %v2997_v26 = vpack.c.bf16 %v1406_v20, %v1402_v19  ;;  %v1435_v19 = vld [vmem:[#allocation14 + $0x310] sm:$0xff]  ;;  %v1446_v31 = vld [vmem:[#allocation14 + $0x368] sm:$0xff] }
 0x52c   :  { %1186 = vmatprep.mubr.f32.mxu1 %v1121_v46  ;;  %v2999_v46 = vpack.c.bf16 %v1405_v37, %v1401_v32  ;;  %3254 = vmatprep.subr.bf16.mxu0 %v3253_v39  ;;  %v1439_v20 = vld [vmem:[#allocation14 + $0x330] sm:$0xff]  ;;  %v1444_v32 = vld [vmem:[#allocation14 + $0x358] sm:$0xff] }
 0x52d   :  { %1187 = vmatmul.mubr.f32.vlgmr.msra.gmra.mrb[4].mxu1 %v1114_v54  ;;  %v1407_v54 = vld [vmem:[#allocation14 + $0x230] sm:$0xff]  ;;  %v3271_v25 = vpack.c.bf16 %v1439_v20, %v1435_v19  ;;  %v1448_v39 = vld [vmem:[#allocation14 + $0x378] sm:$0xff] }
 0x52e   :  { %2968 = vmatpush1.bf16.msra.mxu1 %v2967_v48  ;;  %v1403_v48 = vld [vmem:[#allocation14 + $0x210] sm:$0xff] }
 0x52f   :  { %2970 = vmatprep.subr.bf16.mxu1 %v2969_v56  ;;  %v3255_v56 = vpack.c.bf16 %v1407_v54, %v1403_v48  ;;  %v1445_v48 = vld [vmem:[#allocation14 + $0x360] sm:$0xff]  ;;  %v3273_v54 = vpack.c.bf16 %v1448_v39, %v1444_v32 }
 0x531   :  { %3256 = vmatpush1.bf16.msra.mxu0 %v3255_v56 }
 0x532   :  { %2972 = vmatpush1.bf16.msra.mxu1 %v2971_v22  ;;  %v1416_v22 = vld [vmem:[#allocation14 + $0x278] sm:$0xff] }
 0x533   :  { %2974 = vmatprep.subr.bf16.mxu1 %v2973_v23  ;;  %v1409_v23 = vld [vmem:[#allocation14 + $0x240] sm:$0xff]  ;;  %v3257_v34 = vpack.c.bf16 %v1416_v22, %v1412_v9  ;;  %v1450_v9 = vld [vmem:[#allocation14 + $0x388] sm:$0xff] }
 0x534   :  { %v3003_v44 = vpack.c.bf16 %v1413_v33, %v1409_v23  ;;  %v1454_v22 = vld [vmem:[#allocation14 + $0x3a8] sm:$0xff]  ;;  %v1452_v23 = vld [vmem:[#allocation14 + $0x398] sm:$0xff] }
 0x535   :  { %3258 = vmatprep.subr.bf16.mxu0 %v3257_v34  ;;  %v1456_v33 = vld [vmem:[#allocation14 + $0x3b8] sm:$0xff]  ;;  %v3021_v34 = vpack.c.bf16 %v1454_v22, %v1450_v9 }
 0x536   :  { %2976 = vmatpush1.bf16.msra.mxu1 %v2975_v53  ;;  %v1415_v53 = vld [vmem:[#allocation14 + $0x270] sm:$0xff] }
 0x537   :  { %2978 = vmatprep.subr.bf16.mxu1 %v2977_v55  ;;  %v3259_v55 = vpack.c.bf16 %v1415_v53, %v1411_v45  ;;  %v1449_v45 = vld [vmem:[#allocation14 + $0x380] sm:$0xff] }
 0x538   :  { %v1453_v53 = vld [vmem:[#allocation14 + $0x3a0] sm:$0xff] }
 0x539   :  { %3260 = vmatpush1.bf16.msra.mxu0 %v3259_v55  ;;  %v1451_v55 = vld [vmem:[#allocation14 + $0x390] sm:$0xff]  ;;  %v3023_v63 = vpack.c.bf16 %v1453_v53, %v1449_v45  ;;  %v1465_v53 = vld [vmem:[#allocation14 + $0x400] sm:$0xff] }
 0x53a   :  { %2980 = vmatpush1.bf16.msra.mxu1 %v2979_v61  ;;  %v1424_v61 = vld [vmem:[#allocation14 + $0x2b8] sm:$0xff] }
 0x53b   :  { %2982 = vmatprep.subr.bf16.mxu1 %v2981_v49  ;;  %v1417_v49 = vld [vmem:[#allocation14 + $0x280] sm:$0xff]  ;;  %v3261_v52 = vpack.c.bf16 %v1424_v61, %v1420_v6  ;;  %v1458_v6 = vld [vmem:[#allocation14 + $0x3c8] sm:$0xff]  ;;  %v3279_v61 = vpack.c.bf16 %v1455_v1, %v1451_v55  ;;  %v1471_v1 = vld [vmem:[#allocation14 + $0x430] sm:$0xff] }
 0x53c   :  { %v3007_v4 = vpack.c.bf16 %v1421_v2, %v1417_v49  ;;  %v1460_v2 = vld [vmem:[#allocation14 + $0x3d8] sm:$0xff]  ;;  %v1469_v55 = vld [vmem:[#allocation14 + $0x420] sm:$0xff] }
 0x53d   :  { %3262 = vmatprep.subr.bf16.mxu0 %v3261_v52  ;;  %v1464_v52 = vld [vmem:[#allocation14 + $0x3f8] sm:$0xff] }
 0x53e   :  { %2984 = vmatpush1.bf16.msra.mxu1 %v2983_v58  ;;  %v1423_v58 = vld [vmem:[#allocation14 + $0x2b0] sm:$0xff] }
 0x53f   :  { %2986 = vmatprep.subr.bf16.mxu1 %v2985_v59  ;;  %v3263_v59 = vpack.c.bf16 %v1423_v58, %v1419_v57  ;;  %v3281_v57 = vpack.c.bf16 %v1464_v52, %v1460_v2  ;;  %v1461_v58 = vld [vmem:[#allocation14 + $0x3e0] sm:$0xff]  ;;  %v3031_v52 = vpack.c.bf16 %v1469_v55, %v1465_v53  ;;  %v1506_v53 = vld [vmem:[#allocation14 + $0x548] sm:$0xff] }
 0x540   :  { %v1473_v2 = vld [vmem:[#allocation14 + $0x440] sm:$0xff]  ;;  %v1510_v55 = vld [vmem:[#allocation14 + $0x568] sm:$0xff] }
 0x541   :  { %3264 = vmatpush1.bf16.msra.mxu0 %v3263_v59  ;;  %v1459_v59 = vld [vmem:[#allocation14 + $0x3d0] sm:$0xff] }
 0x542   :  { %2988 = vmatpush1.bf16.msra.mxu1 %v2987_v21  ;;  %v1432_v21 = vld [vmem:[#allocation14 + $0x2f8] sm:$0xff] }
 0x543   :  { %2990 = vmatprep.subr.bf16.mxu1 %v2989_v24  ;;  %v1425_v24 = vld [vmem:[#allocation14 + $0x2c0] sm:$0xff]  ;;  %v3265_v27 = vpack.c.bf16 %v1432_v21, %v1428_v17  ;;  %v1466_v17 = vld [vmem:[#allocation14 + $0x408] sm:$0xff]  ;;  %v1468_v21 = vld [vmem:[#allocation14 + $0x418] sm:$0xff] }
 0x545   :  { %3266 = vmatprep.subr.bf16.mxu0 %v3265_v27  ;;  %v1472_v27 = vld [vmem:[#allocation14 + $0x438] sm:$0xff] }
 0x546   :  { %2992 = vmatpush1.bf16.msra.mxu1 %v2991_v28  ;;  %v3011_v28 = vpack.c.bf16 %v1429_v42, %v1425_v24  ;;  %3268 = vmatpush1.bf16.msra.mxu0 %v3267_v43  ;;  %v3283_v24 = vpack.c.bf16 %v1463_v15, %v1459_v59  ;;  %v1479_v59 = vld [vmem:[#allocation14 + $0x470] sm:$0xff] }
 0x547   :  { %2994 = vmatprep.subr.bf16.mxu1 %v2993_v10  ;;  %v1434_v10 = vld [vmem:[#allocation14 + $0x308] sm:$0xff]  ;;  %3270 = vmatprep.subr.bf16.mxu0 %v3269_v3 }
 0x548   :  { %v3013_v7 = vpack.c.bf16 %v1438_v11, %v1434_v10  ;;  %v1005_v11 = vld [vmem:[#allocation17] sm:$0x3] }
 0x54a   :  { %2996 = vmatpush1.bf16.msra.mxu1 %v2995_v8  ;;  %v1433_v8 = vld [vmem:[#allocation14 + $0x300] sm:$0xff]  ;;  %3272 = vmatpush1.bf16.msra.mxu0 %v3271_v25 }
 0x54b   :  { %2998 = vmatprep.subr.bf16.mxu1 %v2997_v26  ;;  %v3015_v14 = vpack.c.bf16 %v1437_v13, %v1433_v8  ;;  %v1442_v26 = vld [vmem:[#allocation14 + $0x348] sm:$0xff]  ;;  %3274 = vmatprep.subr.bf16.mxu0 %v3273_v54  ;;  %v1211_v13 = vrot.slane %v1005_v11, %v4198_v51 }
 0x54c   :  { %v3017_v37 = vpack.c.bf16 %v1446_v31, %v1442_v26 }
 0x54e   :  { %3000 = vmatpush1.bf16.msra.mxu1 %v2999_v46  ;;  %v1441_v46 = vld [vmem:[#allocation14 + $0x340] sm:$0xff] }
 0x54f   :  { %3002 = vmatprep.subr.bf16.mxu1 %v3001_v12  ;;  %v3019_v56 = vpack.c.bf16 %v1445_v48, %v1441_v46  ;;  %v3275_v12 = vpack.c.bf16 %v1447_v0, %v1443_v62 }
 0x551   :  { %3276 = vmatpush1.bf16.msra.mxu0 %v3275_v12 }
 0x552   :  { %3004 = vmatpush1.bf16.msra.mxu1 %v3003_v44  ;;  %v3277_v44 = vpack.c.bf16 %v1456_v33, %v1452_v23 }
 0x553   :  { %3006 = vmatprep.subr.bf16.mxu1 %v3005_v60  ;;  %v1462_v60 = vld [vmem:[#allocation14 + $0x3e8] sm:$0xff] }
 0x554   :  { %3278 = vmatprep.subr.bf16.mxu0 %v3277_v44  ;;  %v3025_v49 = vpack.c.bf16 %v1462_v60, %v1458_v6  ;;  %v1474_v6 = vld [vmem:[#allocation14 + $0x448] sm:$0xff] }
 0x555   :  { %3280 = vmatpush1.bf16.msra.mxu0 %v3279_v61  ;;  %v1478_v60 = vld [vmem:[#allocation14 + $0x468] sm:$0xff]  ;;  %v1476_v61 = vld [vmem:[#allocation14 + $0x458] sm:$0xff] }
 0x556   :  { %3008 = vmatpush1.bf16.msra.mxu1 %v3007_v4  ;;  %v1457_v4 = vld [vmem:[#allocation14 + $0x3c0] sm:$0xff]  ;;  %3282 = vmatprep.subr.bf16.mxu0 %v3281_v57 }
 0x557   :  { %3010 = vmatprep.subr.bf16.mxu1 %v3009_v41  ;;  %v3027_v16 = vpack.c.bf16 %v1461_v58, %v1457_v4  ;;  %v1470_v41 = vld [vmem:[#allocation14 + $0x428] sm:$0xff]  ;;  %v1477_v57 = vld [vmem:[#allocation14 + $0x460] sm:$0xff]  ;;  %v1475_v58 = vld [vmem:[#allocation14 + $0x450] sm:$0xff] }
 0x558   :  { %v3029_v42 = vpack.c.bf16 %v1470_v41, %v1466_v17  ;;  %v1482_v17 = vld [vmem:[#allocation14 + $0x488] sm:$0xff] }
 0x559   :  { %3284 = vmatpush1.bf16.msra.mxu0 %v3283_v24 }
 0x55a   :  { %3012 = vmatpush1.bf16.msra.mxu1 %v3011_v28  ;;  %v3285_v28 = vpack.c.bf16 %v1472_v27, %v1468_v21  ;;  %v3033_v21 = vpack.c.bf16 %v1478_v60, %v1474_v6  ;;  %v1486_v27 = vld [vmem:[#allocation14 + $0x4a8] sm:$0xff] }
 0x55b   :  { %3014 = vmatprep.subr.bf16.mxu1 %v3013_v7  ;;  %v1006_v7 = vld [vmem:[#allocation18] sm:$0x3] }
 0x55c   :  { %3286 = vmatprep.subr.bf16.mxu0 %v3285_v28  ;;  %v1226_v25 = vrot.slane %v1006_v7, %v4198_v51  ;;  %v1230_v32 = vrot.slane %v1006_v7, %v4255_v5  ;;  %v1484_v28 = vld [vmem:[#allocation14 + $0x498] sm:$0xff] }
 0x55e   :  { %3016 = vmatpush1.bf16.msra.mxu1 %v3015_v14  ;;  %v1215_v14 = vrot.slane %v1005_v11, %v4255_v5  ;;  %v3291_v11 = vpack.c.bf16 %v1479_v59, %v1475_v58  ;;  %v1514_v58 = vld [vmem:[#allocation14 + $0x588] sm:$0xff] }
 0x55f   :  { %3018 = vmatprep.subr.bf16.mxu1 %v3017_v37  ;;  %v1518_v59 = vld [vmem:[#allocation14 + $0x5a8] sm:$0xff] }
 0x562   :  { %3020 = vmatpush1.bf16.msra.mxu1 %v3019_v56 }
 0x563   :  { %3022 = vmatprep.subr.bf16.mxu1 %v3021_v34 }
 0x566   :  { %3024 = vmatpush1.bf16.msra.mxu1 %v3023_v63  ;;  %v1467_v63 = vld [vmem:[#allocation14 + $0x410] sm:$0xff] }
 0x567   :  { %3026 = vmatprep.subr.bf16.mxu1 %v3025_v49  ;;  %v1480_v49 = vld [vmem:[#allocation14 + $0x478] sm:$0xff]  ;;  %v3287_v4 = vpack.c.bf16 %v1471_v1, %v1467_v63 }
 0x568   :  { %v3289_v24 = vpack.c.bf16 %v1480_v49, %v1476_v61  ;;  %v1508_v63 = vld [vmem:[#allocation14 + $0x558] sm:$0xff]  ;;  %v1505_v61 = vld [vmem:[#allocation14 + $0x540] sm:$0xff] }
 0x569   :  { %v1512_v1 = vld [vmem:[#allocation14 + $0x578] sm:$0xff]  ;;  %v1509_v49 = vld [vmem:[#allocation14 + $0x560] sm:$0xff] }
 0x56a   :  { %3028 = vmatpush1.bf16.msra.mxu1 %v3027_v16 }
 0x56b   :  { %3030 = vmatprep.subr.bf16.mxu1 %v3029_v42 }
 0x600   :  { %v1188_v38 = vpop.f32.mrb[4].mxu1 }
 0x601   :  { %v1189_v40 = vadd.f32 1e-05, %v1188_v38  ;;  %v1190_v43 = vpop.f32.mrb[5].mxu1  ;;  %v1488_v38 = vld [vmem:[#allocation14 + $0x4b8] sm:$0xff] }
 0x602   :  { %v1191_v10 = vadd.f32 1e-05, %v1190_v43 }
 0x603   :  { %3573 = vrsqrt.f32 %v1189_v40  ;;  %v1481_v40 = vld [vmem:[#allocation14 + $0x480] sm:$0xff] }
 0x604   :  { %3575 = vrsqrt.f32 %v1191_v10  ;;  %v3035_v10 = vpack.c.bf16 %v1477_v57, %v1473_v2  ;;  %v3049_v2 = vpack.c.bf16 %v1510_v55, %v1506_v53  ;;  %v1511_v57 = vld [vmem:[#allocation14 + $0x570] sm:$0xff]  ;;  %v1550_v53 = vld [vmem:[#allocation14 + $0x6a8] sm:$0xff]  ;;  %v1548_v55 = vld [vmem:[#allocation14 + $0x698] sm:$0xff] }
 0x60d   :  { %v3574_v47 = vpop.eup %3573 }
 0x60e   :  { %v3576_v18 = vpop.eup %3575  ;;  %v1198_v8 = vrot.slane %v3574_v47, %v4198_v51 }
 0x60f   :  { %v1202_v3 = vrot.slane %v3576_v18, %v4198_v51  ;;  %v1485_v18 = vld [vmem:[#allocation14 + $0x4a0] sm:$0xff] }
 0x610   :  { %v1203_v19 = vmul.f32 %v1198_v8, %v4323_v29  ;;  %v1205_v20 = vmul.f32 %v1198_v8, %v4326_v30  ;;  %v1483_v8 = vld [vmem:[#allocation14 + $0x490] sm:$0xff] }
 0x611   :  { %v1204_v26 = vmul.f32 %v1202_v3, %v4329_v35  ;;  %v1206_v31 = vmul.f32 %v1202_v3, %v4332_v36  ;;  %v1490_v3 = vld [vmem:[#allocation14 + $0x4c8] sm:$0xff] }
 0x612   :  { %v1218_v37 = vmul.f32 %v1211_v13, %v1203_v19  ;;  %v1220_v39 = vmul.f32 %v1211_v13, %v1205_v20  ;;  %v1487_v13 = vld [vmem:[#allocation14 + $0x4b0] sm:$0xff]  ;;  %v3037_v20 = vpack.c.bf16 %v1486_v27, %v1482_v17  ;;  %v3051_v17 = vpack.c.bf16 %v1509_v49, %v1505_v61  ;;  %v1549_v61 = vld [vmem:[#allocation14 + $0x6a0] sm:$0xff] }
 0x613   :  { %v1219_v46 = vmul.f32 %v1215_v14, %v1204_v26  ;;  %v1221_v48 = vmul.f32 %v1215_v14, %v1206_v31  ;;  %v1494_v14 = vld [vmem:[#allocation14 + $0x4e8] sm:$0xff]  ;;  %v1492_v26 = vld [vmem:[#allocation14 + $0x4d8] sm:$0xff] }
 0x614   :  { %v1233_v54 = vadd.f32 %v1226_v25, %v1218_v37  ;;  %v1235_v56 = vadd.f32 %v1226_v25, %v1220_v39  ;;  %v3293_v25 = vpack.c.bf16 %v1488_v38, %v1484_v28  ;;  %v1496_v31 = vld [vmem:[#allocation14 + $0x4f8] sm:$0xff]  ;;  %v3039_v37 = vpack.c.bf16 %v1485_v18, %v1481_v40  ;;  %v1515_v28 = vld [vmem:[#allocation14 + $0x590] sm:$0xff]  ;;  %v1522_v40 = vld [vmem:[#allocation14 + $0x5c8] sm:$0xff] }
 0x615   :  { %v1234_v62 = vadd.f32 %v1230_v32, %v1219_v46  ;;  %v1236_v0 = vadd.f32 %v1230_v32, %v1221_v48  ;;  %v3295_v39 = vpack.c.bf16 %v1487_v13, %v1483_v8  ;;  %v1489_v46 = vld [vmem:[#allocation14 + $0x4c0] sm:$0xff]  ;;  %v1519_v38 = vld [vmem:[#allocation14 + $0x5b0] sm:$0xff] }
 0x616   :  { %vm1237_vm6 = vcmp.gt.f32.partialorder %v1233_v54, 0.0  ;;  %vm1239_vm7 = vcmp.gt.f32.partialorder %v1235_v56, 0.0  ;;  %v1241_v29 = vmul.f32 0.02, %v1233_v54  ;;  %v1243_v30 = vmul.f32 0.02, %v1235_v56 }
 0x617   :  { %vm1238_vm8 = vcmp.gt.f32.partialorder %v1234_v62, 0.0  ;;  %vm1240_vm9 = vcmp.gt.f32.partialorder %v1236_v0, 0.0  ;;  %v1242_v9 = vmul.f32 0.02, %v1234_v62  ;;  %v1244_v35 = vmul.f32 0.02, %v1236_v0 }
 0x618   :  { %v1245_v12 = vsel %vm1237_vm6, %v1233_v54, %v1241_v29  ;;  %v1247_v36 = vsel %vm1239_vm7, %v1235_v56, %v1243_v30  ;;  %v1493_v48 = vld [vmem:[#allocation14 + $0x4e0] sm:$0xff]  ;;  %v3041_v54 = vpack.c.bf16 %v1494_v14, %v1490_v3  ;;  %v3297_v56 = vpack.c.bf16 %v1496_v31, %v1492_v26  ;;  %v1498_v29 = vld [vmem:[#allocation14 + $0x508] sm:$0xff]  ;;  %v1523_v14 = vld [vmem:[#allocation14 + $0x5d0] sm:$0xff] }
 0x619   :  { %v1253_v22 = vrot.slane %v1245_v12, 7  ;;  %v1255_v23 = vrot.slane %v1247_v36, 7  ;;  %v1246_v33 = vsel %vm1238_vm8, %v1234_v62, %v1242_v9  ;;  %v1248_v34 = vsel %vm1240_vm9, %v1236_v0, %v1244_v35  ;;  %v1491_v62 = vld [vmem:[#allocation14 + $0x4d0] sm:$0xff]  ;;  %v1502_v30 = vld [vmem:[#allocation14 + $0x528] sm:$0xff]  ;;  %v1500_v9 = vld [vmem:[#allocation14 + $0x518] sm:$0xff] }
 0x61a   :  { %v1254_v44 = vrot.slane %v1246_v33, 7  ;;  %v1256_v45 = vrot.slane %v1248_v34, 7  ;;  %v1495_v0 = vld [vmem:[#allocation14 + $0x4f0] sm:$0xff]  ;;  %v1504_v35 = vld [vmem:[#allocation14 + $0x538] sm:$0xff]  ;;  %v3043_v12 = vpack.c.bf16 %v1493_v48, %v1489_v46  ;;  %v3045_v33 = vpack.c.bf16 %v1502_v30, %v1498_v29  ;;  %v1521_v18 = vld [vmem:[#allocation14 + $0x5c0] sm:$0xff] }
 0x61b   :  { %1263 = vst [vmem:[#allocation2 + $0x10] sm:$0x1] %v1253_v22  ;;  %1267 = vst [vmem:[#allocation2 + $0x30] sm:$0x1] %v1255_v23  ;;  %v3299_v36 = vpack.c.bf16 %v1495_v0, %v1491_v62  ;;  %v3301_v34 = vpack.c.bf16 %v1504_v35, %v1500_v9  ;;  %v1525_v8 = vld [vmem:[#allocation14 + $0x5e0] sm:$0xff]  ;;  %v1532_v26 = vld [vmem:[#allocation14 + $0x618] sm:$0xff] }
 0x61c   :  { %1261 = vst [vmem:[#allocation2] sm:$0xfe] %v1253_v22  ;;  %1265 = vst [vmem:[#allocation2 + $0x20] sm:$0xfe] %v1255_v23  ;;  %v1497_v22 = vld [vmem:[#allocation14 + $0x500] sm:$0xff]  ;;  %v1536_v31 = vld [vmem:[#allocation14 + $0x638] sm:$0xff] }
 0x61d   :  { %1264 = vst [vmem:[#allocation2 + $0x18] sm:$0x1] %v1254_v44  ;;  %1268 = vst [vmem:[#allocation2 + $0x38] sm:$0x1] %v1256_v45  ;;  %v1501_v23 = vld [vmem:[#allocation14 + $0x520] sm:$0xff]  ;;  %v1535_v62 = vld [vmem:[#allocation14 + $0x630] sm:$0xff] }
 0x61e   :  { %1262 = vst [vmem:[#allocation2 + $0x8] sm:$0xfe] %v1254_v44  ;;  %1266 = vst [vmem:[#allocation2 + $0x28] sm:$0xfe] %v1256_v45  ;;  %v1499_v44 = vld [vmem:[#allocation14 + $0x510] sm:$0xff]  ;;  %v3047_v6 = vpack.c.bf16 %v1501_v23, %v1497_v22  ;;  %v1533_v46 = vld [vmem:[#allocation14 + $0x620] sm:$0xff] }
 0x61f   :  { %v1503_v45 = vld [vmem:[#allocation14 + $0x530] sm:$0xff]  ;;  %v1538_v0 = vld [vmem:[#allocation14 + $0x648] sm:$0xff]  ;;  %v1540_v30 = vld [vmem:[#allocation14 + $0x658] sm:$0xff] }
 0x620   :  { %v3303_v60 = vpack.c.bf16 %v1503_v45, %v1499_v44  ;;  %v1542_v29 = vld [vmem:[#allocation14 + $0x668] sm:$0xff]  ;;  %v1544_v9 = vld [vmem:[#allocation14 + $0x678] sm:$0xff]  ;;  %v1541_v22 = vld [vmem:[#allocation14 + $0x660] sm:$0xff] }
 0x621   :  { %v3065_v23 = vpack.c.bf16 %v1542_v29, %v1538_v0  ;;  %v1543_v44 = vld [vmem:[#allocation14 + $0x670] sm:$0xff]  ;;  %v1546_v45 = vld [vmem:[#allocation14 + $0x688] sm:$0xff]  ;;  %v1580_v29 = vld [vmem:[#allocation14 + $0x798] sm:$0xff] }
 0x622   :  { %v3069_v49 = vpack.c.bf16 %v1550_v53, %v1546_v45  ;;  %v1582_v0 = vld [vmem:[#allocation14 + $0x7a8] sm:$0xff]  ;;  %v1588_v53 = vld [vmem:[#allocation14 + $0x7d8] sm:$0xff] }
 0x623   :  { %v1269_v41 = vld [vmem:[#allocation2] sm:$0xff]  ;;  %v1590_v45 = vld [vmem:[#allocation14 + $0x7e8] sm:$0xff] }
 0x624   :  { %v1276_v42 = vld [vmem:[#allocation2 + $0x18] sm:$0x1]  ;;  %v1271_v19 = vld [vmem:[#allocation2 + $0x20] sm:$0xff] }
 0x625   :  { %v1270_v15 = vld [vmem:[#allocation2 + $0x8] sm:$0xff]  ;;  %v1293_v7 = vrot.slane %v1276_v42, 1  ;;  %v3053_v42 = vpack.c.bf16 %v1518_v59, %v1514_v58  ;;  %v1556_v59 = vld [vmem:[#allocation14 + $0x6d8] sm:$0xff] }
 0x626   :  { %v1274_v16 = vld [vmem:[#allocation2 + $0x8] sm:$0xfe]  ;;  %1935 = vmatprep.mubr.f32.mxu1 %v1270_v15  ;;  %2243 = vmatprep.mubr.f32.mxu0 %v1270_v15  ;;  %v1516_v15 = vld [vmem:[#allocation14 + $0x598] sm:$0xff] }
 0x627   :  { %1936 = vmatmul.mubr.f32.vlgmr.msra.gmra.mrb[6].mxu1 %v1269_v41  ;;  %2244 = vmatmul.mubr.f32.vlgmr.msra.gmra.mrb[6].mxu0 %v1269_v41  ;;  %v1272_v43 = vld [vmem:[#allocation2 + $0x28] sm:$0xff]  ;;  %v1292_v47 = vrot.slane %v1274_v16, 1  ;;  %v1520_v16 = vld [vmem:[#allocation14 + $0x5b8] sm:$0xff] }
 0x628   :  { %3032 = vmatpush1.bf16.msra.mxu1 %v3031_v52  ;;  %3288 = vmatpush1.bf16.msra.mxu0 %v3287_v4  ;;  %v3305_v52 = vpack.c.bf16 %v1512_v1, %v1508_v63  ;;  %v1507_v4 = vld [vmem:[#allocation14 + $0x550] sm:$0xff]  ;;  %v3309_v27 = vpack.c.bf16 %v1520_v16, %v1516_v15  ;;  %v1552_v63 = vld [vmem:[#allocation14 + $0x6b8] sm:$0xff]  ;;  %v1558_v58 = vld [vmem:[#allocation14 + $0x6e8] sm:$0xff] }
 0x629   :  { %1941 = vmatprep.mubr.f32.mxu1 %v1272_v43  ;;  %2249 = vmatprep.mubr.f32.mxu0 %v1272_v43  ;;  %v1294_v32 = vsel %vm520_vm4, %v1292_v47, %v1293_v7  ;;  %v3307_v41 = vpack.c.bf16 %v1511_v57, %v1507_v4  ;;  %v1526_v43 = vld [vmem:[#allocation14 + $0x5e8] sm:$0xff]  ;;  %v3311_v7 = vpack.c.bf16 %v1519_v38, %v1515_v28  ;;  %v1551_v4 = vld [vmem:[#allocation14 + $0x6b0] sm:$0xff]  ;;  %v1560_v15 = vld [vmem:[#allocation14 + $0x6f8] sm:$0xff] }
 0x62a   :  { %3034 = vmatprep.subr.bf16.mxu1 %v3033_v21  ;;  %3290 = vmatprep.subr.bf16.mxu0 %v3289_v24  ;;  %v1513_v21 = vld [vmem:[#allocation14 + $0x580] sm:$0xff]  ;;  %v3057_v13 = vpack.c.bf16 %v1526_v43, %v1522_v40  ;;  %v1554_v57 = vld [vmem:[#allocation14 + $0x6c8] sm:$0xff]  ;;  %v1559_v28 = vld [vmem:[#allocation14 + $0x6f0] sm:$0xff] }
 0x62b   :  { %1942 = vmatmul.mubr.f32.gmra.mrb[8].mxu1 %v1271_v19  ;;  %2250 = vmatmul.mubr.f32.gmra.mrb[8].mxu0 %v1271_v19  ;;  %v1517_v24 = vld [vmem:[#allocation14 + $0x5a0] sm:$0xff]  ;;  %v1527_v19 = vld [vmem:[#allocation14 + $0x5f0] sm:$0xff]  ;;  %v1562_v38 = vld [vmem:[#allocation14 + $0x708] sm:$0xff] }
 0x62c   :  { %3036 = vmatpush1.bf16.msra.mxu1 %v3035_v10  ;;  %3292 = vmatpush1.bf16.msra.mxu0 %v3291_v11  ;;  %v1524_v10 = vld [vmem:[#allocation14 + $0x5d8] sm:$0xff]  ;;  %v3055_v47 = vpack.c.bf16 %v1517_v24, %v1513_v21  ;;  %v1557_v21 = vld [vmem:[#allocation14 + $0x6e0] sm:$0xff]  ;;  %v3073_v24 = vpack.c.bf16 %v1558_v58, %v1554_v57  ;;  %v1566_v40 = vld [vmem:[#allocation14 + $0x728] sm:$0xff] }
 0x62d   :  { %2012 = vmatprep.mubr.f32.mxu1 %v1294_v32  ;;  %2320 = vmatprep.mubr.f32.mxu0 %v1294_v32  ;;  %v1528_v11 = vld [vmem:[#allocation14 + $0x5f8] sm:$0xff]  ;;  %v3059_v32 = vpack.c.bf16 %v1525_v8, %v1521_v18  ;;  %v1565_v18 = vld [vmem:[#allocation14 + $0x720] sm:$0xff]  ;;  %v3077_v8 = vpack.c.bf16 %v1566_v40, %v1562_v38  ;;  %v1598_v57 = vld [vmem:[#allocation14 + $0x828] sm:$0xff] }
 0x62e   :  { %3038 = vmatprep.subr.bf16.mxu1 %v3037_v20  ;;  %3294 = vmatprep.subr.bf16.mxu0 %v3293_v25  ;;  %v3313_v3 = vpack.c.bf16 %v1528_v11, %v1524_v10  ;;  %v1530_v20 = vld [vmem:[#allocation14 + $0x608] sm:$0xff]  ;;  %v1564_v43 = vld [vmem:[#allocation14 + $0x718] sm:$0xff]  ;;  %v1595_v40 = vld [vmem:[#allocation14 + $0x810] sm:$0xff] }
 0x62f   :  { %v1534_v25 = vld [vmem:[#allocation14 + $0x628] sm:$0xff]  ;;  %v1568_v10 = vld [vmem:[#allocation14 + $0x738] sm:$0xff] }
 0x630   :  { %3040 = vmatpush1.bf16.msra.mxu1 %v3039_v37  ;;  %3296 = vmatpush1.bf16.msra.mxu0 %v3295_v39  ;;  %v3315_v37 = vpack.c.bf16 %v1527_v19, %v1523_v14  ;;  %v1529_v39 = vld [vmem:[#allocation14 + $0x600] sm:$0xff]  ;;  %v3061_v48 = vpack.c.bf16 %v1534_v25, %v1530_v20  ;;  %v1567_v14 = vld [vmem:[#allocation14 + $0x730] sm:$0xff]  ;;  %v1570_v19 = vld [vmem:[#allocation14 + $0x748] sm:$0xff] }
 0x631   :  { %3042 = vmatprep.subr.bf16.mxu1 %v3041_v54  ;;  %3298 = vmatprep.subr.bf16.mxu0 %v3297_v56  ;;  %v3317_v54 = vpack.c.bf16 %v1536_v31, %v1532_v26  ;;  %v1531_v56 = vld [vmem:[#allocation14 + $0x610] sm:$0xff]  ;;  %v3063_v35 = vpack.c.bf16 %v1533_v46, %v1529_v39  ;;  %v1574_v20 = vld [vmem:[#allocation14 + $0x768] sm:$0xff]  ;;  %v1572_v25 = vld [vmem:[#allocation14 + $0x758] sm:$0xff] }
 0x632   :  { %v1576_v26 = vld [vmem:[#allocation14 + $0x778] sm:$0xff]  ;;  %v1573_v39 = vld [vmem:[#allocation14 + $0x760] sm:$0xff]  ;;  %v3081_v46 = vpack.c.bf16 %v1574_v20, %v1570_v19  ;;  %v1279_v19 = vld [vmem:[#allocation2 + $0x30] sm:$0x1] }
 0x633   :  { %v1596_v58 = vld [vmem:[#allocation14 + $0x818] sm:$0xff] }
 0x634   :  { %3044 = vmatpush1.bf16.msra.mxu1 %v3043_v12  ;;  %3300 = vmatpush1.bf16.msra.mxu0 %v3299_v36  ;;  %v3319_v12 = vpack.c.bf16 %v1535_v62, %v1531_v56  ;;  %v1537_v36 = vld [vmem:[#allocation14 + $0x640] sm:$0xff]  ;;  %v1575_v56 = vld [vmem:[#allocation14 + $0x770] sm:$0xff]  ;;  %v1578_v62 = vld [vmem:[#allocation14 + $0x788] sm:$0xff] }
 0x635   :  { %3046 = vmatprep.subr.bf16.mxu1 %v3045_v33  ;;  %3302 = vmatprep.subr.bf16.mxu0 %v3301_v34  ;;  %v3321_v33 = vpack.c.bf16 %v1544_v9, %v1540_v30  ;;  %v1539_v34 = vld [vmem:[#allocation14 + $0x650] sm:$0xff]  ;;  %v3067_v1 = vpack.c.bf16 %v1541_v22, %v1537_v36  ;;  %v1584_v30 = vld [vmem:[#allocation14 + $0x7b8] sm:$0xff]  ;;  %v1581_v36 = vld [vmem:[#allocation14 + $0x7a0] sm:$0xff]  ;;  %v3085_v22 = vpack.c.bf16 %v1582_v0, %v1578_v62 }
 0x636   :  { %v1603_v62 = vld [vmem:[#allocation14 + $0x850] sm:$0xff] }
 0x637   :  { %v1607_v0 = vld [vmem:[#allocation14 + $0x870] sm:$0xff] }
 0x638   :  { %3048 = vmatpush1.bf16.msra.mxu1 %v3047_v6  ;;  %3304 = vmatpush1.bf16.msra.mxu0 %v3303_v60  ;;  %v3323_v6 = vpack.c.bf16 %v1543_v44, %v1539_v34  ;;  %v1545_v60 = vld [vmem:[#allocation14 + $0x680] sm:$0xff]  ;;  %v1583_v34 = vld [vmem:[#allocation14 + $0x7b0] sm:$0xff]  ;;  %v1586_v44 = vld [vmem:[#allocation14 + $0x7c8] sm:$0xff] }
 0x639   :  { %3050 = vmatprep.subr.bf16.mxu1 %v3049_v2  ;;  %3306 = vmatprep.subr.bf16.mxu0 %v3305_v52  ;;  %v3325_v2 = vpack.c.bf16 %v1552_v63, %v1548_v55  ;;  %v1547_v52 = vld [vmem:[#allocation14 + $0x690] sm:$0xff]  ;;  %v3071_v16 = vpack.c.bf16 %v1549_v61, %v1545_v60  ;;  %v1592_v55 = vld [vmem:[#allocation14 + $0x7f8] sm:$0xff]  ;;  %v1589_v60 = vld [vmem:[#allocation14 + $0x7e0] sm:$0xff]  ;;  %v3089_v61 = vpack.c.bf16 %v1590_v45, %v1586_v44 }
 0x63a   :  { %v1613_v44 = vld [vmem:[#allocation14 + $0x8a0] sm:$0xff]  ;;  %v1611_v45 = vld [vmem:[#allocation14 + $0x890] sm:$0xff] }
 0x63c   :  { %3052 = vmatpush1.bf16.msra.mxu1 %v3051_v17  ;;  %3308 = vmatpush1.bf16.msra.mxu0 %v3307_v41  ;;  %v3327_v17 = vpack.c.bf16 %v1551_v4, %v1547_v52  ;;  %v1553_v41 = vld [vmem:[#allocation14 + $0x6c0] sm:$0xff]  ;;  %v1591_v52 = vld [vmem:[#allocation14 + $0x7f0] sm:$0xff]  ;;  %v1594_v4 = vld [vmem:[#allocation14 + $0x808] sm:$0xff] }
 0x63d   :  { %3054 = vmatprep.subr.bf16.mxu1 %v3053_v42  ;;  %3310 = vmatprep.subr.bf16.mxu0 %v3309_v27  ;;  %v3329_v42 = vpack.c.bf16 %v1560_v15, %v1556_v59  ;;  %v1555_v27 = vld [vmem:[#allocation14 + $0x6d0] sm:$0xff]  ;;  %v3075_v11 = vpack.c.bf16 %v1557_v21, %v1553_v41  ;;  %v1600_v59 = vld [vmem:[#allocation14 + $0x838] sm:$0xff] }
 0x63e   :  { %v1273_v15 = vld [vmem:[#allocation2] sm:$0xfe]  ;;  %v3349_v38 = vpack.c.bf16 %v1600_v59, %v1596_v58 }
 0x63f   :  { %v1617_v58 = vld [vmem:[#allocation14 + $0x8c0] sm:$0xff] }
 0x640   :  { %3056 = vmatpush1.bf16.msra.mxu1 %v3055_v47  ;;  %3312 = vmatpush1.bf16.msra.mxu0 %v3311_v7  ;;  %v3331_v47 = vpack.c.bf16 %v1559_v28, %v1555_v27  ;;  %v1561_v7 = vld [vmem:[#allocation14 + $0x700] sm:$0xff]  ;;  %v3093_v28 = vpack.c.bf16 %v1598_v57, %v1594_v4 }
 0x641   :  { %3058 = vmatprep.subr.bf16.mxu1 %v3057_v13  ;;  %3314 = vmatprep.subr.bf16.mxu0 %v3313_v3  ;;  %v3333_v13 = vpack.c.bf16 %v1568_v10, %v1564_v43  ;;  %v1563_v3 = vld [vmem:[#allocation14 + $0x710] sm:$0xff]  ;;  %v3079_v31 = vpack.c.bf16 %v1565_v18, %v1561_v7  ;;  %v1597_v27 = vld [vmem:[#allocation14 + $0x820] sm:$0xff]  ;;  %v1602_v10 = vld [vmem:[#allocation14 + $0x848] sm:$0xff] }
 0x642   :  { %v1599_v43 = vld [vmem:[#allocation14 + $0x830] sm:$0xff]  ;;  %v1606_v7 = vld [vmem:[#allocation14 + $0x868] sm:$0xff]  ;;  %v1604_v18 = vld [vmem:[#allocation14 + $0x858] sm:$0xff] }
 0x643   :  { %v1621_v59 = vld [vmem:[#allocation14 + $0x8e0] sm:$0xff] }
 0x644   :  { %3060 = vmatpush1.bf16.msra.mxu1 %v3059_v32  ;;  %3316 = vmatpush1.bf16.msra.mxu0 %v3315_v37  ;;  %v3335_v32 = vpack.c.bf16 %v1567_v14, %v1563_v3  ;;  %v1569_v37 = vld [vmem:[#allocation14 + $0x740] sm:$0xff] }
 0x645   :  { %3062 = vmatprep.subr.bf16.mxu1 %v3061_v48  ;;  %3318 = vmatprep.subr.bf16.mxu0 %v3317_v54  ;;  %v3337_v48 = vpack.c.bf16 %v1576_v26, %v1572_v25  ;;  %v1571_v54 = vld [vmem:[#allocation14 + $0x750] sm:$0xff]  ;;  %v3083_v9 = vpack.c.bf16 %v1573_v39, %v1569_v37  ;;  %v1277_v14 = vld [vmem:[#allocation2 + $0x20] sm:$0xfe]  ;;  %v1306_v25 = vld [vmem:[#allocation2 + $0x8] sm:$0xfc] }
 0x646   :  { %v1308_v26 = vld [vmem:[#allocation2 + $0x18] sm:$0x3]  ;;  %v1601_v37 = vld [vmem:[#allocation14 + $0x840] sm:$0xff] }
 0x647   :  { %v1605_v39 = vld [vmem:[#allocation14 + $0x860] sm:$0xff] }
 0x648   :  { %3064 = vmatpush1.bf16.msra.mxu1 %v3063_v35  ;;  %3320 = vmatpush1.bf16.msra.mxu0 %v3319_v12  ;;  %v3339_v35 = vpack.c.bf16 %v1575_v56, %v1571_v54  ;;  %v1577_v12 = vld [vmem:[#allocation14 + $0x780] sm:$0xff]  ;;  %v1296_v54 = vrot.slane %v1279_v19, 1 }
 0x649   :  { %3066 = vmatprep.subr.bf16.mxu1 %v3065_v23  ;;  %3322 = vmatprep.subr.bf16.mxu0 %v3321_v33  ;;  %v3341_v23 = vpack.c.bf16 %v1584_v30, %v1580_v29  ;;  %v1579_v33 = vld [vmem:[#allocation14 + $0x790] sm:$0xff]  ;;  %v3087_v63 = vpack.c.bf16 %v1581_v36, %v1577_v12  ;;  %v1610_v29 = vld [vmem:[#allocation14 + $0x888] sm:$0xff]  ;;  %v1612_v36 = vld [vmem:[#allocation14 + $0x898] sm:$0xff] }
 0x64a   :  { %v1614_v12 = vld [vmem:[#allocation14 + $0x8a8] sm:$0xff] }
 0x64c   :  { %3068 = vmatpush1.bf16.msra.mxu1 %v3067_v1  ;;  %3324 = vmatpush1.bf16.msra.mxu0 %v3323_v6  ;;  %v3343_v1 = vpack.c.bf16 %v1583_v34, %v1579_v33  ;;  %v1585_v6 = vld [vmem:[#allocation14 + $0x7c0] sm:$0xff]  ;;  %v3355_v33 = vpack.c.bf16 %v1607_v0, %v1603_v62 }
 0x64d   :  { %3070 = vmatprep.subr.bf16.mxu1 %v3069_v49  ;;  %3326 = vmatprep.subr.bf16.mxu0 %v3325_v2  ;;  %v3345_v49 = vpack.c.bf16 %v1592_v55, %v1588_v53  ;;  %v1587_v2 = vld [vmem:[#allocation14 + $0x7d0] sm:$0xff]  ;;  %v3091_v41 = vpack.c.bf16 %v1589_v60, %v1585_v6  ;;  %v1609_v34 = vld [vmem:[#allocation14 + $0x880] sm:$0xff]  ;;  %v3101_v55 = vpack.c.bf16 %v1614_v12, %v1610_v29  ;;  %v1618_v6 = vld [vmem:[#allocation14 + $0x8c8] sm:$0xff] }
 0x64e   :  { %v3347_v21 = vpack.c.bf16 %v1591_v52, %v1587_v2  ;;  %v1622_v60 = vld [vmem:[#allocation14 + $0x8e8] sm:$0xff]  ;;  %v1624_v2 = vld [vmem:[#allocation14 + $0x8f8] sm:$0xff]  ;;  %v3103_v52 = vpack.c.bf16 %v1613_v44, %v1609_v34  ;;  %v1641_v0 = vld [vmem:[#allocation14 + $0x980] sm:$0xff] }
 0x64f   :  { %v3105_v57 = vpack.c.bf16 %v1622_v60, %v1618_v6  ;;  %v1645_v29 = vld [vmem:[#allocation14 + $0x9a0] sm:$0xff]  ;;  %v1650_v12 = vld [vmem:[#allocation14 + $0x9c8] sm:$0xff] }
 0x650   :  { %3072 = vmatpush1.bf16.msra.mxu1 %v3071_v16  ;;  %3328 = vmatpush1.bf16.msra.mxu0 %v3327_v17  ;;  %v1275_v16 = vld [vmem:[#allocation2 + $0x10] sm:$0x1]  ;;  %v1593_v17 = vld [vmem:[#allocation14 + $0x800] sm:$0xff] }
 0x651   :  { %3074 = vmatprep.subr.bf16.mxu1 %v3073_v24  ;;  %3330 = vmatprep.subr.bf16.mxu0 %v3329_v42  ;;  %v1278_v24 = vld [vmem:[#allocation2 + $0x28] sm:$0xfe]  ;;  %v1280_v42 = vld [vmem:[#allocation2 + $0x38] sm:$0x1]  ;;  %v3095_v20 = vpack.c.bf16 %v1597_v27, %v1593_v17  ;;  %v3107_v27 = vpack.c.bf16 %v1621_v59, %v1617_v58 }
 0x652   :  { %v1299_v3 = vrot.slane %v1280_v42, 1  ;;  %v1623_v17 = vld [vmem:[#allocation14 + $0x8f0] sm:$0xff]  ;;  %v1632_v42 = vld [vmem:[#allocation14 + $0x938] sm:$0xff]  ;;  %v1658_v6 = vld [vmem:[#allocation14 + $0xa08] sm:$0xff] }
 0x653   :  { %v1662_v60 = vld [vmem:[#allocation14 + $0xa28] sm:$0xff]  ;;  %v1661_v58 = vld [vmem:[#allocation14 + $0xa20] sm:$0xff]  ;;  %v1659_v59 = vld [vmem:[#allocation14 + $0xa10] sm:$0xff] }
 0x654   :  { %3076 = vmatpush1.bf16.msra.mxu1 %v3075_v11  ;;  %3332 = vmatpush1.bf16.msra.mxu0 %v3331_v47  ;;  %v1289_v11 = vrot.slane %v1273_v15, 1  ;;  %v1290_v47 = vrot.slane %v1275_v16, 1  ;;  %v1619_v15 = vld [vmem:[#allocation14 + $0x8d0] sm:$0xff] }
 0x655   :  { %3078 = vmatprep.subr.bf16.mxu1 %v3077_v8  ;;  %3334 = vmatprep.subr.bf16.mxu0 %v3333_v13  ;;  %v1608_v8 = vld [vmem:[#allocation14 + $0x878] sm:$0xff]  ;;  %v1298_v13 = vrot.slane %v1278_v24, 1 }
 0x656   :  { %v3353_v56 = vpack.c.bf16 %v1608_v8, %v1604_v18  ;;  %v1628_v24 = vld [vmem:[#allocation14 + $0x918] sm:$0xff]  ;;  %v1638_v18 = vld [vmem:[#allocation14 + $0x968] sm:$0xff] }
 0x657   :  { %v1300_v30 = vsel %vm520_vm4, %v1298_v13, %v1299_v3  ;;  %v1636_v8 = vld [vmem:[#allocation14 + $0x958] sm:$0xff] }
 0x658   :  { %3080 = vmatpush1.bf16.msra.mxu1 %v3079_v31  ;;  %3336 = vmatpush1.bf16.msra.mxu0 %v3335_v32  ;;  %v3351_v31 = vpack.c.bf16 %v1599_v43, %v1595_v40  ;;  %v3097_v32 = vpack.c.bf16 %v1606_v7, %v1602_v10  ;;  %v1625_v40 = vld [vmem:[#allocation14 + $0x900] sm:$0xff]  ;;  %v1627_v10 = vld [vmem:[#allocation14 + $0x910] sm:$0xff]  ;;  %v1634_v7 = vld [vmem:[#allocation14 + $0x948] sm:$0xff] }
 0x659   :  { %3082 = vmatprep.subr.bf16.mxu1 %v3081_v46  ;;  %3338 = vmatprep.subr.bf16.mxu0 %v3337_v48  ;;  %v1291_v46 = vsel %vm520_vm4, %v1289_v11, %v1290_v47  ;;  %v1295_v48 = vrot.slane %v1277_v14, 1  ;;  %v1629_v43 = vld [vmem:[#allocation14 + $0x920] sm:$0xff]  ;;  %v3365_v11 = vpack.c.bf16 %v1632_v42, %v1628_v24  ;;  %v1631_v47 = vld [vmem:[#allocation14 + $0x930] sm:$0xff]  ;;  %v1640_v13 = vld [vmem:[#allocation14 + $0x978] sm:$0xff]  ;;  %v3113_v19 = vpack.c.bf16 %v1638_v18, %v1634_v7 }
 0x65a   :  { %v3111_v3 = vpack.c.bf16 %v1629_v43, %v1625_v40  ;;  %v3367_v14 = vpack.c.bf16 %v1631_v47, %v1627_v10  ;;  %v1672_v24 = vld [vmem:[#allocation14 + $0xa78] sm:$0xff]  ;;  %v1669_v40 = vld [vmem:[#allocation14 + $0xa60] sm:$0xff]  ;;  %v1667_v43 = vld [vmem:[#allocation14 + $0xa50] sm:$0xff] }
 0x65b   :  { %v1297_v53 = vsel %vm520_vm4, %v1295_v48, %v1296_v54  ;;  %v1648_v48 = vld [vmem:[#allocation14 + $0x9b8] sm:$0xff]  ;;  %v1674_v47 = vld [vmem:[#allocation14 + $0xa88] sm:$0xff] }
 0x65c   :  { %3084 = vmatpush1.bf16.msra.mxu1 %v3083_v9  ;;  %3340 = vmatpush1.bf16.msra.mxu0 %v3339_v35  ;;  %v1324_v9 = vrot.slane %v1306_v25, 2  ;;  %v1325_v35 = vrot.slane %v1308_v26, 2  ;;  %v1637_v25 = vld [vmem:[#allocation14 + $0x960] sm:$0xff]  ;;  %v1635_v26 = vld [vmem:[#allocation14 + $0x950] sm:$0xff]  ;;  %v1678_v7 = vld [vmem:[#allocation14 + $0xaa8] sm:$0xff] }
 0x65d   :  { %3086 = vmatprep.subr.bf16.mxu1 %v3085_v22  ;;  %3342 = vmatprep.subr.bf16.mxu0 %v3341_v23  ;;  %v1616_v22 = vld [vmem:[#allocation14 + $0x8b8] sm:$0xff]  ;;  %v3099_v23 = vpack.c.bf16 %v1605_v39, %v1601_v37  ;;  %v1642_v37 = vld [vmem:[#allocation14 + $0x988] sm:$0xff] }
 0x65e   :  { %v1646_v39 = vld [vmem:[#allocation14 + $0x9a8] sm:$0xff]  ;;  %v1676_v18 = vld [vmem:[#allocation14 + $0xa98] sm:$0xff] }
 0x65f   :  { %v3117_v62 = vpack.c.bf16 %v1646_v39, %v1642_v37  ;;  %v1686_v37 = vld [vmem:[#allocation14 + $0xae8] sm:$0xff]  ;;  %v1684_v39 = vld [vmem:[#allocation14 + $0xad8] sm:$0xff] }
 0x660   :  { %3088 = vmatpush1.bf16.msra.mxu1 %v3087_v63  ;;  %3344 = vmatpush1.bf16.msra.mxu0 %v3343_v1  ;;  %v3357_v63 = vpack.c.bf16 %v1616_v22, %v1612_v36  ;;  %v1615_v1 = vld [vmem:[#allocation14 + $0x8b0] sm:$0xff]  ;;  %v1654_v36 = vld [vmem:[#allocation14 + $0x9e8] sm:$0xff]  ;;  %v1652_v22 = vld [vmem:[#allocation14 + $0x9d8] sm:$0xff] }
 0x661   :  { %3090 = vmatprep.subr.bf16.mxu1 %v3089_v61  ;;  %3346 = vmatprep.subr.bf16.mxu0 %v3345_v49  ;;  %v1326_v61 = vsel %vm553_vm5, %v1324_v9, %v1325_v35  ;;  %v1620_v49 = vld [vmem:[#allocation14 + $0x8d8] sm:$0xff]  ;;  %v3359_v4 = vpack.c.bf16 %v1615_v1, %v1611_v45  ;;  %v1647_v35 = vld [vmem:[#allocation14 + $0x9b0] sm:$0xff]  ;;  %v3121_v44 = vpack.c.bf16 %v1654_v36, %v1650_v12  ;;  %v1649_v45 = vld [vmem:[#allocation14 + $0x9c0] sm:$0xff] }
 0x662   :  { %v3361_v16 = vpack.c.bf16 %v1624_v2, %v1620_v49  ;;  %v1655_v1 = vld [vmem:[#allocation14 + $0x9f0] sm:$0xff]  ;;  %v1664_v49 = vld [vmem:[#allocation14 + $0xa38] sm:$0xff]  ;;  %v1694_v12 = vld [vmem:[#allocation14 + $0xb28] sm:$0xff] }
 0x663   :  { %v1692_v36 = vld [vmem:[#allocation14 + $0xb18] sm:$0xff] }
 0x664   :  { %3092 = vmatpush1.bf16.msra.mxu1 %v3091_v41  ;;  %3348 = vmatpush1.bf16.msra.mxu0 %v3347_v21  ;;  %v1626_v41 = vld [vmem:[#allocation14 + $0x908] sm:$0xff] }
 0x665   :  { %3094 = vmatprep.subr.bf16.mxu1 %v3093_v28  ;;  %3350 = vmatprep.subr.bf16.mxu0 %v3349_v38  ;;  %v1630_v21 = vld [vmem:[#allocation14 + $0x928] sm:$0xff]  ;;  %v3363_v28 = vpack.c.bf16 %v1623_v17, %v1619_v15 }
 0x666   :  { %v3109_v38 = vpack.c.bf16 %v1630_v21, %v1626_v41  ;;  %v1666_v17 = vld [vmem:[#allocation14 + $0xa48] sm:$0xff]  ;;  %v1668_v21 = vld [vmem:[#allocation14 + $0xa58] sm:$0xff] }
 0x667   :  { %2013 = vmatmul.mubr.f32.vlgmr.msra.gmra.mrb[6].mxu1 %v1291_v46  ;;  %2321 = vmatmul.mubr.f32.vlgmr.msra.gmra.mrb[6].mxu0 %v1291_v46  ;;  %v1644_v46 = vld [vmem:[#allocation14 + $0x998] sm:$0xff]  ;;  %v1670_v41 = vld [vmem:[#allocation14 + $0xa68] sm:$0xff]  ;;  %v3385_v10 = vpack.c.bf16 %v1672_v24, %v1668_v21 }
 0x668   :  { %2018 = vmatprep.mubr.f32.mxu1 %v1300_v30  ;;  %3096 = vmatpush1.bf16.msra.mxu1 %v3095_v20  ;;  %v1633_v20 = vld [vmem:[#allocation14 + $0x940] sm:$0xff]  ;;  %v3373_v9 = vpack.c.bf16 %v1648_v48, %v1644_v46  ;;  %v1688_v46 = vld [vmem:[#allocation14 + $0xaf8] sm:$0xff] }
 0x669   :  { %2326 = vmatprep.mubr.f32.mxu0 %v1300_v30  ;;  %3352 = vmatpush1.bf16.msra.mxu0 %v3351_v31  ;;  %v3369_v31 = vpack.c.bf16 %v1640_v13, %v1636_v8  ;;  %v3115_v54 = vpack.c.bf16 %v1637_v25, %v1633_v20  ;;  %v1643_v30 = vld [vmem:[#allocation14 + $0x990] sm:$0xff]  ;;  %v1680_v8 = vld [vmem:[#allocation14 + $0xab8] sm:$0xff]  ;;  %v1677_v20 = vld [vmem:[#allocation14 + $0xaa0] sm:$0xff] }
 0x66a   :  { %3098 = vmatprep.subr.bf16.mxu1 %v3097_v32  ;;  %3354 = vmatprep.subr.bf16.mxu0 %v3353_v56  ;;  %v1639_v32 = vld [vmem:[#allocation14 + $0x970] sm:$0xff]  ;;  %v3375_v34 = vpack.c.bf16 %v1647_v35, %v1643_v30  ;;  %v3393_v30 = vpack.c.bf16 %v1688_v46, %v1684_v39  ;;  %v1690_v35 = vld [vmem:[#allocation14 + $0xb08] sm:$0xff]  ;;  %v1712_v21 = vld [vmem:[#allocation14 + $0xbb8] sm:$0xff] }
 0x66b   :  { %2019 = vmatmul.mubr.f32.gmra.mrb[8].mxu1 %v1297_v53  ;;  %2327 = vmatmul.mubr.f32.gmra.mrb[8].mxu0 %v1297_v53  ;;  %v3371_v56 = vpack.c.bf16 %v1639_v32, %v1635_v26  ;;  %v1653_v53 = vld [vmem:[#allocation14 + $0x9e0] sm:$0xff]  ;;  %v1675_v25 = vld [vmem:[#allocation14 + $0xa90] sm:$0xff]  ;;  %v3389_v26 = vpack.c.bf16 %v1680_v8, %v1676_v18  ;;  %v1682_v32 = vld [vmem:[#allocation14 + $0xac8] sm:$0xff] }
 0x66c   :  { %3100 = vmatpush1.bf16.msra.mxu1 %v3099_v23  ;;  %2089 = vmatprep.mubr.f32.mxu1 %v1326_v61  ;;  %v1656_v23 = vld [vmem:[#allocation14 + $0x9f8] sm:$0xff]  ;;  %v3123_v2 = vpack.c.bf16 %v1653_v53, %v1649_v45  ;;  %v1693_v45 = vld [vmem:[#allocation14 + $0xb20] sm:$0xff]  ;;  %v1691_v53 = vld [vmem:[#allocation14 + $0xb10] sm:$0xff] }
 0x66d   :  { %3356 = vmatpush1.bf16.msra.mxu0 %v3355_v33  ;;  %2397 = vmatprep.mubr.f32.mxu0 %v1326_v61  ;;  %v3119_v33 = vpack.c.bf16 %v1645_v29, %v1641_v0  ;;  %v1660_v61 = vld [vmem:[#allocation14 + $0xa18] sm:$0xff]  ;;  %v1685_v0 = vld [vmem:[#allocation14 + $0xae0] sm:$0xff]  ;;  %v1683_v29 = vld [vmem:[#allocation14 + $0xad0] sm:$0xff] }
 0x66e   :  { %3102 = vmatprep.subr.bf16.mxu1 %v3101_v55  ;;  %3358 = vmatprep.subr.bf16.mxu0 %v3357_v63  ;;  %v1651_v55 = vld [vmem:[#allocation14 + $0x9d0] sm:$0xff]  ;;  %v3377_v63 = vpack.c.bf16 %v1656_v23, %v1652_v22  ;;  %v3381_v15 = vpack.c.bf16 %v1664_v49, %v1660_v61  ;;  %v1696_v22 = vld [vmem:[#allocation14 + $0xb38] sm:$0xff]  ;;  %v1726_v39 = vld [vmem:[#allocation14 + $0xc28] sm:$0xff] }
 0x66f   :  { %v1704_v61 = vld [vmem:[#allocation14 + $0xb78] sm:$0xff] }
 0x670   :  { %3104 = vmatpush1.bf16.msra.mxu1 %v3103_v52  ;;  %v3379_v52 = vpack.c.bf16 %v1655_v1, %v1651_v55  ;;  %v3397_v55 = vpack.c.bf16 %v1696_v22, %v1692_v36  ;;  %v1698_v1 = vld [vmem:[#allocation14 + $0xb48] sm:$0xff]  ;;  %v1720_v18 = vld [vmem:[#allocation14 + $0xbf8] sm:$0xff]  ;;  %v1723_v22 = vld [vmem:[#allocation14 + $0xc10] sm:$0xff] }
 0x671   :  { %3360 = vmatpush1.bf16.msra.mxu0 %v3359_v4  ;;  %3106 = vmatprep.subr.bf16.mxu1 %v3105_v57  ;;  %v3125_v4 = vpack.c.bf16 %v1662_v60, %v1658_v6  ;;  %v1657_v57 = vld [vmem:[#allocation14 + $0xa00] sm:$0xff]  ;;  %v1702_v6 = vld [vmem:[#allocation14 + $0xb68] sm:$0xff]  ;;  %v1700_v60 = vld [vmem:[#allocation14 + $0xb58] sm:$0xff] }
 0x672   :  { %3362 = vmatprep.subr.bf16.mxu0 %v3361_v16  ;;  %v1663_v16 = vld [vmem:[#allocation14 + $0xa30] sm:$0xff]  ;;  %v3127_v42 = vpack.c.bf16 %v1661_v58, %v1657_v57  ;;  %v1701_v57 = vld [vmem:[#allocation14 + $0xb60] sm:$0xff]  ;;  %v1724_v46 = vld [vmem:[#allocation14 + $0xc18] sm:$0xff] }
 0x673   :  { %v1699_v58 = vld [vmem:[#allocation14 + $0xb50] sm:$0xff] }
 0x674   :  { %3108 = vmatpush1.bf16.msra.mxu1 %v3107_v27  ;;  %v3383_v27 = vpack.c.bf16 %v1663_v16, %v1659_v59  ;;  %v3401_v59 = vpack.c.bf16 %v1704_v61, %v1700_v60  ;;  %v1706_v16 = vld [vmem:[#allocation14 + $0xb88] sm:$0xff] }
 0x675   :  { %3364 = vmatpush1.bf16.msra.mxu0 %v3363_v28  ;;  %3110 = vmatprep.subr.bf16.mxu1 %v3109_v38  ;;  %v3129_v28 = vpack.c.bf16 %v1670_v41, %v1666_v17  ;;  %v1665_v38 = vld [vmem:[#allocation14 + $0xa40] sm:$0xff]  ;;  %v1710_v17 = vld [vmem:[#allocation14 + $0xba8] sm:$0xff]  ;;  %v1708_v41 = vld [vmem:[#allocation14 + $0xb98] sm:$0xff] }
 0x676   :  { %3366 = vmatprep.subr.bf16.mxu0 %v3365_v11  ;;  %v1671_v11 = vld [vmem:[#allocation14 + $0xa70] sm:$0xff]  ;;  %v3131_v13 = vpack.c.bf16 %v1669_v40, %v1665_v38  ;;  %v1709_v38 = vld [vmem:[#allocation14 + $0xba0] sm:$0xff] }
 0x677   :  { %v1707_v40 = vld [vmem:[#allocation14 + $0xb90] sm:$0xff] }
 0x678   :  { %3112 = vmatpush1.bf16.msra.mxu1 %v3111_v3  ;;  %v3387_v3 = vpack.c.bf16 %v1671_v11, %v1667_v43  ;;  %v3405_v43 = vpack.c.bf16 %v1712_v21, %v1708_v41  ;;  %v1714_v11 = vld [vmem:[#allocation14 + $0xbc8] sm:$0xff]  ;;  %v1740_v21 = vld [vmem:[#allocation14 + $0xc98] sm:$0xff] }
 0x679   :  { %3368 = vmatpush1.bf16.msra.mxu0 %v3367_v14  ;;  %3114 = vmatprep.subr.bf16.mxu1 %v3113_v19  ;;  %v3133_v14 = vpack.c.bf16 %v1678_v7, %v1674_v47  ;;  %v1673_v19 = vld [vmem:[#allocation14 + $0xa80] sm:$0xff]  ;;  %v1718_v47 = vld [vmem:[#allocation14 + $0xbe8] sm:$0xff]  ;;  %v1716_v7 = vld [vmem:[#allocation14 + $0xbd8] sm:$0xff] }
 0x67a   :  { %3370 = vmatprep.subr.bf16.mxu0 %v3369_v31  ;;  %v1679_v31 = vld [vmem:[#allocation14 + $0xab0] sm:$0xff]  ;;  %v3135_v48 = vpack.c.bf16 %v1677_v20, %v1673_v19  ;;  %v3153_v19 = vpack.c.bf16 %v1718_v47, %v1714_v11  ;;  %v1742_v41 = vld [vmem:[#allocation14 + $0xca8] sm:$0xff] }
 0x67b   :  { %v1715_v20 = vld [vmem:[#allocation14 + $0xbd0] sm:$0xff] }
 0x67c   :  { %3116 = vmatpush1.bf16.msra.mxu1 %v3115_v54  ;;  %v3391_v54 = vpack.c.bf16 %v1679_v31, %v1675_v25  ;;  %v1719_v25 = vld [vmem:[#allocation14 + $0xbf0] sm:$0xff]  ;;  %v3409_v31 = vpack.c.bf16 %v1720_v18, %v1716_v7  ;;  %v1746_v7 = vld [vmem:[#allocation14 + $0xcc8] sm:$0xff] }
 0x67d   :  { %3372 = vmatpush1.bf16.msra.mxu0 %v3371_v56  ;;  %3118 = vmatprep.subr.bf16.mxu1 %v3117_v62  ;;  %v3137_v56 = vpack.c.bf16 %v1686_v37, %v1682_v32  ;;  %v1681_v62 = vld [vmem:[#allocation14 + $0xac0] sm:$0xff]  ;;  %v1307_v32 = vld [vmem:[#allocation2 + $0x10] sm:$0x3]  ;;  %v1743_v47 = vld [vmem:[#allocation14 + $0xcb0] sm:$0xff] }
 0x67e   :  { %3374 = vmatprep.subr.bf16.mxu0 %v3373_v9  ;;  %v1687_v9 = vld [vmem:[#allocation14 + $0xaf0] sm:$0xff]  ;;  %v3139_v23 = vpack.c.bf16 %v1685_v0, %v1681_v62  ;;  %v1722_v37 = vld [vmem:[#allocation14 + $0xc08] sm:$0xff]  ;;  %v3411_v0 = vpack.c.bf16 %v1719_v25, %v1715_v20  ;;  %v1745_v25 = vld [vmem:[#allocation14 + $0xcc0] sm:$0xff] }
 0x67f   :  { %v1312_v62 = vld [vmem:[#allocation2 + $0x38] sm:$0x3]  ;;  %v1750_v18 = vld [vmem:[#allocation14 + $0xce8] sm:$0xff] }
 0x680   :  { %3120 = vmatpush1.bf16.msra.mxu1 %v3119_v33  ;;  %v3395_v33 = vpack.c.bf16 %v1687_v9, %v1683_v29  ;;  %v3157_v9 = vpack.c.bf16 %v1726_v39, %v1722_v37  ;;  %v3169_v20 = vpack.c.bf16 %v1750_v18, %v1746_v7  ;;  %v1751_v37 = vld [vmem:[#allocation14 + $0xcf0] sm:$0xff]  ;;  %v1754_v39 = vld [vmem:[#allocation14 + $0xd08] sm:$0xff]  ;;  %v1777_v7 = vld [vmem:[#allocation14 + $0xdc0] sm:$0xff] }
 0x681   :  { %3376 = vmatpush1.bf16.msra.mxu0 %v3375_v34  ;;  %3122 = vmatprep.subr.bf16.mxu1 %v3121_v44  ;;  %v3141_v34 = vpack.c.bf16 %v1694_v12, %v1690_v35  ;;  %v1689_v44 = vld [vmem:[#allocation14 + $0xb00] sm:$0xff] }
 0x682   :  { %3378 = vmatprep.subr.bf16.mxu0 %v3377_v63  ;;  %v1695_v63 = vld [vmem:[#allocation14 + $0xb30] sm:$0xff]  ;;  %v3143_v49 = vpack.c.bf16 %v1693_v45, %v1689_v44  ;;  %v1721_v35 = vld [vmem:[#allocation14 + $0xc00] sm:$0xff]  ;;  %v1331_v44 = vrot.slane %v1312_v62, 2  ;;  %v1311_v45 = vld [vmem:[#allocation2 + $0x30] sm:$0x3] }
 0x683   :  { %v1725_v12 = vld [vmem:[#allocation14 + $0xc20] sm:$0xff] }
 0x684   :  { %3124 = vmatpush1.bf16.msra.mxu1 %v3123_v2  ;;  %v3399_v2 = vpack.c.bf16 %v1695_v63, %v1691_v53  ;;  %v1730_v53 = vld [vmem:[#allocation14 + $0xc48] sm:$0xff]  ;;  %v1732_v63 = vld [vmem:[#allocation14 + $0xc58] sm:$0xff]  ;;  %v3159_v60 = vpack.c.bf16 %v1725_v12, %v1721_v35  ;;  %v1759_v12 = vld [vmem:[#allocation14 + $0xd30] sm:$0xff] }
 0x685   :  { %3380 = vmatpush1.bf16.msra.mxu0 %v3379_v52  ;;  %3126 = vmatprep.subr.bf16.mxu1 %v3125_v4  ;;  %v3145_v52 = vpack.c.bf16 %v1702_v6, %v1698_v1  ;;  %v1697_v4 = vld [vmem:[#allocation14 + $0xb40] sm:$0xff]  ;;  %v1736_v1 = vld [vmem:[#allocation14 + $0xc78] sm:$0xff] }
 0x686   :  { %3382 = vmatprep.subr.bf16.mxu0 %v3381_v15  ;;  %v1703_v15 = vld [vmem:[#allocation14 + $0xb70] sm:$0xff]  ;;  %v3147_v24 = vpack.c.bf16 %v1701_v57, %v1697_v4  ;;  %v1729_v4 = vld [vmem:[#allocation14 + $0xc40] sm:$0xff] }
 0x687   :  { %v1733_v57 = vld [vmem:[#allocation14 + $0xc60] sm:$0xff] }
 0x688   :  { %3128 = vmatpush1.bf16.msra.mxu1 %v3127_v42  ;;  %v3403_v42 = vpack.c.bf16 %v1703_v15, %v1699_v58  ;;  %v1731_v58 = vld [vmem:[#allocation14 + $0xc50] sm:$0xff]  ;;  %v4364_v15 = vpack.c.bf16 %v1736_v1, %v1732_v63  ;;  %v1765_v63 = vld [vmem:[#allocation14 + $0xd60] sm:$0xff] }
 0x689   :  { %3384 = vmatpush1.bf16.msra.mxu0 %v3383_v27  ;;  %3130 = vmatprep.subr.bf16.mxu1 %v3129_v28  ;;  %v3149_v27 = vpack.c.bf16 %v1710_v17, %v1706_v16  ;;  %v1705_v28 = vld [vmem:[#allocation14 + $0xb80] sm:$0xff]  ;;  %v1735_v16 = vld [vmem:[#allocation14 + $0xc70] sm:$0xff]  ;;  %v1738_v17 = vld [vmem:[#allocation14 + $0xc88] sm:$0xff] }
 0x68a   :  { %3386 = vmatprep.subr.bf16.mxu0 %v3385_v10  ;;  %v1711_v10 = vld [vmem:[#allocation14 + $0xbb0] sm:$0xff]  ;;  %v3151_v8 = vpack.c.bf16 %v1709_v38, %v1705_v28  ;;  %v4368_v28 = vpack.c.bf16 %v1735_v16, %v1731_v58  ;;  %v3165_v38 = vpack.c.bf16 %v1742_v41, %v1738_v17  ;;  %v1769_v16 = vld [vmem:[#allocation14 + $0xd80] sm:$0xff] }
 0x68b   :  { %v1763_v1 = vld [vmem:[#allocation14 + $0xd50] sm:$0xff]  ;;  %v1773_v17 = vld [vmem:[#allocation14 + $0xda0] sm:$0xff] }
 0x68c   :  { %3132 = vmatpush1.bf16.msra.mxu1 %v3131_v13  ;;  %v1713_v13 = vld [vmem:[#allocation14 + $0xbc0] sm:$0xff]  ;;  %v1771_v41 = vld [vmem:[#allocation14 + $0xd90] sm:$0xff] }
 0x68d   :  { %3388 = vmatpush1.bf16.msra.mxu0 %v3387_v3  ;;  %3134 = vmatprep.subr.bf16.mxu1 %v3133_v14  ;;  %v1717_v3 = vld [vmem:[#allocation14 + $0xbe0] sm:$0xff]  ;;  %v3407_v14 = vpack.c.bf16 %v1711_v10, %v1707_v40  ;;  %v1739_v10 = vld [vmem:[#allocation14 + $0xc90] sm:$0xff] }
 0x68e   :  { %3390 = vmatprep.subr.bf16.mxu0 %v3389_v26  ;;  %v1305_v26 = vld [vmem:[#allocation2] sm:$0xfc] }
 0x68f   :  { %v1321_v29 = vrot.slane %v1305_v26, 2  ;;  %v1737_v40 = vld [vmem:[#allocation14 + $0xc80] sm:$0xff] }
 0x690   :  { %3136 = vmatpush1.bf16.msra.mxu1 %v3135_v48  ;;  %v1728_v48 = vld [vmem:[#allocation14 + $0xc38] sm:$0xff]  ;;  %v1749_v26 = vld [vmem:[#allocation14 + $0xce0] sm:$0xff] }
 0x691   :  { %3392 = vmatpush1.bf16.msra.mxu0 %v3391_v54  ;;  %3138 = vmatprep.subr.bf16.mxu1 %v3137_v56  ;;  %v3155_v54 = vpack.c.bf16 %v1717_v3, %v1713_v13  ;;  %v1310_v56 = vld [vmem:[#allocation2 + $0x28] sm:$0xfc]  ;;  %v4357_v36 = vpack.c.bf16 %v1728_v48, %v1724_v46  ;;  %v1752_v13 = vld [vmem:[#allocation14 + $0xcf8] sm:$0xff] }
 0x692   :  { %3394 = vmatprep.subr.bf16.mxu0 %v3393_v30  ;;  %v1322_v30 = vrot.slane %v1307_v32, 2  ;;  %v3577_v3 = vld [vmem:[#allocation3 + $0x8] sm:$0xff]  ;;  %v1756_v48 = vld [vmem:[#allocation14 + $0xd18] sm:$0xff] }
 0x693   :  { %v1758_v46 = vld [vmem:[#allocation14 + $0xd28] sm:$0xff]  ;;  %v1781_v18 = vld [vmem:[#allocation14 + $0xde0] sm:$0xff] }
 0x694   :  { %3140 = vmatpush1.bf16.msra.mxu1 %v3139_v23  ;;  %v1727_v23 = vld [vmem:[#allocation14 + $0xc30] sm:$0xff]  ;;  %v1323_v6 = vsel %vm553_vm5, %v1321_v29, %v1322_v30  ;;  %v1753_v29 = vld [vmem:[#allocation14 + $0xd00] sm:$0xff] }
 0x695   :  { %3396 = vmatpush1.bf16.msra.mxu0 %v3395_v33  ;;  %3142 = vmatprep.subr.bf16.mxu1 %v3141_v34  ;;  %v1309_v33 = vld [vmem:[#allocation2 + $0x20] sm:$0xfc]  ;;  %v1330_v34 = vrot.slane %v1310_v56, 2  ;;  %v4361_v61 = vpack.c.bf16 %v1727_v23, %v1723_v22  ;;  %v3171_v56 = vpack.c.bf16 %v1749_v26, %v1745_v25  ;;  %v1762_v22 = vld [vmem:[#allocation14 + $0xd48] sm:$0xff] }
 0x696   :  { %3398 = vmatprep.subr.bf16.mxu0 %v3397_v55  ;;  %v1734_v55 = vld [vmem:[#allocation14 + $0xc68] sm:$0xff]  ;;  %v1757_v30 = vld [vmem:[#allocation14 + $0xd20] sm:$0xff]  ;;  %v1788_v25 = vld [vmem:[#allocation14 + $0xe18] sm:$0xff] }
 0x697   :  { %v1766_v23 = vld [vmem:[#allocation14 + $0xd68] sm:$0xff]  ;;  %v1792_v26 = vld [vmem:[#allocation14 + $0xe38] sm:$0xff] }
 0x698   :  { %3144 = vmatpush1.bf16.msra.mxu1 %v3143_v49  ;;  %v1327_v49 = vrot.slane %v1309_v33, 2  ;;  %v1764_v33 = vld [vmem:[#allocation14 + $0xd58] sm:$0xff] }
 0x699   :  { %3400 = vmatpush1.bf16.msra.mxu0 %v3399_v2  ;;  %3146 = vmatprep.subr.bf16.mxu1 %v3145_v52  ;;  %v1328_v2 = vrot.slane %v1311_v45, 2  ;;  %v3161_v52 = vpack.c.bf16 %v1734_v55, %v1730_v53  ;;  %v3177_v53 = vpack.c.bf16 %v1766_v23, %v1762_v22  ;;  %v1761_v55 = vld [vmem:[#allocation14 + $0xd40] sm:$0xff] }
 0x69a   :  { %3402 = vmatprep.subr.bf16.mxu0 %v3401_v59  ;;  %v1332_v59 = vsel %vm553_vm5, %v1330_v34, %v1331_v44  ;;  %v1768_v34 = vld [vmem:[#allocation14 + $0xd78] sm:$0xff]  ;;  %v3175_v44 = vpack.c.bf16 %v1757_v30, %v1753_v29  ;;  %v1794_v29 = vld [vmem:[#allocation14 + $0xe48] sm:$0xff] }
 0x69b   :  { %v1798_v30 = vld [vmem:[#allocation14 + $0xe68] sm:$0xff] }
 0x69c   :  { %3148 = vmatpush1.bf16.msra.mxu1 %v3147_v24  ;;  %v1744_v24 = vld [vmem:[#allocation14 + $0xcb8] sm:$0xff] }
 0x69d   :  { %3404 = vmatpush1.bf16.msra.mxu0 %v3403_v42  ;;  %3150 = vmatprep.subr.bf16.mxu1 %v3149_v27  ;;  %v3163_v42 = vpack.c.bf16 %v1733_v57, %v1729_v4  ;;  %v1329_v27 = vsel %vm553_vm5, %v1327_v49, %v1328_v2  ;;  %v4371_v11 = vpack.c.bf16 %v1744_v24, %v1740_v21  ;;  %v1770_v49 = vld [vmem:[#allocation14 + $0xd88] sm:$0xff]  ;;  %v1776_v4 = vld [vmem:[#allocation14 + $0xdb8] sm:$0xff]  ;;  %v1775_v24 = vld [vmem:[#allocation14 + $0xdb0] sm:$0xff] }
 0x69e   :  { %3406 = vmatprep.subr.bf16.mxu0 %v3405_v43  ;;  %v1741_v43 = vld [vmem:[#allocation14 + $0xca0] sm:$0xff]  ;;  %v1774_v2 = vld [vmem:[#allocation14 + $0xda8] sm:$0xff]  ;;  %v3179_v57 = vpack.c.bf16 %v1765_v63, %v1761_v55  ;;  %v1799_v63 = vld [vmem:[#allocation14 + $0xe70] sm:$0xff] }
 0x6a0   :  { %3152 = vmatpush1.bf16.msra.mxu1 %v3151_v8  ;;  %v1748_v8 = vld [vmem:[#allocation14 + $0xcd8] sm:$0xff] }
 0x6a1   :  { %3408 = vmatpush1.bf16.msra.mxu0 %v3407_v14  ;;  %3154 = vmatprep.subr.bf16.mxu1 %v3153_v19  ;;  %v3167_v14 = vpack.c.bf16 %v1741_v43, %v1737_v40  ;;  %v4374_v19 = vpack.c.bf16 %v1743_v47, %v1739_v10  ;;  %v4377_v32 = vpack.c.bf16 %v1752_v13, %v1748_v8  ;;  %v1784_v40 = vld [vmem:[#allocation14 + $0xdf8] sm:$0xff]  ;;  %v1779_v8 = vld [vmem:[#allocation14 + $0xdd0] sm:$0xff] }
 0x6a2   :  { %3410 = vmatprep.subr.bf16.mxu0 %v3409_v31  ;;  %v1747_v31 = vld [vmem:[#allocation14 + $0xcd0] sm:$0xff]  ;;  %v3183_v43 = vpack.c.bf16 %v1773_v17, %v1769_v16  ;;  %v4398_v10 = vpack.c.bf16 %v1775_v24, %v1771_v41  ;;  %v1805_v16 = vld [vmem:[#allocation14 + $0xea0] sm:$0xff] }
 0x6a3   :  { %v4380_v62 = vpack.c.bf16 %v1751_v37, %v1747_v31  ;;  %v3187_v31 = vpack.c.bf16 %v1781_v18, %v1777_v7  ;;  %v1803_v17 = vld [vmem:[#allocation14 + $0xe90] sm:$0xff]  ;;  %v1809_v18 = vld [vmem:[#allocation14 + $0xec0] sm:$0xff] }
 0x6a4   :  { %3156 = vmatpush1.bf16.msra.mxu1 %v3155_v54  ;;  %v1760_v54 = vld [vmem:[#allocation14 + $0xd38] sm:$0xff]  ;;  %v1807_v24 = vld [vmem:[#allocation14 + $0xeb0] sm:$0xff] }
 0x6a5   :  { %3412 = vmatpush1.bf16.msra.mxu0 %v3411_v0  ;;  %3158 = vmatprep.subr.bf16.mxu1 %v3157_v9  ;;  %v3173_v0 = vpack.c.bf16 %v1758_v46, %v1754_v39  ;;  %v1755_v9 = vld [vmem:[#allocation14 + $0xd10] sm:$0xff]  ;;  %v4383_v35 = vpack.c.bf16 %v1760_v54, %v1756_v48  ;;  %v1785_v46 = vld [vmem:[#allocation14 + $0xe00] sm:$0xff] }
 0x6a6   :  { %3414 = vmatprep.subr.bf16.mxu0 %v4357_v36  ;;  %v4386_v45 = vpack.c.bf16 %v1759_v12, %v1755_v9  ;;  %v1789_v48 = vld [vmem:[#allocation14 + $0xe20] sm:$0xff]  ;;  %v1787_v54 = vld [vmem:[#allocation14 + $0xe10] sm:$0xff]  ;;  %v1796_v9 = vld [vmem:[#allocation14 + $0xe58] sm:$0xff] }
 0x6a7   :  { %2090 = vmatmul.mubr.f32.vlgmr.msra.gmra.mrb[6].mxu1 %v1323_v6  ;;  %v1800_v12 = vld [vmem:[#allocation14 + $0xe78] sm:$0xff]  ;;  %v3191_v22 = vpack.c.bf16 %v1789_v48, %v1785_v46 }
 0x6a8   :  { %2398 = vmatmul.mubr.f32.vlgmr.msra.gmra.mrb[6].mxu0 %v1323_v6  ;;  %2095 = vmatprep.mubr.f32.mxu1 %v1332_v59  ;;  %v4389_v6 = vpack.c.bf16 %v1768_v34, %v1764_v33  ;;  %v3193_v33 = vpack.c.bf16 %v1798_v30, %v1794_v29  ;;  %v1793_v34 = vld [vmem:[#allocation14 + $0xe40] sm:$0xff]  ;;  %v4413_v55 = vpack.c.bf16 %v1800_v12, %v1796_v9  ;;  %v1819_v30 = vld [vmem:[#allocation14 + $0xf10] sm:$0xff] }
 0x6a9   :  { %3160 = vmatpush1.bf16.msra.mxu1 %v3159_v60  ;;  %2403 = vmatprep.mubr.f32.mxu0 %v1332_v59  ;;  %v1767_v60 = vld [vmem:[#allocation14 + $0xd70] sm:$0xff]  ;;  %v3181_v59 = vpack.c.bf16 %v1774_v2, %v1770_v49  ;;  %v1804_v49 = vld [vmem:[#allocation14 + $0xe98] sm:$0xff]  ;;  %v1821_v29 = vld [vmem:[#allocation14 + $0xf20] sm:$0xff] }
 0x6aa   :  { %3416 = vmatpush1.bf16.msra.mxu0 %v4361_v61  ;;  %3162 = vmatprep.subr.bf16.mxu1 %v3161_v52  ;;  %v1772_v52 = vld [vmem:[#allocation14 + $0xd98] sm:$0xff]  ;;  %v4392_v58 = vpack.c.bf16 %v1767_v60, %v1763_v1  ;;  %v1802_v1 = vld [vmem:[#allocation14 + $0xe88] sm:$0xff]  ;;  %v1823_v12 = vld [vmem:[#allocation14 + $0xf30] sm:$0xff] }
 0x6ab   :  { %2096 = vmatmul.mubr.f32.gmra.mrb[8].mxu1 %v1329_v27  ;;  %3418 = vmatprep.subr.bf16.mxu0 %v4364_v15  ;;  %v4395_v21 = vpack.c.bf16 %v1776_v4, %v1772_v52  ;;  %v1806_v60 = vld [vmem:[#allocation14 + $0xea8] sm:$0xff]  ;;  %v1808_v2 = vld [vmem:[#allocation14 + $0xeb8] sm:$0xff] }
 0x6ac   :  { %2404 = vmatmul.mubr.f32.gmra.mrb[8].mxu0 %v1329_v27  ;;  %2166 = vmatprep.mubr.f32.mxu1 %v3577_v3  ;;  %v1782_v27 = vld [vmem:[#allocation14 + $0xde8] sm:$0xff]  ;;  %v4419_v41 = vpack.c.bf16 %v1808_v2, %v1804_v49  ;;  %v1829_v49 = vld [vmem:[#allocation14 + $0xf60] sm:$0xff]  ;;  %v1827_v2 = vld [vmem:[#allocation14 + $0xf50] sm:$0xff] }
 0x6ad   :  { %3164 = vmatpush1.bf16.msra.mxu1 %v3163_v42  ;;  %2474 = vmatprep.mubr.f32.mxu0 %v3577_v3  ;;  %v1778_v42 = vld [vmem:[#allocation14 + $0xdc8] sm:$0xff]  ;;  %v1783_v3 = vld [vmem:[#allocation14 + $0xdf0] sm:$0xff] }
 0x6ae   :  { %3420 = vmatpush1.bf16.msra.mxu0 %v4368_v28  ;;  %3166 = vmatprep.subr.bf16.mxu1 %v3165_v38  ;;  %v1780_v38 = vld [vmem:[#allocation14 + $0xdd8] sm:$0xff]  ;;  %v3185_v47 = vpack.c.bf16 %v1782_v27, %v1778_v42  ;;  %v4404_v37 = vpack.c.bf16 %v1783_v3, %v1779_v8  ;;  %v1810_v42 = vld [vmem:[#allocation14 + $0xec8] sm:$0xff]  ;;  %v1813_v8 = vld [vmem:[#allocation14 + $0xee0] sm:$0xff] }
 0x6af   :  { %3422 = vmatprep.subr.bf16.mxu0 %v4371_v11  ;;  %v4401_v13 = vpack.c.bf16 %v1784_v40, %v1780_v38  ;;  %v1814_v27 = vld [vmem:[#allocation14 + $0xee8] sm:$0xff]  ;;  %v1812_v38 = vld [vmem:[#allocation14 + $0xed8] sm:$0xff]  ;;  %v1811_v3 = vld [vmem:[#allocation14 + $0xed0] sm:$0xff]  ;;  %v3203_v46 = vpack.c.bf16 %v1813_v8, %v1809_v18 }
 0x6b0   :  { %v1816_v40 = vld [vmem:[#allocation14 + $0xef8] sm:$0xff]  ;;  %v3201_v7 = vpack.c.bf16 %v1814_v27, %v1810_v42  ;;  %v1839_v8 = vld [vmem:[#allocation14 + $0xfb0] sm:$0xff] }
 0x6b1   :  { %3168 = vmatpush1.bf16.msra.mxu1 %v3167_v14  ;;  %v1786_v14 = vld [vmem:[#allocation14 + $0xe08] sm:$0xff] }
 0x6b2   :  { %3424 = vmatpush1.bf16.msra.mxu0 %v4374_v19  ;;  %3170 = vmatprep.subr.bf16.mxu1 %v3169_v20  ;;  %v1790_v20 = vld [vmem:[#allocation14 + $0xe28] sm:$0xff] }
 0x6b3   :  { %3426 = vmatprep.subr.bf16.mxu0 %v4377_v32  ;;  %v3189_v39 = vpack.c.bf16 %v1790_v20, %v1786_v14  ;;  %v4425_v14 = vpack.c.bf16 %v1816_v40, %v1812_v38  ;;  %v1815_v20 = vld [vmem:[#allocation14 + $0xef0] sm:$0xff]  ;;  %v1833_v40 = vld [vmem:[#allocation14 + $0xf80] sm:$0xff] }
 0x6b4   :  { %v4428_v48 = vpack.c.bf16 %v1815_v20, %v1811_v3  ;;  %v1842_v3 = vld [vmem:[#allocation14 + $0xfc8] sm:$0xff] }
 0x6b5   :  { %3172 = vmatpush1.bf16.msra.mxu1 %v3171_v56  ;;  %v4407_v56 = vpack.c.bf16 %v1792_v26, %v1788_v25  ;;  %v1818_v25 = vld [vmem:[#allocation14 + $0xf08] sm:$0xff] }
 0x6b6   :  { %3428 = vmatpush1.bf16.msra.mxu0 %v4380_v62  ;;  %3174 = vmatprep.subr.bf16.mxu1 %v3173_v0  ;;  %v1791_v0 = vld [vmem:[#allocation14 + $0xe30] sm:$0xff]  ;;  %v1822_v26 = vld [vmem:[#allocation14 + $0xf28] sm:$0xff] }
 0x6b7   :  { %3430 = vmatprep.subr.bf16.mxu0 %v4383_v35  ;;  %v4410_v23 = vpack.c.bf16 %v1791_v0, %v1787_v54  ;;  %v3205_v54 = vpack.c.bf16 %v1822_v26, %v1818_v25  ;;  %v1817_v0 = vld [vmem:[#allocation14 + $0xf00] sm:$0xff]  ;;  %v1846_v20 = vld [vmem:[#allocation14 + $0xfe8] sm:$0xff]  ;;  %v1844_v25 = vld [vmem:[#allocation14 + $0xfd8] sm:$0xff] }
 0x6b8   :  { %v1848_v26 = vld [vmem:[#allocation14 + $0xff8] sm:$0xff] }
 0x6b9   :  { %3176 = vmatpush1.bf16.msra.mxu1 %v3175_v44  ;;  %v1797_v44 = vld [vmem:[#allocation14 + $0xe60] sm:$0xff] }
 0x6ba   :  { %3432 = vmatpush1.bf16.msra.mxu0 %v4386_v45  ;;  %3178 = vmatprep.subr.bf16.mxu1 %v3177_v53  ;;  %v1795_v53 = vld [vmem:[#allocation14 + $0xe50] sm:$0xff]  ;;  %v3195_v52 = vpack.c.bf16 %v1797_v44, %v1793_v34  ;;  %v1828_v34 = vld [vmem:[#allocation14 + $0xf58] sm:$0xff] }
 0x6bb   :  { %3434 = vmatprep.subr.bf16.mxu0 %v4389_v6  ;;  %v4416_v4 = vpack.c.bf16 %v1799_v63, %v1795_v53  ;;  %v1832_v44 = vld [vmem:[#allocation14 + $0xf78] sm:$0xff]  ;;  %v3207_v53 = vpack.c.bf16 %v1821_v29, %v1817_v0  ;;  %v4434_v63 = vpack.c.bf16 %v1823_v12, %v1819_v30  ;;  %v1845_v0 = vld [vmem:[#allocation14 + $0xfe0] sm:$0xff]  ;;  %v3473_v29 = vpack.c.bf16 %v1848_v26, %v1844_v25  ;;  %v1843_v30 = vld [vmem:[#allocation14 + $0xfd0] sm:$0xff] }
 0x6bc   :  { %v1847_v12 = vld [vmem:[#allocation14 + $0xff0] sm:$0xff] }
 0x6bd   :  { %3180 = vmatpush1.bf16.msra.mxu1 %v3179_v57  ;;  %v3197_v57 = vpack.c.bf16 %v1806_v60, %v1802_v1  ;;  %v1825_v60 = vld [vmem:[#allocation14 + $0xf40] sm:$0xff] }
 0x6be   :  { %3436 = vmatpush1.bf16.msra.mxu0 %v4392_v58  ;;  %3182 = vmatprep.subr.bf16.mxu1 %v3181_v59  ;;  %v1801_v59 = vld [vmem:[#allocation14 + $0xe80] sm:$0xff]  ;;  %v3211_v42 = vpack.c.bf16 %v1829_v49, %v1825_v60 }
 0x6bf   :  { %3438 = vmatprep.subr.bf16.mxu0 %v4395_v21 }
 0x6c1   :  { %3184 = vmatpush1.bf16.msra.mxu1 %v3183_v43  ;;  %v3199_v43 = vpack.c.bf16 %v1805_v16, %v1801_v59  ;;  %v1834_v59 = vld [vmem:[#allocation14 + $0xf88] sm:$0xff] }
 0x6c2   :  { %3440 = vmatpush1.bf16.msra.mxu0 %v4398_v10  ;;  %3186 = vmatprep.subr.bf16.mxu1 %v3185_v47  ;;  %v4422_v47 = vpack.c.bf16 %v1807_v24, %v1803_v17  ;;  %v1838_v16 = vld [vmem:[#allocation14 + $0xfa8] sm:$0xff]  ;;  %v1836_v17 = vld [vmem:[#allocation14 + $0xf98] sm:$0xff] }
 0x6c3   :  { %3442 = vmatprep.subr.bf16.mxu0 %v4401_v13  ;;  %v1840_v24 = vld [vmem:[#allocation14 + $0xfb8] sm:$0xff]  ;;  %v3213_v38 = vpack.c.bf16 %v1838_v16, %v1834_v59 }
 0x6c4   :  { %v3469_v18 = vpack.c.bf16 %v1840_v24, %v1836_v17 }
 0x6c5   :  { %3188 = vmatpush1.bf16.msra.mxu1 %v3187_v31  ;;  %v1820_v31 = vld [vmem:[#allocation14 + $0xf18] sm:$0xff] }
 0x6c6   :  { %3444 = vmatpush1.bf16.msra.mxu0 %v4404_v37  ;;  %3190 = vmatprep.subr.bf16.mxu1 %v3189_v39  ;;  %v1824_v39 = vld [vmem:[#allocation14 + $0xf38] sm:$0xff] }
 0x6c7   :  { %3446 = vmatprep.subr.bf16.mxu0 %v4407_v56  ;;  %v4431_v9 = vpack.c.bf16 %v1824_v39, %v1820_v31 }
 0x6c9   :  { %3192 = vmatpush1.bf16.msra.mxu1 %v3191_v22  ;;  %v1826_v22 = vld [vmem:[#allocation14 + $0xf48] sm:$0xff] }
 0x6ca   :  { %3448 = vmatpush1.bf16.msra.mxu0 %v4410_v23  ;;  %3194 = vmatprep.subr.bf16.mxu1 %v3193_v33  ;;  %v1830_v33 = vld [vmem:[#allocation14 + $0xf68] sm:$0xff] }
 0x6cb   :  { %3450 = vmatprep.subr.bf16.mxu0 %v4413_v55  ;;  %v3209_v1 = vpack.c.bf16 %v1830_v33, %v1826_v22  ;;  %v3475_v33 = vpack.c.bf16 %v1847_v12, %v1843_v30 }
 0x6cd   :  { %3196 = vmatpush1.bf16.msra.mxu1 %v3195_v52  ;;  %v4437_v52 = vpack.c.bf16 %v1832_v44, %v1828_v34  ;;  %v3578_v34 = vld [vmem:[#allocation3] sm:$0xff]  ;;  %v3579_v44 = vld [vmem:[#allocation3 + $0x18] sm:$0xff] }
 0x6ce   :  { %3452 = vmatpush1.bf16.msra.mxu0 %v4416_v4  ;;  %3198 = vmatprep.subr.bf16.mxu1 %v3197_v57  ;;  %v1831_v57 = vld [vmem:[#allocation14 + $0xf70] sm:$0xff] }
 0x6cf   :  { %3454 = vmatprep.subr.bf16.mxu0 %v4419_v41  ;;  %v4440_v27 = vpack.c.bf16 %v1831_v57, %v1827_v2 }
 0x6d1   :  { %3200 = vmatpush1.bf16.msra.mxu1 %v3199_v43  ;;  %v1837_v43 = vld [vmem:[#allocation14 + $0xfa0] sm:$0xff] }
 0x6d2   :  { %3456 = vmatpush1.bf16.msra.mxu0 %v4422_v47  ;;  %3202 = vmatprep.subr.bf16.mxu1 %v3201_v7  ;;  %v1835_v7 = vld [vmem:[#allocation14 + $0xf90] sm:$0xff]  ;;  %v3215_v31 = vpack.c.bf16 %v1837_v43, %v1833_v40 }
 0x6d3   :  { %3458 = vmatprep.subr.bf16.mxu0 %v4425_v14  ;;  %v3471_v39 = vpack.c.bf16 %v1839_v8, %v1835_v7 }
 0x6d5   :  { %3204 = vmatpush1.bf16.msra.mxu1 %v3203_v46  ;;  %v3217_v46 = vpack.c.bf16 %v1846_v20, %v1842_v3 }
 0x6d6   :  { %3460 = vmatpush1.bf16.msra.mxu0 %v4428_v48  ;;  %3206 = vmatprep.subr.bf16.mxu1 %v3205_v54  ;;  %v1841_v54 = vld [vmem:[#allocation14 + $0xfc0] sm:$0xff] }
 0x6d7   :  { %3462 = vmatprep.subr.bf16.mxu0 %v4431_v9  ;;  %v3219_v22 = vpack.c.bf16 %v1845_v0, %v1841_v54 }
 0x6d9   :  { %3208 = vmatpush1.bf16.msra.mxu1 %v3207_v53  ;;  %v3580_v53 = vld [vmem:[#allocation3 + $0x10] sm:$0xff] }
 0x6da   :  { %3464 = vmatpush1.bf16.msra.mxu0 %v4434_v63  ;;  %3210 = vmatprep.subr.bf16.mxu1 %v3209_v1 }
 0x6db   :  { %3466 = vmatprep.subr.bf16.mxu0 %v4437_v52 }
 0x6dd   :  { %3212 = vmatpush1.bf16.msra.mxu1 %v3211_v42 }
 0x6de   :  { %3468 = vmatpush1.bf16.msra.mxu0 %v4440_v27  ;;  %3214 = vmatprep.subr.bf16.mxu1 %v3213_v38 }
 0x6df   :  { %3470 = vmatprep.subr.bf16.mxu0 %v3469_v18 }
 0x6e1   :  { %3216 = vmatpush1.bf16.msra.mxu1 %v3215_v31 }
 0x6e2   :  { %3472 = vmatpush1.bf16.msra.mxu0 %v3471_v39  ;;  %3218 = vmatprep.subr.bf16.mxu1 %v3217_v46 }
 0x6e3   :  { %3474 = vmatprep.subr.bf16.mxu0 %v3473_v29 }
 0x6e5   :  { %3220 = vmatpush1.bf16.msra.mxu1 %v3219_v22 }
 0x6e6   :  { %3476 = vmatpush1.bf16.msra.mxu0 %v3475_v33  ;;  %3477 = vmatprep.subr.bf16.mxu1 %v4357_v36 }
 0x6e8   :  { %2167 = vmatmul.mubr.f32.vlgmr.msra.gmra.mrb[6].mxu1 %v3578_v34 }
 0x6e9   :  { %2475 = vmatmul.mubr.f32.vlgmr.msra.gmra.mrb[6].mxu0 %v3578_v34  ;;  %3493 = vmatpush1.bf16.msra.mxu1 %v4361_v61 }
 0x6ea   :  { %2172 = vmatprep.mubr.f32.mxu1 %v3579_v44  ;;  %3478 = vmatprep.subr.bf16.mxu1 %v4364_v15  ;;  %v1849_v15 = vld [vmem:[#allocation15] sm:$0xf] }
 0x6ec   :  { %2173 = vmatmul.mubr.f32.gmra.mrb[8].mxu1 %v3580_v53 }
 0x6ed   :  { %3494 = vmatpush1.bf16.msra.mxu1 %v4368_v28  ;;  %2480 = vmatprep.mubr.f32.mxu1 %v3579_v44  ;;  %v1861_v28 = vsub.s32 2, %v4195_v50 }
 0x6ee   :  { %3479 = vmatprep.subr.bf16.mxu1 %v4371_v11  ;;  %v1865_v11 = vsub.s32 3, %v4195_v50 }
 0x6f1   :  { %3495 = vmatpush1.bf16.msra.mxu1 %v4374_v19  ;;  %v1854_v19 = vrot.slane %v1849_v15, %v4198_v51 }
 0x6f2   :  { %3480 = vmatprep.subr.bf16.mxu1 %v4377_v32  ;;  %v1858_v32 = vrot.slane %v1849_v15, %v4255_v5 }
 0x6f5   :  { %3496 = vmatpush1.bf16.msra.mxu1 %v4380_v62  ;;  %v1862_v62 = vrot.slane %v1849_v15, %v1861_v28 }
 0x6f6   :  { %3481 = vmatprep.subr.bf16.mxu1 %v4383_v35 }
 0x6f9   :  { %3497 = vmatpush1.bf16.msra.mxu1 %v4386_v45  ;;  %v1866_v45 = vrot.slane %v1849_v15, %v1865_v11 }
 0x6fa   :  { %3482 = vmatprep.subr.bf16.mxu1 %v4389_v6 }
 0x6fd   :  { %3498 = vmatpush1.bf16.msra.mxu1 %v4392_v58 }
 0x6fe   :  { %3483 = vmatprep.subr.bf16.mxu1 %v4395_v21 }
 0x701   :  { %3499 = vmatpush1.bf16.msra.mxu1 %v4398_v10 }
 0x702   :  { %3484 = vmatprep.subr.bf16.mxu1 %v4401_v13 }
 0x705   :  { %3500 = vmatpush1.bf16.msra.mxu1 %v4404_v37 }
 0x706   :  { %3485 = vmatprep.subr.bf16.mxu1 %v4407_v56 }
 0x709   :  { %3501 = vmatpush1.bf16.msra.mxu1 %v4410_v23 }
 0x70a   :  { %3486 = vmatprep.subr.bf16.mxu1 %v4413_v55 }
 0x70d   :  { %3502 = vmatpush1.bf16.msra.mxu1 %v4416_v4 }
 0x70e   :  { %3487 = vmatprep.subr.bf16.mxu1 %v4419_v41 }
 0x711   :  { %3503 = vmatpush1.bf16.msra.mxu1 %v4422_v47 }
 0x712   :  { %3488 = vmatprep.subr.bf16.mxu1 %v4425_v14 }
 0x715   :  { %3504 = vmatpush1.bf16.msra.mxu1 %v4428_v48 }
 0x716   :  { %3489 = vmatprep.subr.bf16.mxu1 %v4431_v9 }
 0x719   :  { %3505 = vmatpush1.bf16.msra.mxu1 %v4434_v63 }
 0x71a   :  { %3490 = vmatprep.subr.bf16.mxu1 %v4437_v52 }
 0x71d   :  { %3506 = vmatpush1.bf16.msra.mxu1 %v4440_v27 }
 0x71e   :  { %3491 = vmatprep.subr.bf16.mxu1 %v3469_v18 }
 0x721   :  { %3507 = vmatpush1.bf16.msra.mxu1 %v3471_v39 }
 0x722   :  { %3492 = vmatprep.subr.bf16.mxu1 %v3473_v29 }
 0x725   :  { %3508 = vmatpush1.bf16.msra.mxu1 %v3475_v33 }
 0x728   :  { %2481 = vmatmul.mubr.f32.vlgmr.msra.gmra.mrb[10].mxu1 %v3580_v53 }
 0x77f   :  { %v2405_v36 = vpop.f32.mrb[8].mxu0 }
 0x780   :  { %v2407_v61 = vpop.f32.mrb[9].mxu0  ;;  %v3519_v5 = vadd.f32 %v2405_v36, %v1862_v62 }
 0x781   :  { %v3521_v4 = vadd.f32 %v2407_v61, %v1866_v45 }
 0x7bb   :  { %v2168_v35 = vpop.f32.mrb[6].mxu1 }
 0x7bc   :  { %v3513_v6 = vadd.f32 %v2168_v35, %v1854_v19  ;;  %v2476_v58 = vpop.f32.mrb[6].mxu0  ;;  %v2170_v21 = vpop.f32.mrb[7].mxu1 }
 0x7bd   :  { %v3517_v10 = vadd.f32 %v2476_v58, %v1862_v62  ;;  %v3514_v13 = vadd.f32 %v2170_v21, %v1858_v32  ;;  %v2478_v37 = vpop.f32.mrb[7].mxu0 }
 0x7be   :  { %2487 = vst [vmem:[#allocation20] sm:$0xff] %v3513_v6  ;;  %v3518_v56 = vadd.f32 %v2478_v37, %v1866_v45 }
 0x7bf   :  { %2489 = vst [vmem:[#allocation20 + $0x10] sm:$0xff] %v3517_v10  ;;  %2488 = vst [vmem:[#allocation20 + $0x8] sm:$0xff] %v3514_v13  ;;  %v2174_v23 = vpop.f32.mrb[8].mxu1 }
 0x7c0   :  { %2490 = vst [vmem:[#allocation20 + $0x18] sm:$0xff] %v3518_v56  ;;  %v3515_v50 = vadd.f32 %v2174_v23, %v1854_v19  ;;  %v2176_v55 = vpop.f32.mrb[9].mxu1 }
 0x7c1   :  { %v3516_v51 = vadd.f32 %v2176_v55, %v1858_v32 }
 0x7c2   :  { %2491 = vst [vmem:[#allocation20 + $0x20] sm:$0xff] %v3515_v50 }
 0x7c3   :  { %2492 = vst [vmem:[#allocation20 + $0x28] sm:$0xff] %v3516_v51 }
 0x7fb   :  { %v2482_v41 = vpop.f32.mrb[10].mxu1 }
 0x7fc   :  { %v3520_v47 = vadd.f32 %v3519_v5, %v2482_v41  ;;  %v2484_v14 = vpop.f32.mrb[11].mxu1 }
 0x7fd   :  { %v3522_v48 = vadd.f32 %v3521_v4, %v2484_v14 }
 0x7fe   :  { %2493 = vst [vmem:[#allocation20 + $0x30] sm:$0xff] %v3520_v47 }
 0x7ff   :  { %2494 = vst [vmem:[#allocation20 + $0x38] sm:$0xff] %v3522_v48 }
 0x800   :  { %3812 = shalt.err (!%p3809_p0)
}
 0x801   :  { %s3813_s24 = scalar_lea.hbm %s4501_s10, 1024 }
 0x802   :  { %p3814_p1 = scmp.ne.s32.totalorder %s4501_s10, %s3813_s24  ;;  %p3817_p2 = scmp.lt.u32.totalorder %s3813_s24, %s4501_s10 }
 0x804   :  { %p3819_p3 = pnand %p3817_p2, %p3814_p1 }
 0x806   :  { %3822 = shalt.err (!%p3819_p3)
}
 0x807   :  { %2506 = dma.vmem_to_hbm [thread:$0]  %s2501_s21, 1024, %s4501_s10, [#allocation5], %s3847_s4, %s3847_s4, %s3848_s5  }
 0x808   :  { %3835 = dma.done.wait [#allocation5], 1024  }
 0x809   :  { %3836 = vsyncadd [#allocation5], 4294966272 }
 0x80a   :  { %2510 = vsyncpa [#allocation4], 1 }
 0x80b   :  { %2511 = vsyncpa [#allocation7], 1 }
 0x80c   :  { %2512 = vsyncpa [#allocation10], 1 }
 0x80d   :  { %2513 = vsyncpa [#allocation13], 1 }
 0x80e   :  { %2514 = vsyncpa [#allocation16], 1 }
 0x80f   :  { %2515 = vsyncpa [#allocation19], 1 }
 0x810   :  { %2516 = vsyncpa [#allocation5], 1 }

</bundles_post_ra>
